<compile_context>
chip_gen: v5e
topology: v5e:2x2
jax: 0.10.0
libtpu: 0.0.40
codegen_flags: <defaults>
</compile_context>

<pallas_src>
import jax
import jax.numpy as jnp
from jax.experimental import pallas as pl
from jax.experimental.pallas import tpu as pltpu

K = 7      # kernel_size
PAD = 3    # padding for kernel_size == 7


def spatial_attention_kernel(w_ref, x_ref, o_ref, pad_ref):
    # w_ref:   (2*K*K,) f32 in SMEM  -- conv weight, flattened [in_c, kh, kw]
    # x_ref:   (Nb, C, H, W) in VMEM -- Nb batch elements per grid step
    # o_ref:   (Nb, H, W) in VMEM    -- sigmoid(conv(cat(mean, max)))
    # pad_ref: (2, Nb, H+2*PAD, W+2*PAD) f32 VMEM scratch (zero-padded maps)
    Nb, C, H, W = x_ref.shape

    # Running channel mean / max: only two (Nb, H, W) f32 accumulators live,
    # no full f32 copy of the input block.
    x0 = x_ref[:, 0, :, :].astype(jnp.float32)
    s = x0
    m = x0
    for c in range(1, C):   # small static trip count; fully unrolled at trace
        xc = x_ref[:, c, :, :].astype(jnp.float32)
        s = s + xc
        m = jnp.maximum(m, xc)
    avg = s * (1.0 / C)

    # Zero-padded "concat([avg, max])" feature maps, channels-first.
    # The interior is fully rewritten every step; the border is re-zeroed per
    # step because with a "parallel" batch axis each core has its own private
    # scratch (a one-time pl.when(pid==0) init would miss the other core).
    pad_ref[...] = jnp.zeros(pad_ref.shape, jnp.float32)
    pad_ref[0, :, PAD:PAD + H, PAD:PAD + W] = avg
    pad_ref[1, :, PAD:PAD + H, PAD:PAD + W] = m

    # 2-in / 1-out 7x7 conv as VPU MACs over all Nb images at once.
    # One band load per (c, di): 14 VMEM reads total; the 7 kw-shifts are
    # in-register lane slices of the band (XLU/VALU work, no extra loads).
    acc = jnp.zeros((Nb, H, W), jnp.float32)
    for c in range(2):
        for di in range(K):
            band = pad_ref[c, :, di:di + H, :]            # (Nb, H, W+2*PAD)
            for dj in range(K):
                w = w_ref[c * K * K + di * K + dj]        # scalar from SMEM
                acc = acc + w * band[:, :, dj:dj + W]

    o_ref[...] = jax.nn.sigmoid(acc).astype(o_ref.dtype)


def _pick_batch_block(n, cap=8):
    """Largest divisor of n that is <= cap (keeps the grid exact)."""
    nb = 1
    for d in range(1, min(n, cap) + 1):
        if n % d == 0:
            nb = d
    return nb


def spatial_attention(x, w, *, batch_block=8):
    """x: (N, C, H, W); w: (1, 2, K, K) conv weight (no bias)."""
    N, C, H, W = x.shape
    Nb = _pick_batch_block(N, batch_block)
    w_flat = w.reshape(-1).astype(jnp.float32)   # index = c*K*K + kh*K + kw
    out = pl.pallas_call(
        spatial_attention_kernel,
        out_shape=jax.ShapeDtypeStruct((N, H, W), x.dtype),
        grid=(N // Nb,),
        in_specs=[
            pl.BlockSpec(memory_space=pltpu.MemorySpace.SMEM),       # weights
            pl.BlockSpec((Nb, C, H, W), lambda n: (n, 0, 0, 0)),     # x
        ],
        out_specs=pl.BlockSpec((Nb, H, W), lambda n: (n, 0, 0)),
        scratch_shapes=[
            pltpu.VMEM((2, Nb, H + 2 * PAD, W + 2 * PAD), jnp.float32)],
        compiler_params=pltpu.CompilerParams(
            dimension_semantics=("parallel",)),    # batch items independent
    )(w_flat, x)
    return out.reshape(N, 1, H, W)


def reference(x, w):
    """Pure-JAX reference matching the PyTorch module."""
    avg = jnp.mean(x, axis=1, keepdims=True)
    mx = jnp.max(x, axis=1, keepdims=True)
    xin = jnp.concatenate([avg, mx], axis=1)
    out = jax.lax.conv_general_dilated(
        xin, w, window_strides=(1, 1),
        padding=((PAD, PAD), (PAD, PAD)),
        dimension_numbers=("NCHW", "OIHW", "NCHW"))
    return jax.nn.sigmoid(out)


if __name__ == "__main__":
    key = jax.random.PRNGKey(0)
    kx, kw = jax.random.split(key)
    # N=2, C=4, H=W=16 (NCHW, like the PyTorch module)
    x = jax.random.normal(kx, (2, 4, 16, 16), dtype=jnp.float32)
    # Deterministic synthetic conv weight, shape (out=1, in=2, 7, 7), no bias.
    w = jax.random.normal(kw, (1, 2, K, K), dtype=jnp.float32) * 0.1

    out = spatial_attention(x, w)
    jax.block_until_ready(out)

    ref = reference(x, w)
    assert out.shape == (2, 1, 16, 16)
    assert jnp.allclose(out, ref, atol=1e-5, rtol=1e-5), float(
        jnp.max(jnp.abs(out - ref)))
    print("KERNEL_OK")
</pallas_src>

<mosaic_0001>
module attributes {stable_mosaic.version = 11 : i64} {
  func.func @spatial_attention_kernel(%arg0: i32, %arg1: memref<98xf32, #tpu.memory_space<smem>>, %arg2: memref<2x4x16x16xf32, #tpu.memory_space<vmem>>, %arg3: memref<2x16x16xf32, #tpu.memory_space<vmem>>, %arg4: memref<2x2x22x22xf32, #tpu.memory_space<vmem>>) attributes {dimension_semantics = [#tpu.dimension_semantics<parallel>], iteration_bounds = array<i64: 1>, scalar_prefetch = 0 : i64, scratch_operands = 1 : i64, tpu.core_type = #tpu.core_type<tc>, window_params = [{transform_indices = @transform_0, window_bounds = array<i64: 98>}, {transform_indices = @transform_1, window_bounds = array<i64: 2, 4, 16, 16>}, {transform_indices = @transform_2, window_bounds = array<i64: 2, 16, 16>}]} {
    %c0 = arith.constant 0 : index
    %c0_0 = arith.constant 0 : index
    %c0_1 = arith.constant 0 : index
    %c0_2 = arith.constant 0 : index
    %0 = vector.load %arg2[%c0, %c0_0, %c0_1, %c0_2] : memref<2x4x16x16xf32, #tpu.memory_space<vmem>>, vector<2x1x16x16xf32>
    %1 = vector.shape_cast %0 : vector<2x1x16x16xf32> to vector<2x16x16xf32>
    %c0_3 = arith.constant 0 : index
    %c1 = arith.constant 1 : index
    %c0_4 = arith.constant 0 : index
    %c0_5 = arith.constant 0 : index
    %2 = vector.load %arg2[%c0_3, %c1, %c0_4, %c0_5] : memref<2x4x16x16xf32, #tpu.memory_space<vmem>>, vector<2x1x16x16xf32>
    %3 = vector.shape_cast %2 : vector<2x1x16x16xf32> to vector<2x16x16xf32>
    %4 = arith.addf %1, %3 : vector<2x16x16xf32>
    %5 = arith.maximumf %1, %3 : vector<2x16x16xf32>
    %c0_6 = arith.constant 0 : index
    %c2 = arith.constant 2 : index
    %c0_7 = arith.constant 0 : index
    %c0_8 = arith.constant 0 : index
    %6 = vector.load %arg2[%c0_6, %c2, %c0_7, %c0_8] : memref<2x4x16x16xf32, #tpu.memory_space<vmem>>, vector<2x1x16x16xf32>
    %7 = vector.shape_cast %6 : vector<2x1x16x16xf32> to vector<2x16x16xf32>
    %8 = arith.addf %4, %7 : vector<2x16x16xf32>
    %9 = arith.maximumf %5, %7 : vector<2x16x16xf32>
    %c0_9 = arith.constant 0 : index
    %c3 = arith.constant 3 : index
    %c0_10 = arith.constant 0 : index
    %c0_11 = arith.constant 0 : index
    %10 = vector.load %arg2[%c0_9, %c3, %c0_10, %c0_11] : memref<2x4x16x16xf32, #tpu.memory_space<vmem>>, vector<2x1x16x16xf32>
    %11 = vector.shape_cast %10 : vector<2x1x16x16xf32> to vector<2x16x16xf32>
    %12 = arith.addf %8, %11 : vector<2x16x16xf32>
    %13 = arith.maximumf %9, %11 : vector<2x16x16xf32>
    %cst = arith.constant 2.500000e-01 : f32
    %14 = vector.broadcast %cst : f32 to vector<2x16x16xf32>
    %15 = arith.mulf %12, %14 : vector<2x16x16xf32>
    %cst_12 = arith.constant 0.000000e+00 : f32
    %16 = vector.broadcast %cst_12 : f32 to vector<2x2x22x22xf32>
    %c0_13 = arith.constant 0 : index
    %c0_14 = arith.constant 0 : index
    %c0_15 = arith.constant 0 : index
    %c0_16 = arith.constant 0 : index
    %17 = vector.load %arg4[%c0_13, %c0_14, %c0_15, %c0_16] : memref<2x2x22x22xf32, #tpu.memory_space<vmem>>, vector<2x2x22x22xf32>
    tpu.vector_store %arg4[%c0_13, %c0_14, %c0_15, %c0_16], %16 {strides = array<i32>} : memref<2x2x22x22xf32, #tpu.memory_space<vmem>>, vector<2x2x22x22xf32>,
    %c0_17 = arith.constant 0 : index
    %c0_18 = arith.constant 0 : index
    %c3_19 = arith.constant 3 : index
    %c3_20 = arith.constant 3 : index
    %18 = vector.load %arg4[%c0_17, %c0_18, %c3_19, %c3_20] : memref<2x2x22x22xf32, #tpu.memory_space<vmem>>, vector<1x2x16x16xf32>
    %19 = vector.shape_cast %18 : vector<1x2x16x16xf32> to vector<2x16x16xf32>
    %20 = vector.shape_cast %15 : vector<2x16x16xf32> to vector<1x2x16x16xf32>
    tpu.vector_store %arg4[%c0_17, %c0_18, %c3_19, %c3_20], %20 {strides = array<i32>} : memref<2x2x22x22xf32, #tpu.memory_space<vmem>>, vector<1x2x16x16xf32>,
    %c1_21 = arith.constant 1 : index
    %c0_22 = arith.constant 0 : index
    %c3_23 = arith.constant 3 : index
    %c3_24 = arith.constant 3 : index
    %21 = vector.load %arg4[%c1_21, %c0_22, %c3_23, %c3_24] : memref<2x2x22x22xf32, #tpu.memory_space<vmem>>, vector<1x2x16x16xf32>
    %22 = vector.shape_cast %21 : vector<1x2x16x16xf32> to vector<2x16x16xf32>
    %23 = vector.shape_cast %13 : vector<2x16x16xf32> to vector<1x2x16x16xf32>
    tpu.vector_store %arg4[%c1_21, %c0_22, %c3_23, %c3_24], %23 {strides = array<i32>} : memref<2x2x22x22xf32, #tpu.memory_space<vmem>>, vector<1x2x16x16xf32>,
    %cst_25 = arith.constant 0.000000e+00 : f32
    %24 = vector.broadcast %cst_25 : f32 to vector<2x16x16xf32>
    %c0_26 = arith.constant 0 : index
    %c0_27 = arith.constant 0 : index
    %c0_28 = arith.constant 0 : index
    %c0_29 = arith.constant 0 : index
    %25 = vector.load %arg4[%c0_26, %c0_27, %c0_28, %c0_29] : memref<2x2x22x22xf32, #tpu.memory_space<vmem>>, vector<1x2x16x22xf32>
    %26 = vector.shape_cast %25 : vector<1x2x16x22xf32> to vector<2x16x22xf32>
    %c0_30 = arith.constant 0 : index
    %27 = memref.load %arg1[%c0_30] : memref<98xf32, #tpu.memory_space<smem>>
    %28 = vector.extract_strided_slice %26 {offsets = [0, 0, 0], sizes = [2, 16, 16], strides = [1, 1, 1]} : vector<2x16x22xf32> to vector<2x16x16xf32>
    %29 = vector.broadcast %27 : f32 to vector<2x16x16xf32>
    %30 = arith.mulf %29, %28 : vector<2x16x16xf32>
    %31 = arith.addf %24, %30 : vector<2x16x16xf32>
    %c1_31 = arith.constant 1 : index
    %32 = memref.load %arg1[%c1_31] : memref<98xf32, #tpu.memory_space<smem>>
    %33 = vector.extract_strided_slice %26 {offsets = [0, 0, 1], sizes = [2, 16, 16], strides = [1, 1, 1]} : vector<2x16x22xf32> to vector<2x16x16xf32>
    %34 = vector.broadcast %32 : f32 to vector<2x16x16xf32>
    %35 = arith.mulf %34, %33 : vector<2x16x16xf32>
    %36 = arith.addf %31, %35 : vector<2x16x16xf32>
    %c2_32 = arith.constant 2 : index
    %37 = memref.load %arg1[%c2_32] : memref<98xf32, #tpu.memory_space<smem>>
    %38 = vector.extract_strided_slice %26 {offsets = [0, 0, 2], sizes = [2, 16, 16], strides = [1, 1, 1]} : vector<2x16x22xf32> to vector<2x16x16xf32>
    %39 = vector.broadcast %37 : f32 to vector<2x16x16xf32>
    %40 = arith.mulf %39, %38 : vector<2x16x16xf32>
    %41 = arith.addf %36, %40 : vector<2x16x16xf32>
    %c3_33 = arith.constant 3 : index
    %42 = memref.load %arg1[%c3_33] : memref<98xf32, #tpu.memory_space<smem>>
    %43 = vector.extract_strided_slice %26 {offsets = [0, 0, 3], sizes = [2, 16, 16], strides = [1, 1, 1]} : vector<2x16x22xf32> to vector<2x16x16xf32>
    %44 = vector.broadcast %42 : f32 to vector<2x16x16xf32>
    %45 = arith.mulf %44, %43 : vector<2x16x16xf32>
    %46 = arith.addf %41, %45 : vector<2x16x16xf32>
    %c4 = arith.constant 4 : index
    %47 = memref.load %arg1[%c4] : memref<98xf32, #tpu.memory_space<smem>>
    %48 = vector.extract_strided_slice %26 {offsets = [0, 0, 4], sizes = [2, 16, 16], strides = [1, 1, 1]} : vector<2x16x22xf32> to vector<2x16x16xf32>
    %49 = vector.broadcast %47 : f32 to vector<2x16x16xf32>
    %50 = arith.mulf %49, %48 : vector<2x16x16xf32>
    %51 = arith.addf %46, %50 : vector<2x16x16xf32>
    %c5 = arith.constant 5 : index
    %52 = memref.load %arg1[%c5] : memref<98xf32, #tpu.memory_space<smem>>
    %53 = vector.extract_strided_slice %26 {offsets = [0, 0, 5], sizes = [2, 16, 16], strides = [1, 1, 1]} : vector<2x16x22xf32> to vector<2x16x16xf32>
    %54 = vector.broadcast %52 : f32 to vector<2x16x16xf32>
    %55 = arith.mulf %54, %53 : vector<2x16x16xf32>
    %56 = arith.addf %51, %55 : vector<2x16x16xf32>
    %c6 = arith.constant 6 : index
    %57 = memref.load %arg1[%c6] : memref<98xf32, #tpu.memory_space<smem>>
    %58 = vector.extract_strided_slice %26 {offsets = [0, 0, 6], sizes = [2, 16, 16], strides = [1, 1, 1]} : vector<2x16x22xf32> to vector<2x16x16xf32>
    %59 = vector.broadcast %57 : f32 to vector<2x16x16xf32>
    %60 = arith.mulf %59, %58 : vector<2x16x16xf32>
    %61 = arith.addf %56, %60 : vector<2x16x16xf32>
    %c0_34 = arith.constant 0 : index
    %c0_35 = arith.constant 0 : index
    %c1_36 = arith.constant 1 : index
    %c0_37 = arith.constant 0 : index
    %62 = vector.load %arg4[%c0_34, %c0_35, %c1_36, %c0_37] : memref<2x2x22x22xf32, #tpu.memory_space<vmem>>, vector<1x2x16x22xf32>
    %63 = vector.shape_cast %62 : vector<1x2x16x22xf32> to vector<2x16x22xf32>
    %c7 = arith.constant 7 : index
    %64 = memref.load %arg1[%c7] : memref<98xf32, #tpu.memory_space<smem>>
    %65 = vector.extract_strided_slice %63 {offsets = [0, 0, 0], sizes = [2, 16, 16], strides = [1, 1, 1]} : vector<2x16x22xf32> to vector<2x16x16xf32>
    %66 = vector.broadcast %64 : f32 to vector<2x16x16xf32>
    %67 = arith.mulf %66, %65 : vector<2x16x16xf32>
    %68 = arith.addf %61, %67 : vector<2x16x16xf32>
    %c8 = arith.constant 8 : index
    %69 = memref.load %arg1[%c8] : memref<98xf32, #tpu.memory_space<smem>>
    %70 = vector.extract_strided_slice %63 {offsets = [0, 0, 1], sizes = [2, 16, 16], strides = [1, 1, 1]} : vector<2x16x22xf32> to vector<2x16x16xf32>
    %71 = vector.broadcast %69 : f32 to vector<2x16x16xf32>
    %72 = arith.mulf %71, %70 : vector<2x16x16xf32>
    %73 = arith.addf %68, %72 : vector<2x16x16xf32>
    %c9 = arith.constant 9 : index
    %74 = memref.load %arg1[%c9] : memref<98xf32, #tpu.memory_space<smem>>
    %75 = vector.extract_strided_slice %63 {offsets = [0, 0, 2], sizes = [2, 16, 16], strides = [1, 1, 1]} : vector<2x16x22xf32> to vector<2x16x16xf32>
    %76 = vector.broadcast %74 : f32 to vector<2x16x16xf32>
    %77 = arith.mulf %76, %75 : vector<2x16x16xf32>
    %78 = arith.addf %73, %77 : vector<2x16x16xf32>
    %c10 = arith.constant 10 : index
    %79 = memref.load %arg1[%c10] : memref<98xf32, #tpu.memory_space<smem>>
    %80 = vector.extract_strided_slice %63 {offsets = [0, 0, 3], sizes = [2, 16, 16], strides = [1, 1, 1]} : vector<2x16x22xf32> to vector<2x16x16xf32>
    %81 = vector.broadcast %79 : f32 to vector<2x16x16xf32>
    %82 = arith.mulf %81, %80 : vector<2x16x16xf32>
    %83 = arith.addf %78, %82 : vector<2x16x16xf32>
    %c11 = arith.constant 11 : index
    %84 = memref.load %arg1[%c11] : memref<98xf32, #tpu.memory_space<smem>>
    %85 = vector.extract_strided_slice %63 {offsets = [0, 0, 4], sizes = [2, 16, 16], strides = [1, 1, 1]} : vector<2x16x22xf32> to vector<2x16x16xf32>
    %86 = vector.broadcast %84 : f32 to vector<2x16x16xf32>
    %87 = arith.mulf %86, %85 : vector<2x16x16xf32>
    %88 = arith.addf %83, %87 : vector<2x16x16xf32>
    %c12 = arith.constant 12 : index
    %89 = memref.load %arg1[%c12] : memref<98xf32, #tpu.memory_space<smem>>
    %90 = vector.extract_strided_slice %63 {offsets = [0, 0, 5], sizes = [2, 16, 16], strides = [1, 1, 1]} : vector<2x16x22xf32> to vector<2x16x16xf32>
    %91 = vector.broadcast %89 : f32 to vector<2x16x16xf32>
    %92 = arith.mulf %91, %90 : vector<2x16x16xf32>
    %93 = arith.addf %88, %92 : vector<2x16x16xf32>
    %c13 = arith.constant 13 : index
    %94 = memref.load %arg1[%c13] : memref<98xf32, #tpu.memory_space<smem>>
    %95 = vector.extract_strided_slice %63 {offsets = [0, 0, 6], sizes = [2, 16, 16], strides = [1, 1, 1]} : vector<2x16x22xf32> to vector<2x16x16xf32>
    %96 = vector.broadcast %94 : f32 to vector<2x16x16xf32>
    %97 = arith.mulf %96, %95 : vector<2x16x16xf32>
    %98 = arith.addf %93, %97 : vector<2x16x16xf32>
    %c0_38 = arith.constant 0 : index
    %c0_39 = arith.constant 0 : index
    %c2_40 = arith.constant 2 : index
    %c0_41 = arith.constant 0 : index
    %99 = vector.load %arg4[%c0_38, %c0_39, %c2_40, %c0_41] : memref<2x2x22x22xf32, #tpu.memory_space<vmem>>, vector<1x2x16x22xf32>
    %100 = vector.shape_cast %99 : vector<1x2x16x22xf32> to vector<2x16x22xf32>
    %c14 = arith.constant 14 : index
    %101 = memref.load %arg1[%c14] : memref<98xf32, #tpu.memory_space<smem>>
    %102 = vector.extract_strided_slice %100 {offsets = [0, 0, 0], sizes = [2, 16, 16], strides = [1, 1, 1]} : vector<2x16x22xf32> to vector<2x16x16xf32>
    %103 = vector.broadcast %101 : f32 to vector<2x16x16xf32>
    %104 = arith.mulf %103, %102 : vector<2x16x16xf32>
    %105 = arith.addf %98, %104 : vector<2x16x16xf32>
    %c15 = arith.constant 15 : index
    %106 = memref.load %arg1[%c15] : memref<98xf32, #tpu.memory_space<smem>>
    %107 = vector.extract_strided_slice %100 {offsets = [0, 0, 1], sizes = [2, 16, 16], strides = [1, 1, 1]} : vector<2x16x22xf32> to vector<2x16x16xf32>
    %108 = vector.broadcast %106 : f32 to vector<2x16x16xf32>
    %109 = arith.mulf %108, %107 : vector<2x16x16xf32>
    %110 = arith.addf %105, %109 : vector<2x16x16xf32>
    %c16 = arith.constant 16 : index
    %111 = memref.load %arg1[%c16] : memref<98xf32, #tpu.memory_space<smem>>
    %112 = vector.extract_strided_slice %100 {offsets = [0, 0, 2], sizes = [2, 16, 16], strides = [1, 1, 1]} : vector<2x16x22xf32> to vector<2x16x16xf32>
    %113 = vector.broadcast %111 : f32 to vector<2x16x16xf32>
    %114 = arith.mulf %113, %112 : vector<2x16x16xf32>
    %115 = arith.addf %110, %114 : vector<2x16x16xf32>
    %c17 = arith.constant 17 : index
    %116 = memref.load %arg1[%c17] : memref<98xf32, #tpu.memory_space<smem>>
    %117 = vector.extract_strided_slice %100 {offsets = [0, 0, 3], sizes = [2, 16, 16], strides = [1, 1, 1]} : vector<2x16x22xf32> to vector<2x16x16xf32>
    %118 = vector.broadcast %116 : f32 to vector<2x16x16xf32>
    %119 = arith.mulf %118, %117 : vector<2x16x16xf32>
    %120 = arith.addf %115, %119 : vector<2x16x16xf32>
    %c18 = arith.constant 18 : index
    %121 = memref.load %arg1[%c18] : memref<98xf32, #tpu.memory_space<smem>>
    %122 = vector.extract_strided_slice %100 {offsets = [0, 0, 4], sizes = [2, 16, 16], strides = [1, 1, 1]} : vector<2x16x22xf32> to vector<2x16x16xf32>
    %123 = vector.broadcast %121 : f32 to vector<2x16x16xf32>
    %124 = arith.mulf %123, %122 : vector<2x16x16xf32>
    %125 = arith.addf %120, %124 : vector<2x16x16xf32>
    %c19 = arith.constant 19 : index
    %126 = memref.load %arg1[%c19] : memref<98xf32, #tpu.memory_space<smem>>
    %127 = vector.extract_strided_slice %100 {offsets = [0, 0, 5], sizes = [2, 16, 16], strides = [1, 1, 1]} : vector<2x16x22xf32> to vector<2x16x16xf32>
    %128 = vector.broadcast %126 : f32 to vector<2x16x16xf32>
    %129 = arith.mulf %128, %127 : vector<2x16x16xf32>
    %130 = arith.addf %125, %129 : vector<2x16x16xf32>
    %c20 = arith.constant 20 : index
    %131 = memref.load %arg1[%c20] : memref<98xf32, #tpu.memory_space<smem>>
    %132 = vector.extract_strided_slice %100 {offsets = [0, 0, 6], sizes = [2, 16, 16], strides = [1, 1, 1]} : vector<2x16x22xf32> to vector<2x16x16xf32>
    %133 = vector.broadcast %131 : f32 to vector<2x16x16xf32>
    %134 = arith.mulf %133, %132 : vector<2x16x16xf32>
    %135 = arith.addf %130, %134 : vector<2x16x16xf32>
    %c0_42 = arith.constant 0 : index
    %c0_43 = arith.constant 0 : index
    %c3_44 = arith.constant 3 : index
    %c0_45 = arith.constant 0 : index
    %136 = vector.load %arg4[%c0_42, %c0_43, %c3_44, %c0_45] : memref<2x2x22x22xf32, #tpu.memory_space<vmem>>, vector<1x2x16x22xf32>
    %137 = vector.shape_cast %136 : vector<1x2x16x22xf32> to vector<2x16x22xf32>
    %c21 = arith.constant 21 : index
    %138 = memref.load %arg1[%c21] : memref<98xf32, #tpu.memory_space<smem>>
    %139 = vector.extract_strided_slice %137 {offsets = [0, 0, 0], sizes = [2, 16, 16], strides = [1, 1, 1]} : vector<2x16x22xf32> to vector<2x16x16xf32>
    %140 = vector.broadcast %138 : f32 to vector<2x16x16xf32>
    %141 = arith.mulf %140, %139 : vector<2x16x16xf32>
    %142 = arith.addf %135, %141 : vector<2x16x16xf32>
    %c22 = arith.constant 22 : index
    %143 = memref.load %arg1[%c22] : memref<98xf32, #tpu.memory_space<smem>>
    %144 = vector.extract_strided_slice %137 {offsets = [0, 0, 1], sizes = [2, 16, 16], strides = [1, 1, 1]} : vector<2x16x22xf32> to vector<2x16x16xf32>
    %145 = vector.broadcast %143 : f32 to vector<2x16x16xf32>
    %146 = arith.mulf %145, %144 : vector<2x16x16xf32>
    %147 = arith.addf %142, %146 : vector<2x16x16xf32>
    %c23 = arith.constant 23 : index
    %148 = memref.load %arg1[%c23] : memref<98xf32, #tpu.memory_space<smem>>
    %149 = vector.extract_strided_slice %137 {offsets = [0, 0, 2], sizes = [2, 16, 16], strides = [1, 1, 1]} : vector<2x16x22xf32> to vector<2x16x16xf32>
    %150 = vector.broadcast %148 : f32 to vector<2x16x16xf32>
    %151 = arith.mulf %150, %149 : vector<2x16x16xf32>
    %152 = arith.addf %147, %151 : vector<2x16x16xf32>
    %c24 = arith.constant 24 : index
    %153 = memref.load %arg1[%c24] : memref<98xf32, #tpu.memory_space<smem>>
    %154 = vector.extract_strided_slice %137 {offsets = [0, 0, 3], sizes = [2, 16, 16], strides = [1, 1, 1]} : vector<2x16x22xf32> to vector<2x16x16xf32>
    %155 = vector.broadcast %153 : f32 to vector<2x16x16xf32>
    %156 = arith.mulf %155, %154 : vector<2x16x16xf32>
    %157 = arith.addf %152, %156 : vector<2x16x16xf32>
    %c25 = arith.constant 25 : index
    %158 = memref.load %arg1[%c25] : memref<98xf32, #tpu.memory_space<smem>>
    %159 = vector.extract_strided_slice %137 {offsets = [0, 0, 4], sizes = [2, 16, 16], strides = [1, 1, 1]} : vector<2x16x22xf32> to vector<2x16x16xf32>
    %160 = vector.broadcast %158 : f32 to vector<2x16x16xf32>
    %161 = arith.mulf %160, %159 : vector<2x16x16xf32>
    %162 = arith.addf %157, %161 : vector<2x16x16xf32>
    %c26 = arith.constant 26 : index
    %163 = memref.load %arg1[%c26] : memref<98xf32, #tpu.memory_space<smem>>
    %164 = vector.extract_strided_slice %137 {offsets = [0, 0, 5], sizes = [2, 16, 16], strides = [1, 1, 1]} : vector<2x16x22xf32> to vector<2x16x16xf32>
    %165 = vector.broadcast %163 : f32 to vector<2x16x16xf32>
    %166 = arith.mulf %165, %164 : vector<2x16x16xf32>
    %167 = arith.addf %162, %166 : vector<2x16x16xf32>
    %c27 = arith.constant 27 : index
    %168 = memref.load %arg1[%c27] : memref<98xf32, #tpu.memory_space<smem>>
    %169 = vector.extract_strided_slice %137 {offsets = [0, 0, 6], sizes = [2, 16, 16], strides = [1, 1, 1]} : vector<2x16x22xf32> to vector<2x16x16xf32>
    %170 = vector.broadcast %168 : f32 to vector<2x16x16xf32>
    %171 = arith.mulf %170, %169 : vector<2x16x16xf32>
    %172 = arith.addf %167, %171 : vector<2x16x16xf32>
    %c0_46 = arith.constant 0 : index
    %c0_47 = arith.constant 0 : index
    %c4_48 = arith.constant 4 : index
    %c0_49 = arith.constant 0 : index
    %173 = vector.load %arg4[%c0_46, %c0_47, %c4_48, %c0_49] : memref<2x2x22x22xf32, #tpu.memory_space<vmem>>, vector<1x2x16x22xf32>
    %174 = vector.shape_cast %173 : vector<1x2x16x22xf32> to vector<2x16x22xf32>
    %c28 = arith.constant 28 : index
    %175 = memref.load %arg1[%c28] : memref<98xf32, #tpu.memory_space<smem>>
    %176 = vector.extract_strided_slice %174 {offsets = [0, 0, 0], sizes = [2, 16, 16], strides = [1, 1, 1]} : vector<2x16x22xf32> to vector<2x16x16xf32>
    %177 = vector.broadcast %175 : f32 to vector<2x16x16xf32>
    %178 = arith.mulf %177, %176 : vector<2x16x16xf32>
    %179 = arith.addf %172, %178 : vector<2x16x16xf32>
    %c29 = arith.constant 29 : index
    %180 = memref.load %arg1[%c29] : memref<98xf32, #tpu.memory_space<smem>>
    %181 = vector.extract_strided_slice %174 {offsets = [0, 0, 1], sizes = [2, 16, 16], strides = [1, 1, 1]} : vector<2x16x22xf32> to vector<2x16x16xf32>
    %182 = vector.broadcast %180 : f32 to vector<2x16x16xf32>
    %183 = arith.mulf %182, %181 : vector<2x16x16xf32>
    %184 = arith.addf %179, %183 : vector<2x16x16xf32>
    %c30 = arith.constant 30 : index
    %185 = memref.load %arg1[%c30] : memref<98xf32, #tpu.memory_space<smem>>
    %186 = vector.extract_strided_slice %174 {offsets = [0, 0, 2], sizes = [2, 16, 16], strides = [1, 1, 1]} : vector<2x16x22xf32> to vector<2x16x16xf32>
    %187 = vector.broadcast %185 : f32 to vector<2x16x16xf32>
    %188 = arith.mulf %187, %186 : vector<2x16x16xf32>
    %189 = arith.addf %184, %188 : vector<2x16x16xf32>
    %c31 = arith.constant 31 : index
    %190 = memref.load %arg1[%c31] : memref<98xf32, #tpu.memory_space<smem>>
    %191 = vector.extract_strided_slice %174 {offsets = [0, 0, 3], sizes = [2, 16, 16], strides = [1, 1, 1]} : vector<2x16x22xf32> to vector<2x16x16xf32>
    %192 = vector.broadcast %190 : f32 to vector<2x16x16xf32>
    %193 = arith.mulf %192, %191 : vector<2x16x16xf32>
    %194 = arith.addf %189, %193 : vector<2x16x16xf32>
    %c32 = arith.constant 32 : index
    %195 = memref.load %arg1[%c32] : memref<98xf32, #tpu.memory_space<smem>>
    %196 = vector.extract_strided_slice %174 {offsets = [0, 0, 4], sizes = [2, 16, 16], strides = [1, 1, 1]} : vector<2x16x22xf32> to vector<2x16x16xf32>
    %197 = vector.broadcast %195 : f32 to vector<2x16x16xf32>
    %198 = arith.mulf %197, %196 : vector<2x16x16xf32>
    %199 = arith.addf %194, %198 : vector<2x16x16xf32>
    %c33 = arith.constant 33 : index
    %200 = memref.load %arg1[%c33] : memref<98xf32, #tpu.memory_space<smem>>
    %201 = vector.extract_strided_slice %174 {offsets = [0, 0, 5], sizes = [2, 16, 16], strides = [1, 1, 1]} : vector<2x16x22xf32> to vector<2x16x16xf32>
    %202 = vector.broadcast %200 : f32 to vector<2x16x16xf32>
    %203 = arith.mulf %202, %201 : vector<2x16x16xf32>
    %204 = arith.addf %199, %203 : vector<2x16x16xf32>
    %c34 = arith.constant 34 : index
    %205 = memref.load %arg1[%c34] : memref<98xf32, #tpu.memory_space<smem>>
    %206 = vector.extract_strided_slice %174 {offsets = [0, 0, 6], sizes = [2, 16, 16], strides = [1, 1, 1]} : vector<2x16x22xf32> to vector<2x16x16xf32>
    %207 = vector.broadcast %205 : f32 to vector<2x16x16xf32>
    %208 = arith.mulf %207, %206 : vector<2x16x16xf32>
    %209 = arith.addf %204, %208 : vector<2x16x16xf32>
    %c0_50 = arith.constant 0 : index
    %c0_51 = arith.constant 0 : index
    %c5_52 = arith.constant 5 : index
    %c0_53 = arith.constant 0 : index
    %210 = vector.load %arg4[%c0_50, %c0_51, %c5_52, %c0_53] : memref<2x2x22x22xf32, #tpu.memory_space<vmem>>, vector<1x2x16x22xf32>
    %211 = vector.shape_cast %210 : vector<1x2x16x22xf32> to vector<2x16x22xf32>
    %c35 = arith.constant 35 : index
    %212 = memref.load %arg1[%c35] : memref<98xf32, #tpu.memory_space<smem>>
    %213 = vector.extract_strided_slice %211 {offsets = [0, 0, 0], sizes = [2, 16, 16], strides = [1, 1, 1]} : vector<2x16x22xf32> to vector<2x16x16xf32>
    %214 = vector.broadcast %212 : f32 to vector<2x16x16xf32>
    %215 = arith.mulf %214, %213 : vector<2x16x16xf32>
    %216 = arith.addf %209, %215 : vector<2x16x16xf32>
    %c36 = arith.constant 36 : index
    %217 = memref.load %arg1[%c36] : memref<98xf32, #tpu.memory_space<smem>>
    %218 = vector.extract_strided_slice %211 {offsets = [0, 0, 1], sizes = [2, 16, 16], strides = [1, 1, 1]} : vector<2x16x22xf32> to vector<2x16x16xf32>
    %219 = vector.broadcast %217 : f32 to vector<2x16x16xf32>
    %220 = arith.mulf %219, %218 : vector<2x16x16xf32>
    %221 = arith.addf %216, %220 : vector<2x16x16xf32>
    %c37 = arith.constant 37 : index
    %222 = memref.load %arg1[%c37] : memref<98xf32, #tpu.memory_space<smem>>
    %223 = vector.extract_strided_slice %211 {offsets = [0, 0, 2], sizes = [2, 16, 16], strides = [1, 1, 1]} : vector<2x16x22xf32> to vector<2x16x16xf32>
    %224 = vector.broadcast %222 : f32 to vector<2x16x16xf32>
    %225 = arith.mulf %224, %223 : vector<2x16x16xf32>
    %226 = arith.addf %221, %225 : vector<2x16x16xf32>
    %c38 = arith.constant 38 : index
    %227 = memref.load %arg1[%c38] : memref<98xf32, #tpu.memory_space<smem>>
    %228 = vector.extract_strided_slice %211 {offsets = [0, 0, 3], sizes = [2, 16, 16], strides = [1, 1, 1]} : vector<2x16x22xf32> to vector<2x16x16xf32>
    %229 = vector.broadcast %227 : f32 to vector<2x16x16xf32>
    %230 = arith.mulf %229, %228 : vector<2x16x16xf32>
    %231 = arith.addf %226, %230 : vector<2x16x16xf32>
    %c39 = arith.constant 39 : index
    %232 = memref.load %arg1[%c39] : memref<98xf32, #tpu.memory_space<smem>>
    %233 = vector.extract_strided_slice %211 {offsets = [0, 0, 4], sizes = [2, 16, 16], strides = [1, 1, 1]} : vector<2x16x22xf32> to vector<2x16x16xf32>
    %234 = vector.broadcast %232 : f32 to vector<2x16x16xf32>
    %235 = arith.mulf %234, %233 : vector<2x16x16xf32>
    %236 = arith.addf %231, %235 : vector<2x16x16xf32>
    %c40 = arith.constant 40 : index
    %237 = memref.load %arg1[%c40] : memref<98xf32, #tpu.memory_space<smem>>
    %238 = vector.extract_strided_slice %211 {offsets = [0, 0, 5], sizes = [2, 16, 16], strides = [1, 1, 1]} : vector<2x16x22xf32> to vector<2x16x16xf32>
    %239 = vector.broadcast %237 : f32 to vector<2x16x16xf32>
    %240 = arith.mulf %239, %238 : vector<2x16x16xf32>
    %241 = arith.addf %236, %240 : vector<2x16x16xf32>
    %c41 = arith.constant 41 : index
    %242 = memref.load %arg1[%c41] : memref<98xf32, #tpu.memory_space<smem>>
    %243 = vector.extract_strided_slice %211 {offsets = [0, 0, 6], sizes = [2, 16, 16], strides = [1, 1, 1]} : vector<2x16x22xf32> to vector<2x16x16xf32>
    %244 = vector.broadcast %242 : f32 to vector<2x16x16xf32>
    %245 = arith.mulf %244, %243 : vector<2x16x16xf32>
    %246 = arith.addf %241, %245 : vector<2x16x16xf32>
    %c0_54 = arith.constant 0 : index
    %c0_55 = arith.constant 0 : index
    %c6_56 = arith.constant 6 : index
    %c0_57 = arith.constant 0 : index
    %247 = vector.load %arg4[%c0_54, %c0_55, %c6_56, %c0_57] : memref<2x2x22x22xf32, #tpu.memory_space<vmem>>, vector<1x2x16x22xf32>
    %248 = vector.shape_cast %247 : vector<1x2x16x22xf32> to vector<2x16x22xf32>
    %c42 = arith.constant 42 : index
    %249 = memref.load %arg1[%c42] : memref<98xf32, #tpu.memory_space<smem>>
    %250 = vector.extract_strided_slice %248 {offsets = [0, 0, 0], sizes = [2, 16, 16], strides = [1, 1, 1]} : vector<2x16x22xf32> to vector<2x16x16xf32>
    %251 = vector.broadcast %249 : f32 to vector<2x16x16xf32>
    %252 = arith.mulf %251, %250 : vector<2x16x16xf32>
    %253 = arith.addf %246, %252 : vector<2x16x16xf32>
    %c43 = arith.constant 43 : index
    %254 = memref.load %arg1[%c43] : memref<98xf32, #tpu.memory_space<smem>>
    %255 = vector.extract_strided_slice %248 {offsets = [0, 0, 1], sizes = [2, 16, 16], strides = [1, 1, 1]} : vector<2x16x22xf32> to vector<2x16x16xf32>
    %256 = vector.broadcast %254 : f32 to vector<2x16x16xf32>
    %257 = arith.mulf %256, %255 : vector<2x16x16xf32>
    %258 = arith.addf %253, %257 : vector<2x16x16xf32>
    %c44 = arith.constant 44 : index
    %259 = memref.load %arg1[%c44] : memref<98xf32, #tpu.memory_space<smem>>
    %260 = vector.extract_strided_slice %248 {offsets = [0, 0, 2], sizes = [2, 16, 16], strides = [1, 1, 1]} : vector<2x16x22xf32> to vector<2x16x16xf32>
    %261 = vector.broadcast %259 : f32 to vector<2x16x16xf32>
    %262 = arith.mulf %261, %260 : vector<2x16x16xf32>
    %263 = arith.addf %258, %262 : vector<2x16x16xf32>
    %c45 = arith.constant 45 : index
    %264 = memref.load %arg1[%c45] : memref<98xf32, #tpu.memory_space<smem>>
    %265 = vector.extract_strided_slice %248 {offsets = [0, 0, 3], sizes = [2, 16, 16], strides = [1, 1, 1]} : vector<2x16x22xf32> to vector<2x16x16xf32>
    %266 = vector.broadcast %264 : f32 to vector<2x16x16xf32>
    %267 = arith.mulf %266, %265 : vector<2x16x16xf32>
    %268 = arith.addf %263, %267 : vector<2x16x16xf32>
    %c46 = arith.constant 46 : index
    %269 = memref.load %arg1[%c46] : memref<98xf32, #tpu.memory_space<smem>>
    %270 = vector.extract_strided_slice %248 {offsets = [0, 0, 4], sizes = [2, 16, 16], strides = [1, 1, 1]} : vector<2x16x22xf32> to vector<2x16x16xf32>
    %271 = vector.broadcast %269 : f32 to vector<2x16x16xf32>
    %272 = arith.mulf %271, %270 : vector<2x16x16xf32>
    %273 = arith.addf %268, %272 : vector<2x16x16xf32>
    %c47 = arith.constant 47 : index
    %274 = memref.load %arg1[%c47] : memref<98xf32, #tpu.memory_space<smem>>
    %275 = vector.extract_strided_slice %248 {offsets = [0, 0, 5], sizes = [2, 16, 16], strides = [1, 1, 1]} : vector<2x16x22xf32> to vector<2x16x16xf32>
    %276 = vector.broadcast %274 : f32 to vector<2x16x16xf32>
    %277 = arith.mulf %276, %275 : vector<2x16x16xf32>
    %278 = arith.addf %273, %277 : vector<2x16x16xf32>
    %c48 = arith.constant 48 : index
    %279 = memref.load %arg1[%c48] : memref<98xf32, #tpu.memory_space<smem>>
    %280 = vector.extract_strided_slice %248 {offsets = [0, 0, 6], sizes = [2, 16, 16], strides = [1, 1, 1]} : vector<2x16x22xf32> to vector<2x16x16xf32>
    %281 = vector.broadcast %279 : f32 to vector<2x16x16xf32>
    %282 = arith.mulf %281, %280 : vector<2x16x16xf32>
    %283 = arith.addf %278, %282 : vector<2x16x16xf32>
    %c1_58 = arith.constant 1 : index
    %c0_59 = arith.constant 0 : index
    %c0_60 = arith.constant 0 : index
    %c0_61 = arith.constant 0 : index
    %284 = vector.load %arg4[%c1_58, %c0_59, %c0_60, %c0_61] : memref<2x2x22x22xf32, #tpu.memory_space<vmem>>, vector<1x2x16x22xf32>
    %285 = vector.shape_cast %284 : vector<1x2x16x22xf32> to vector<2x16x22xf32>
    %c49 = arith.constant 49 : index
    %286 = memref.load %arg1[%c49] : memref<98xf32, #tpu.memory_space<smem>>
    %287 = vector.extract_strided_slice %285 {offsets = [0, 0, 0], sizes = [2, 16, 16], strides = [1, 1, 1]} : vector<2x16x22xf32> to vector<2x16x16xf32>
    %288 = vector.broadcast %286 : f32 to vector<2x16x16xf32>
    %289 = arith.mulf %288, %287 : vector<2x16x16xf32>
    %290 = arith.addf %283, %289 : vector<2x16x16xf32>
    %c50 = arith.constant 50 : index
    %291 = memref.load %arg1[%c50] : memref<98xf32, #tpu.memory_space<smem>>
    %292 = vector.extract_strided_slice %285 {offsets = [0, 0, 1], sizes = [2, 16, 16], strides = [1, 1, 1]} : vector<2x16x22xf32> to vector<2x16x16xf32>
    %293 = vector.broadcast %291 : f32 to vector<2x16x16xf32>
    %294 = arith.mulf %293, %292 : vector<2x16x16xf32>
    %295 = arith.addf %290, %294 : vector<2x16x16xf32>
    %c51 = arith.constant 51 : index
    %296 = memref.load %arg1[%c51] : memref<98xf32, #tpu.memory_space<smem>>
    %297 = vector.extract_strided_slice %285 {offsets = [0, 0, 2], sizes = [2, 16, 16], strides = [1, 1, 1]} : vector<2x16x22xf32> to vector<2x16x16xf32>
    %298 = vector.broadcast %296 : f32 to vector<2x16x16xf32>
    %299 = arith.mulf %298, %297 : vector<2x16x16xf32>
    %300 = arith.addf %295, %299 : vector<2x16x16xf32>
    %c52 = arith.constant 52 : index
    %301 = memref.load %arg1[%c52] : memref<98xf32, #tpu.memory_space<smem>>
    %302 = vector.extract_strided_slice %285 {offsets = [0, 0, 3], sizes = [2, 16, 16], strides = [1, 1, 1]} : vector<2x16x22xf32> to vector<2x16x16xf32>
    %303 = vector.broadcast %301 : f32 to vector<2x16x16xf32>
    %304 = arith.mulf %303, %302 : vector<2x16x16xf32>
    %305 = arith.addf %300, %304 : vector<2x16x16xf32>
    %c53 = arith.constant 53 : index
    %306 = memref.load %arg1[%c53] : memref<98xf32, #tpu.memory_space<smem>>
    %307 = vector.extract_strided_slice %285 {offsets = [0, 0, 4], sizes = [2, 16, 16], strides = [1, 1, 1]} : vector<2x16x22xf32> to vector<2x16x16xf32>
    %308 = vector.broadcast %306 : f32 to vector<2x16x16xf32>
    %309 = arith.mulf %308, %307 : vector<2x16x16xf32>
    %310 = arith.addf %305, %309 : vector<2x16x16xf32>
    %c54 = arith.constant 54 : index
    %311 = memref.load %arg1[%c54] : memref<98xf32, #tpu.memory_space<smem>>
    %312 = vector.extract_strided_slice %285 {offsets = [0, 0, 5], sizes = [2, 16, 16], strides = [1, 1, 1]} : vector<2x16x22xf32> to vector<2x16x16xf32>
    %313 = vector.broadcast %311 : f32 to vector<2x16x16xf32>
    %314 = arith.mulf %313, %312 : vector<2x16x16xf32>
    %315 = arith.addf %310, %314 : vector<2x16x16xf32>
    %c55 = arith.constant 55 : index
    %316 = memref.load %arg1[%c55] : memref<98xf32, #tpu.memory_space<smem>>
    %317 = vector.extract_strided_slice %285 {offsets = [0, 0, 6], sizes = [2, 16, 16], strides = [1, 1, 1]} : vector<2x16x22xf32> to vector<2x16x16xf32>
    %318 = vector.broadcast %316 : f32 to vector<2x16x16xf32>
    %319 = arith.mulf %318, %317 : vector<2x16x16xf32>
    %320 = arith.addf %315, %319 : vector<2x16x16xf32>
    %c1_62 = arith.constant 1 : index
    %c0_63 = arith.constant 0 : index
    %c1_64 = arith.constant 1 : index
    %c0_65 = arith.constant 0 : index
    %321 = vector.load %arg4[%c1_62, %c0_63, %c1_64, %c0_65] : memref<2x2x22x22xf32, #tpu.memory_space<vmem>>, vector<1x2x16x22xf32>
    %322 = vector.shape_cast %321 : vector<1x2x16x22xf32> to vector<2x16x22xf32>
    %c56 = arith.constant 56 : index
    %323 = memref.load %arg1[%c56] : memref<98xf32, #tpu.memory_space<smem>>
    %324 = vector.extract_strided_slice %322 {offsets = [0, 0, 0], sizes = [2, 16, 16], strides = [1, 1, 1]} : vector<2x16x22xf32> to vector<2x16x16xf32>
    %325 = vector.broadcast %323 : f32 to vector<2x16x16xf32>
    %326 = arith.mulf %325, %324 : vector<2x16x16xf32>
    %327 = arith.addf %320, %326 : vector<2x16x16xf32>
    %c57 = arith.constant 57 : index
    %328 = memref.load %arg1[%c57] : memref<98xf32, #tpu.memory_space<smem>>
    %329 = vector.extract_strided_slice %322 {offsets = [0, 0, 1], sizes = [2, 16, 16], strides = [1, 1, 1]} : vector<2x16x22xf32> to vector<2x16x16xf32>
    %330 = vector.broadcast %328 : f32 to vector<2x16x16xf32>
    %331 = arith.mulf %330, %329 : vector<2x16x16xf32>
    %332 = arith.addf %327, %331 : vector<2x16x16xf32>
    %c58 = arith.constant 58 : index
    %333 = memref.load %arg1[%c58] : memref<98xf32, #tpu.memory_space<smem>>
    %334 = vector.extract_strided_slice %322 {offsets = [0, 0, 2], sizes = [2, 16, 16], strides = [1, 1, 1]} : vector<2x16x22xf32> to vector<2x16x16xf32>
    %335 = vector.broadcast %333 : f32 to vector<2x16x16xf32>
    %336 = arith.mulf %335, %334 : vector<2x16x16xf32>
    %337 = arith.addf %332, %336 : vector<2x16x16xf32>
    %c59 = arith.constant 59 : index
    %338 = memref.load %arg1[%c59] : memref<98xf32, #tpu.memory_space<smem>>
    %339 = vector.extract_strided_slice %322 {offsets = [0, 0, 3], sizes = [2, 16, 16], strides = [1, 1, 1]} : vector<2x16x22xf32> to vector<2x16x16xf32>
    %340 = vector.broadcast %338 : f32 to vector<2x16x16xf32>
    %341 = arith.mulf %340, %339 : vector<2x16x16xf32>
    %342 = arith.addf %337, %341 : vector<2x16x16xf32>
    %c60 = arith.constant 60 : index
    %343 = memref.load %arg1[%c60] : memref<98xf32, #tpu.memory_space<smem>>
    %344 = vector.extract_strided_slice %322 {offsets = [0, 0, 4], sizes = [2, 16, 16], strides = [1, 1, 1]} : vector<2x16x22xf32> to vector<2x16x16xf32>
    %345 = vector.broadcast %343 : f32 to vector<2x16x16xf32>
    %346 = arith.mulf %345, %344 : vector<2x16x16xf32>
    %347 = arith.addf %342, %346 : vector<2x16x16xf32>
    %c61 = arith.constant 61 : index
    %348 = memref.load %arg1[%c61] : memref<98xf32, #tpu.memory_space<smem>>
    %349 = vector.extract_strided_slice %322 {offsets = [0, 0, 5], sizes = [2, 16, 16], strides = [1, 1, 1]} : vector<2x16x22xf32> to vector<2x16x16xf32>
    %350 = vector.broadcast %348 : f32 to vector<2x16x16xf32>
    %351 = arith.mulf %350, %349 : vector<2x16x16xf32>
    %352 = arith.addf %347, %351 : vector<2x16x16xf32>
    %c62 = arith.constant 62 : index
    %353 = memref.load %arg1[%c62] : memref<98xf32, #tpu.memory_space<smem>>
    %354 = vector.extract_strided_slice %322 {offsets = [0, 0, 6], sizes = [2, 16, 16], strides = [1, 1, 1]} : vector<2x16x22xf32> to vector<2x16x16xf32>
    %355 = vector.broadcast %353 : f32 to vector<2x16x16xf32>
    %356 = arith.mulf %355, %354 : vector<2x16x16xf32>
    %357 = arith.addf %352, %356 : vector<2x16x16xf32>
    %c1_66 = arith.constant 1 : index
    %c0_67 = arith.constant 0 : index
    %c2_68 = arith.constant 2 : index
    %c0_69 = arith.constant 0 : index
    %358 = vector.load %arg4[%c1_66, %c0_67, %c2_68, %c0_69] : memref<2x2x22x22xf32, #tpu.memory_space<vmem>>, vector<1x2x16x22xf32>
    %359 = vector.shape_cast %358 : vector<1x2x16x22xf32> to vector<2x16x22xf32>
    %c63 = arith.constant 63 : index
    %360 = memref.load %arg1[%c63] : memref<98xf32, #tpu.memory_space<smem>>
    %361 = vector.extract_strided_slice %359 {offsets = [0, 0, 0], sizes = [2, 16, 16], strides = [1, 1, 1]} : vector<2x16x22xf32> to vector<2x16x16xf32>
    %362 = vector.broadcast %360 : f32 to vector<2x16x16xf32>
    %363 = arith.mulf %362, %361 : vector<2x16x16xf32>
    %364 = arith.addf %357, %363 : vector<2x16x16xf32>
    %c64 = arith.constant 64 : index
    %365 = memref.load %arg1[%c64] : memref<98xf32, #tpu.memory_space<smem>>
    %366 = vector.extract_strided_slice %359 {offsets = [0, 0, 1], sizes = [2, 16, 16], strides = [1, 1, 1]} : vector<2x16x22xf32> to vector<2x16x16xf32>
    %367 = vector.broadcast %365 : f32 to vector<2x16x16xf32>
    %368 = arith.mulf %367, %366 : vector<2x16x16xf32>
    %369 = arith.addf %364, %368 : vector<2x16x16xf32>
    %c65 = arith.constant 65 : index
    %370 = memref.load %arg1[%c65] : memref<98xf32, #tpu.memory_space<smem>>
    %371 = vector.extract_strided_slice %359 {offsets = [0, 0, 2], sizes = [2, 16, 16], strides = [1, 1, 1]} : vector<2x16x22xf32> to vector<2x16x16xf32>
    %372 = vector.broadcast %370 : f32 to vector<2x16x16xf32>
    %373 = arith.mulf %372, %371 : vector<2x16x16xf32>
    %374 = arith.addf %369, %373 : vector<2x16x16xf32>
    %c66 = arith.constant 66 : index
    %375 = memref.load %arg1[%c66] : memref<98xf32, #tpu.memory_space<smem>>
    %376 = vector.extract_strided_slice %359 {offsets = [0, 0, 3], sizes = [2, 16, 16], strides = [1, 1, 1]} : vector<2x16x22xf32> to vector<2x16x16xf32>
    %377 = vector.broadcast %375 : f32 to vector<2x16x16xf32>
    %378 = arith.mulf %377, %376 : vector<2x16x16xf32>
    %379 = arith.addf %374, %378 : vector<2x16x16xf32>
    %c67 = arith.constant 67 : index
    %380 = memref.load %arg1[%c67] : memref<98xf32, #tpu.memory_space<smem>>
    %381 = vector.extract_strided_slice %359 {offsets = [0, 0, 4], sizes = [2, 16, 16], strides = [1, 1, 1]} : vector<2x16x22xf32> to vector<2x16x16xf32>
    %382 = vector.broadcast %380 : f32 to vector<2x16x16xf32>
    %383 = arith.mulf %382, %381 : vector<2x16x16xf32>
    %384 = arith.addf %379, %383 : vector<2x16x16xf32>
    %c68 = arith.constant 68 : index
    %385 = memref.load %arg1[%c68] : memref<98xf32, #tpu.memory_space<smem>>
    %386 = vector.extract_strided_slice %359 {offsets = [0, 0, 5], sizes = [2, 16, 16], strides = [1, 1, 1]} : vector<2x16x22xf32> to vector<2x16x16xf32>
    %387 = vector.broadcast %385 : f32 to vector<2x16x16xf32>
    %388 = arith.mulf %387, %386 : vector<2x16x16xf32>
    %389 = arith.addf %384, %388 : vector<2x16x16xf32>
    %c69 = arith.constant 69 : index
    %390 = memref.load %arg1[%c69] : memref<98xf32, #tpu.memory_space<smem>>
    %391 = vector.extract_strided_slice %359 {offsets = [0, 0, 6], sizes = [2, 16, 16], strides = [1, 1, 1]} : vector<2x16x22xf32> to vector<2x16x16xf32>
    %392 = vector.broadcast %390 : f32 to vector<2x16x16xf32>
    %393 = arith.mulf %392, %391 : vector<2x16x16xf32>
    %394 = arith.addf %389, %393 : vector<2x16x16xf32>
    %c1_70 = arith.constant 1 : index
    %c0_71 = arith.constant 0 : index
    %c3_72 = arith.constant 3 : index
    %c0_73 = arith.constant 0 : index
    %395 = vector.load %arg4[%c1_70, %c0_71, %c3_72, %c0_73] : memref<2x2x22x22xf32, #tpu.memory_space<vmem>>, vector<1x2x16x22xf32>
    %396 = vector.shape_cast %395 : vector<1x2x16x22xf32> to vector<2x16x22xf32>
    %c70 = arith.constant 70 : index
    %397 = memref.load %arg1[%c70] : memref<98xf32, #tpu.memory_space<smem>>
    %398 = vector.extract_strided_slice %396 {offsets = [0, 0, 0], sizes = [2, 16, 16], strides = [1, 1, 1]} : vector<2x16x22xf32> to vector<2x16x16xf32>
    %399 = vector.broadcast %397 : f32 to vector<2x16x16xf32>
    %400 = arith.mulf %399, %398 : vector<2x16x16xf32>
    %401 = arith.addf %394, %400 : vector<2x16x16xf32>
    %c71 = arith.constant 71 : index
    %402 = memref.load %arg1[%c71] : memref<98xf32, #tpu.memory_space<smem>>
    %403 = vector.extract_strided_slice %396 {offsets = [0, 0, 1], sizes = [2, 16, 16], strides = [1, 1, 1]} : vector<2x16x22xf32> to vector<2x16x16xf32>
    %404 = vector.broadcast %402 : f32 to vector<2x16x16xf32>
    %405 = arith.mulf %404, %403 : vector<2x16x16xf32>
    %406 = arith.addf %401, %405 : vector<2x16x16xf32>
    %c72 = arith.constant 72 : index
    %407 = memref.load %arg1[%c72] : memref<98xf32, #tpu.memory_space<smem>>
    %408 = vector.extract_strided_slice %396 {offsets = [0, 0, 2], sizes = [2, 16, 16], strides = [1, 1, 1]} : vector<2x16x22xf32> to vector<2x16x16xf32>
    %409 = vector.broadcast %407 : f32 to vector<2x16x16xf32>
    %410 = arith.mulf %409, %408 : vector<2x16x16xf32>
    %411 = arith.addf %406, %410 : vector<2x16x16xf32>
    %c73 = arith.constant 73 : index
    %412 = memref.load %arg1[%c73] : memref<98xf32, #tpu.memory_space<smem>>
    %413 = vector.extract_strided_slice %396 {offsets = [0, 0, 3], sizes = [2, 16, 16], strides = [1, 1, 1]} : vector<2x16x22xf32> to vector<2x16x16xf32>
    %414 = vector.broadcast %412 : f32 to vector<2x16x16xf32>
    %415 = arith.mulf %414, %413 : vector<2x16x16xf32>
    %416 = arith.addf %411, %415 : vector<2x16x16xf32>
    %c74 = arith.constant 74 : index
    %417 = memref.load %arg1[%c74] : memref<98xf32, #tpu.memory_space<smem>>
    %418 = vector.extract_strided_slice %396 {offsets = [0, 0, 4], sizes = [2, 16, 16], strides = [1, 1, 1]} : vector<2x16x22xf32> to vector<2x16x16xf32>
    %419 = vector.broadcast %417 : f32 to vector<2x16x16xf32>
    %420 = arith.mulf %419, %418 : vector<2x16x16xf32>
    %421 = arith.addf %416, %420 : vector<2x16x16xf32>
    %c75 = arith.constant 75 : index
    %422 = memref.load %arg1[%c75] : memref<98xf32, #tpu.memory_space<smem>>
    %423 = vector.extract_strided_slice %396 {offsets = [0, 0, 5], sizes = [2, 16, 16], strides = [1, 1, 1]} : vector<2x16x22xf32> to vector<2x16x16xf32>
    %424 = vector.broadcast %422 : f32 to vector<2x16x16xf32>
    %425 = arith.mulf %424, %423 : vector<2x16x16xf32>
    %426 = arith.addf %421, %425 : vector<2x16x16xf32>
    %c76 = arith.constant 76 : index
    %427 = memref.load %arg1[%c76] : memref<98xf32, #tpu.memory_space<smem>>
    %428 = vector.extract_strided_slice %396 {offsets = [0, 0, 6], sizes = [2, 16, 16], strides = [1, 1, 1]} : vector<2x16x22xf32> to vector<2x16x16xf32>
    %429 = vector.broadcast %427 : f32 to vector<2x16x16xf32>
    %430 = arith.mulf %429, %428 : vector<2x16x16xf32>
    %431 = arith.addf %426, %430 : vector<2x16x16xf32>
    %c1_74 = arith.constant 1 : index
    %c0_75 = arith.constant 0 : index
    %c4_76 = arith.constant 4 : index
    %c0_77 = arith.constant 0 : index
    %432 = vector.load %arg4[%c1_74, %c0_75, %c4_76, %c0_77] : memref<2x2x22x22xf32, #tpu.memory_space<vmem>>, vector<1x2x16x22xf32>
    %433 = vector.shape_cast %432 : vector<1x2x16x22xf32> to vector<2x16x22xf32>
    %c77 = arith.constant 77 : index
    %434 = memref.load %arg1[%c77] : memref<98xf32, #tpu.memory_space<smem>>
    %435 = vector.extract_strided_slice %433 {offsets = [0, 0, 0], sizes = [2, 16, 16], strides = [1, 1, 1]} : vector<2x16x22xf32> to vector<2x16x16xf32>
    %436 = vector.broadcast %434 : f32 to vector<2x16x16xf32>
    %437 = arith.mulf %436, %435 : vector<2x16x16xf32>
    %438 = arith.addf %431, %437 : vector<2x16x16xf32>
    %c78 = arith.constant 78 : index
    %439 = memref.load %arg1[%c78] : memref<98xf32, #tpu.memory_space<smem>>
    %440 = vector.extract_strided_slice %433 {offsets = [0, 0, 1], sizes = [2, 16, 16], strides = [1, 1, 1]} : vector<2x16x22xf32> to vector<2x16x16xf32>
    %441 = vector.broadcast %439 : f32 to vector<2x16x16xf32>
    %442 = arith.mulf %441, %440 : vector<2x16x16xf32>
    %443 = arith.addf %438, %442 : vector<2x16x16xf32>
    %c79 = arith.constant 79 : index
    %444 = memref.load %arg1[%c79] : memref<98xf32, #tpu.memory_space<smem>>
    %445 = vector.extract_strided_slice %433 {offsets = [0, 0, 2], sizes = [2, 16, 16], strides = [1, 1, 1]} : vector<2x16x22xf32> to vector<2x16x16xf32>
    %446 = vector.broadcast %444 : f32 to vector<2x16x16xf32>
    %447 = arith.mulf %446, %445 : vector<2x16x16xf32>
    %448 = arith.addf %443, %447 : vector<2x16x16xf32>
    %c80 = arith.constant 80 : index
    %449 = memref.load %arg1[%c80] : memref<98xf32, #tpu.memory_space<smem>>
    %450 = vector.extract_strided_slice %433 {offsets = [0, 0, 3], sizes = [2, 16, 16], strides = [1, 1, 1]} : vector<2x16x22xf32> to vector<2x16x16xf32>
    %451 = vector.broadcast %449 : f32 to vector<2x16x16xf32>
    %452 = arith.mulf %451, %450 : vector<2x16x16xf32>
    %453 = arith.addf %448, %452 : vector<2x16x16xf32>
    %c81 = arith.constant 81 : index
    %454 = memref.load %arg1[%c81] : memref<98xf32, #tpu.memory_space<smem>>
    %455 = vector.extract_strided_slice %433 {offsets = [0, 0, 4], sizes = [2, 16, 16], strides = [1, 1, 1]} : vector<2x16x22xf32> to vector<2x16x16xf32>
    %456 = vector.broadcast %454 : f32 to vector<2x16x16xf32>
    %457 = arith.mulf %456, %455 : vector<2x16x16xf32>
    %458 = arith.addf %453, %457 : vector<2x16x16xf32>
    %c82 = arith.constant 82 : index
    %459 = memref.load %arg1[%c82] : memref<98xf32, #tpu.memory_space<smem>>
    %460 = vector.extract_strided_slice %433 {offsets = [0, 0, 5], sizes = [2, 16, 16], strides = [1, 1, 1]} : vector<2x16x22xf32> to vector<2x16x16xf32>
    %461 = vector.broadcast %459 : f32 to vector<2x16x16xf32>
    %462 = arith.mulf %461, %460 : vector<2x16x16xf32>
    %463 = arith.addf %458, %462 : vector<2x16x16xf32>
    %c83 = arith.constant 83 : index
    %464 = memref.load %arg1[%c83] : memref<98xf32, #tpu.memory_space<smem>>
    %465 = vector.extract_strided_slice %433 {offsets = [0, 0, 6], sizes = [2, 16, 16], strides = [1, 1, 1]} : vector<2x16x22xf32> to vector<2x16x16xf32>
    %466 = vector.broadcast %464 : f32 to vector<2x16x16xf32>
    %467 = arith.mulf %466, %465 : vector<2x16x16xf32>
    %468 = arith.addf %463, %467 : vector<2x16x16xf32>
    %c1_78 = arith.constant 1 : index
    %c0_79 = arith.constant 0 : index
    %c5_80 = arith.constant 5 : index
    %c0_81 = arith.constant 0 : index
    %469 = vector.load %arg4[%c1_78, %c0_79, %c5_80, %c0_81] : memref<2x2x22x22xf32, #tpu.memory_space<vmem>>, vector<1x2x16x22xf32>
    %470 = vector.shape_cast %469 : vector<1x2x16x22xf32> to vector<2x16x22xf32>
    %c84 = arith.constant 84 : index
    %471 = memref.load %arg1[%c84] : memref<98xf32, #tpu.memory_space<smem>>
    %472 = vector.extract_strided_slice %470 {offsets = [0, 0, 0], sizes = [2, 16, 16], strides = [1, 1, 1]} : vector<2x16x22xf32> to vector<2x16x16xf32>
    %473 = vector.broadcast %471 : f32 to vector<2x16x16xf32>
    %474 = arith.mulf %473, %472 : vector<2x16x16xf32>
    %475 = arith.addf %468, %474 : vector<2x16x16xf32>
    %c85 = arith.constant 85 : index
    %476 = memref.load %arg1[%c85] : memref<98xf32, #tpu.memory_space<smem>>
    %477 = vector.extract_strided_slice %470 {offsets = [0, 0, 1], sizes = [2, 16, 16], strides = [1, 1, 1]} : vector<2x16x22xf32> to vector<2x16x16xf32>
    %478 = vector.broadcast %476 : f32 to vector<2x16x16xf32>
    %479 = arith.mulf %478, %477 : vector<2x16x16xf32>
    %480 = arith.addf %475, %479 : vector<2x16x16xf32>
    %c86 = arith.constant 86 : index
    %481 = memref.load %arg1[%c86] : memref<98xf32, #tpu.memory_space<smem>>
    %482 = vector.extract_strided_slice %470 {offsets = [0, 0, 2], sizes = [2, 16, 16], strides = [1, 1, 1]} : vector<2x16x22xf32> to vector<2x16x16xf32>
    %483 = vector.broadcast %481 : f32 to vector<2x16x16xf32>
    %484 = arith.mulf %483, %482 : vector<2x16x16xf32>
    %485 = arith.addf %480, %484 : vector<2x16x16xf32>
    %c87 = arith.constant 87 : index
    %486 = memref.load %arg1[%c87] : memref<98xf32, #tpu.memory_space<smem>>
    %487 = vector.extract_strided_slice %470 {offsets = [0, 0, 3], sizes = [2, 16, 16], strides = [1, 1, 1]} : vector<2x16x22xf32> to vector<2x16x16xf32>
    %488 = vector.broadcast %486 : f32 to vector<2x16x16xf32>
    %489 = arith.mulf %488, %487 : vector<2x16x16xf32>
    %490 = arith.addf %485, %489 : vector<2x16x16xf32>
    %c88 = arith.constant 88 : index
    %491 = memref.load %arg1[%c88] : memref<98xf32, #tpu.memory_space<smem>>
    %492 = vector.extract_strided_slice %470 {offsets = [0, 0, 4], sizes = [2, 16, 16], strides = [1, 1, 1]} : vector<2x16x22xf32> to vector<2x16x16xf32>
    %493 = vector.broadcast %491 : f32 to vector<2x16x16xf32>
    %494 = arith.mulf %493, %492 : vector<2x16x16xf32>
    %495 = arith.addf %490, %494 : vector<2x16x16xf32>
    %c89 = arith.constant 89 : index
    %496 = memref.load %arg1[%c89] : memref<98xf32, #tpu.memory_space<smem>>
    %497 = vector.extract_strided_slice %470 {offsets = [0, 0, 5], sizes = [2, 16, 16], strides = [1, 1, 1]} : vector<2x16x22xf32> to vector<2x16x16xf32>
    %498 = vector.broadcast %496 : f32 to vector<2x16x16xf32>
    %499 = arith.mulf %498, %497 : vector<2x16x16xf32>
    %500 = arith.addf %495, %499 : vector<2x16x16xf32>
    %c90 = arith.constant 90 : index
    %501 = memref.load %arg1[%c90] : memref<98xf32, #tpu.memory_space<smem>>
    %502 = vector.extract_strided_slice %470 {offsets = [0, 0, 6], sizes = [2, 16, 16], strides = [1, 1, 1]} : vector<2x16x22xf32> to vector<2x16x16xf32>
    %503 = vector.broadcast %501 : f32 to vector<2x16x16xf32>
    %504 = arith.mulf %503, %502 : vector<2x16x16xf32>
    %505 = arith.addf %500, %504 : vector<2x16x16xf32>
    %c1_82 = arith.constant 1 : index
    %c0_83 = arith.constant 0 : index
    %c6_84 = arith.constant 6 : index
    %c0_85 = arith.constant 0 : index
    %506 = vector.load %arg4[%c1_82, %c0_83, %c6_84, %c0_85] : memref<2x2x22x22xf32, #tpu.memory_space<vmem>>, vector<1x2x16x22xf32>
    %507 = vector.shape_cast %506 : vector<1x2x16x22xf32> to vector<2x16x22xf32>
    %c91 = arith.constant 91 : index
    %508 = memref.load %arg1[%c91] : memref<98xf32, #tpu.memory_space<smem>>
    %509 = vector.extract_strided_slice %507 {offsets = [0, 0, 0], sizes = [2, 16, 16], strides = [1, 1, 1]} : vector<2x16x22xf32> to vector<2x16x16xf32>
    %510 = vector.broadcast %508 : f32 to vector<2x16x16xf32>
    %511 = arith.mulf %510, %509 : vector<2x16x16xf32>
    %512 = arith.addf %505, %511 : vector<2x16x16xf32>
    %c92 = arith.constant 92 : index
    %513 = memref.load %arg1[%c92] : memref<98xf32, #tpu.memory_space<smem>>
    %514 = vector.extract_strided_slice %507 {offsets = [0, 0, 1], sizes = [2, 16, 16], strides = [1, 1, 1]} : vector<2x16x22xf32> to vector<2x16x16xf32>
    %515 = vector.broadcast %513 : f32 to vector<2x16x16xf32>
    %516 = arith.mulf %515, %514 : vector<2x16x16xf32>
    %517 = arith.addf %512, %516 : vector<2x16x16xf32>
    %c93 = arith.constant 93 : index
    %518 = memref.load %arg1[%c93] : memref<98xf32, #tpu.memory_space<smem>>
    %519 = vector.extract_strided_slice %507 {offsets = [0, 0, 2], sizes = [2, 16, 16], strides = [1, 1, 1]} : vector<2x16x22xf32> to vector<2x16x16xf32>
    %520 = vector.broadcast %518 : f32 to vector<2x16x16xf32>
    %521 = arith.mulf %520, %519 : vector<2x16x16xf32>
    %522 = arith.addf %517, %521 : vector<2x16x16xf32>
    %c94 = arith.constant 94 : index
    %523 = memref.load %arg1[%c94] : memref<98xf32, #tpu.memory_space<smem>>
    %524 = vector.extract_strided_slice %507 {offsets = [0, 0, 3], sizes = [2, 16, 16], strides = [1, 1, 1]} : vector<2x16x22xf32> to vector<2x16x16xf32>
    %525 = vector.broadcast %523 : f32 to vector<2x16x16xf32>
    %526 = arith.mulf %525, %524 : vector<2x16x16xf32>
    %527 = arith.addf %522, %526 : vector<2x16x16xf32>
    %c95 = arith.constant 95 : index
    %528 = memref.load %arg1[%c95] : memref<98xf32, #tpu.memory_space<smem>>
    %529 = vector.extract_strided_slice %507 {offsets = [0, 0, 4], sizes = [2, 16, 16], strides = [1, 1, 1]} : vector<2x16x22xf32> to vector<2x16x16xf32>
    %530 = vector.broadcast %528 : f32 to vector<2x16x16xf32>
    %531 = arith.mulf %530, %529 : vector<2x16x16xf32>
    %532 = arith.addf %527, %531 : vector<2x16x16xf32>
    %c96 = arith.constant 96 : index
    %533 = memref.load %arg1[%c96] : memref<98xf32, #tpu.memory_space<smem>>
    %534 = vector.extract_strided_slice %507 {offsets = [0, 0, 5], sizes = [2, 16, 16], strides = [1, 1, 1]} : vector<2x16x22xf32> to vector<2x16x16xf32>
    %535 = vector.broadcast %533 : f32 to vector<2x16x16xf32>
    %536 = arith.mulf %535, %534 : vector<2x16x16xf32>
    %537 = arith.addf %532, %536 : vector<2x16x16xf32>
    %c97 = arith.constant 97 : index
    %538 = memref.load %arg1[%c97] : memref<98xf32, #tpu.memory_space<smem>>
    %539 = vector.extract_strided_slice %507 {offsets = [0, 0, 6], sizes = [2, 16, 16], strides = [1, 1, 1]} : vector<2x16x22xf32> to vector<2x16x16xf32>
    %540 = vector.broadcast %538 : f32 to vector<2x16x16xf32>
    %541 = arith.mulf %540, %539 : vector<2x16x16xf32>
    %542 = arith.addf %537, %541 : vector<2x16x16xf32>
    %543 = arith.negf %542 : vector<2x16x16xf32>
    %544 = math.exp %543 : vector<2x16x16xf32>
    %cst_86 = arith.constant 1.000000e+00 : f32
    %545 = vector.broadcast %cst_86 : f32 to vector<2x16x16xf32>
    %546 = arith.addf %545, %544 : vector<2x16x16xf32>
    %547 = arith.divf %545, %546 : vector<2x16x16xf32>
    %c0_87 = arith.constant 0 : index
    %c0_88 = arith.constant 0 : index
    %c0_89 = arith.constant 0 : index
    %548 = vector.load %arg3[%c0_87, %c0_88, %c0_89] : memref<2x16x16xf32, #tpu.memory_space<vmem>>, vector<2x16x16xf32>
    tpu.vector_store %arg3[%c0_87, %c0_88, %c0_89], %547 {strides = array<i32>} : memref<2x16x16xf32, #tpu.memory_space<vmem>>, vector<2x16x16xf32>,
    return
  }
  func.func @transform_0(%arg0: i32) -> i32 {
    %c0_i32 = arith.constant 0 : i32
    %c0_i32_0 = arith.constant 0 : i32
    return %c0_i32 : i32
  }
  func.func @transform_1(%arg0: i32) -> (i32, i32, i32, i32) {
    %c0_i32 = arith.constant 0 : i32
    %c0_i32_0 = arith.constant 0 : i32
    %c0_i32_1 = arith.constant 0 : i32
    %c0_i32_2 = arith.constant 0 : i32
    return %arg0, %c0_i32, %c0_i32_0, %c0_i32_1 : i32, i32, i32, i32
  }
  func.func @transform_2(%arg0: i32) -> (i32, i32, i32) {
    %c0_i32 = arith.constant 0 : i32
    %c0_i32_0 = arith.constant 0 : i32
    %c0_i32_1 = arith.constant 0 : i32
    return %arg0, %c0_i32, %c0_i32_0 : i32, i32, i32
  }
}

</mosaic_0001>

<bundles_post_ra>
// kernel: tpu_custom_call.1
= control target key start
LH: loop header
LB: loop body
LE: loop exit
PB: predicated region body
PF: predicated region fallthrough
CT: control target
= control target key end

     0   :  { %7 = vsyncpa [#allocation6], 0  ;;  %s4015_s0 = inlined_call_operand.hbm [shape: f32[98], index: 0, kind: input, shape index: {}]   ;;  %s4016_s1 = inlined_call_operand.hbm [shape: f32[2,4,16,16], index: 1, kind: input, shape index: {}]   ;;  %s4017_s2 = inlined_call_operand.hbm [shape: f32[2,16,16], index: 2, kind: output, shape index: {}]  }
   0x1   :  { %8 = vsyncpa [#allocation4], 0 }
   0x2   :  { %9 = vsyncpa [#allocation5], 0  ;;  %s15_s11 = sshll.u32 %s4015_s0, 4  ;;  %s23_s14 = sshll.u32 %s4016_s1, 4  ;;  %s16_s11 = int_to_ptr.hbm [resolvable:$true] %s15_s11  ;;  %s24_s14 = int_to_ptr.hbm [resolvable:$true] %s23_s14 }
   0x3   :  { %s2821_s15 = smov [#allocation3]   ;;  %s2822_s16 = smov [#allocation7]  }
   0x4   :  { %18 = dma.hbm_to_smem %s16_s11, 16, %s2821_s15, [#allocation6]  }
   0x5   :  { %s25_s17 = sshll.u32 %s2822_s16, 4  ;;  %s2823_s18 = smov 128   ;;  %s26_s17 = int_to_ptr.vmem [resolvable:$true] %s25_s17 }
   0x6   :  { %s2824_s19 = smov 8  }
   0x7   :  { %31 = dma.hbm_to_vmem [thread:$0]  %s24_s14, 2048, %s26_s17, [#allocation4], %s2823_s18, %s2823_s18, %s2824_s19  }
   0x8   :  { %2815 = dma.done.wait [#allocation6], 16  }
   0x9   :  { %2816 = vsyncadd [#allocation6], 4294967280 }
   0xa   :  { %2817 = dma.done.wait [#allocation4], 2048  }
   0xb   :  { %2818 = vsyncadd [#allocation4], 4294965248 }
   0xc   :  { %40 = sfence }
   0xd   :  { %v2858_v0 = vld [vmem:[#allocation7 + $0x40] sm:$0xff]  ;;  %v2860_v1 = vld [vmem:[#allocation7 + $0x50] sm:$0xff]  ;;  %vm88_vm0 = vcmask 179200   ;;  %v2825_v6 = vmov 0.0   ;;  %v44_v10 = vld [vmem:[#allocation7 + $0x48] sm:$0xff]  ;;  %s2826_s0 = smov 3  }
   0xe   :  { %v2862_v2 = vld [vmem:[#allocation7 + $0x60] sm:$0xff]  ;;  %v52_v3 = vadd.f32 %v2860_v1, %v2858_v0  ;;  %v46_v5 = vld [vmem:[#allocation7 + $0x10] sm:$0xff]  ;;  %93 = vst.msk [vmem:[#allocation2 + $0x18] sm:$0xff] %vm88_vm0, %v2825_v6  ;;  %v49_v14 = vld [vmem:[#allocation7 + $0x58] sm:$0xff]  ;;  %vm91_vm1 = vcmask 177152   ;;  %v56_v42 = vmax.f32 %v2858_v0, %v2860_v1  ;;  %vm118_vm2 = vcmask 154648  }
   0xf   :  { %v41_v4 = vld [vmem:[#allocation7] sm:$0xff]  ;;  %v74_v7 = vld [vmem:[#allocation7 + $0x70] sm:$0xff]  ;;  %94 = vst.msk [vmem:[#allocation2 + $0x20] sm:$0xff] %vm88_vm0, %v2825_v6  ;;  %v62_v15 = vld [vmem:[#allocation7 + $0x68] sm:$0xff]  ;;  %v53_v17 = vadd.f32 %v49_v14, %v44_v10  ;;  %v57_v36 = vmax.f32 %v44_v10, %v49_v14  ;;  %s2625_s1 = sld [smem:[#allocation3 + $0x1]]  ;;  %s2827_s21 = smov 127  }
  0x10   :  { %v50_v8 = vadd.f32 %v46_v5, %v41_v4  ;;  %v59_v9 = vld [vmem:[#allocation7 + $0x20] sm:$0xff]  ;;  %v54_v11 = vmax.f32 %v41_v4, %v46_v5  ;;  %v65_v12 = vadd.f32 %v2862_v2, %v52_v3  ;;  %v72_v13 = vld [vmem:[#allocation7 + $0x30] sm:$0xff]  ;;  %89 = vst.msk [vmem:[#allocation2] sm:$0xff] %vm88_vm0, %v2825_v6  ;;  %v42_v18 = vld [vmem:[#allocation7 + $0x8] sm:$0xff]  ;;  %v69_v43 = vmax.f32 %v56_v42, %v2862_v2  ;;  %s2626_s20 = sld [smem:[#allocation3 + $0x2]]  ;;  %s2828_s23 = smov 126  }
  0x11   :  { %v47_v19 = vld [vmem:[#allocation7 + $0x18] sm:$0xff]  ;;  %v60_v20 = vld [vmem:[#allocation7 + $0x28] sm:$0xff]  ;;  %90 = vst.msk [vmem:[#allocation2 + $0x8] sm:$0xff] %vm88_vm0, %v2825_v6  ;;  %v66_v25 = vadd.f32 %v62_v15, %v53_v17  ;;  %v70_v38 = vmax.f32 %v57_v36, %v62_v15  ;;  %s2627_s22 = sld [smem:[#allocation3 + $0x3]]  ;;  %s2829_s24 = smov 125   ;;  %vm2600_vm6 = vcmask 130048  }
  0x12   :  { %v63_v16 = vadd.f32 %v59_v9, %v50_v8  ;;  %v67_v21 = vmax.f32 %v54_v11, %v59_v9  ;;  %v78_v22 = vadd.f32 %v74_v7, %v65_v12  ;;  %v51_v23 = vadd.f32 %v47_v19, %v42_v18  ;;  %96 = vst.msk [vmem:[#allocation2 + $0x30] sm:$0xff] %vm88_vm0, %v2825_v6  ;;  %v75_v26 = vld [vmem:[#allocation7 + $0x78] sm:$0xff]  ;;  %s2628_s25 = sld [smem:[#allocation3 + $0x4]]  ;;  %s2830_s27 = smov 124  }
  0x13   :  { %97 = vst.msk [vmem:[#allocation2 + $0x38] sm:$0xff] %vm88_vm0, %v2825_v6  ;;  %v73_v30 = vld [vmem:[#allocation7 + $0x38] sm:$0xff]  ;;  %v79_v32 = vadd.f32 %v75_v26, %v66_v25  ;;  %v55_v37 = vmax.f32 %v42_v18, %v47_v19  ;;  %v83_v40 = vmax.f32 %v70_v38, %v75_v26  ;;  %v82_v44 = vmax.f32 %v69_v43, %v74_v7  ;;  %s2629_s26 = sld [smem:[#allocation3 + $0x5]]  ;;  %s2831_s29 = smov 123  }
  0x14   :  { %v76_v24 = vadd.f32 %v72_v13, %v63_v16  ;;  %v80_v27 = vmax.f32 %v67_v21, %v72_v13  ;;  %v86_v28 = vmul.f32 0.25, %v78_v22  ;;  %v64_v29 = vadd.f32 %v60_v20, %v51_v23  ;;  %99 = vst.msk [vmem:[#allocation2 + $0x48] sm:$0xff] %vm88_vm0, %v2825_v6  ;;  %s2630_s28 = sld [smem:[#allocation3 + $0x6]]  ;;  %s2832_s30 = smov 122  }
  0x15   :  { %100 = vst.msk [vmem:[#allocation2 + $0x50] sm:$0xff] %vm88_vm0, %v2825_v6  ;;  %v87_v34 = vmul.f32 0.25, %v79_v32  ;;  %v68_v39 = vmax.f32 %v55_v37, %v60_v20  ;;  %v159_v47 = vstv %s2625_s1  ;;  %s2632_s3 = sld [smem:[#allocation3 + $0x8]] }
  0x16   :  { %v84_v31 = vmul.f32 0.25, %v76_v24  ;;  %127 = vrot.lane.b32.xlu2 %v80_v27, %s2826_s0  ;;  %110 = vrot.lane.b32.xlu1 %v86_v28, %s2826_s0  ;;  %v77_v33 = vadd.f32 %v73_v30, %v64_v29  ;;  %95 = vst.msk [vmem:[#allocation2 + $0x28] sm:$0x3f] %vm91_vm1, %v2825_v6  ;;  %v185_v57 = vstv %s2626_s20  ;;  %s2633_s4 = sld [smem:[#allocation3 + $0x9]] }
  0x17   :  { %v81_v41 = vmax.f32 %v68_v39, %v73_v30  ;;  %92 = vst.msk [vmem:[#allocation2 + $0x10] sm:$0x3f] %vm91_vm1, %v2825_v6  ;;  %v211_v60 = vstv %s2627_s22  ;;  %s2634_s5 = sld [smem:[#allocation3 + $0xa]] }
  0x18   :  { %106 = vrot.lane.b32.xlu0 %v84_v31, %s2826_s0  ;;  %v85_v35 = vmul.f32 0.25, %v77_v33  ;;  %98 = vst.msk [vmem:[#allocation2 + $0x40] sm:$0x3f] %vm91_vm1, %v2825_v6  ;;  %v237_v3 = vstv %s2628_s25  ;;  %s2635_s6 = sld [smem:[#allocation3 + $0xb]] }
  0x19   :  { %101 = vst.msk [vmem:[#allocation2 + $0x58] sm:$0x3f] %vm91_vm1, %v2825_v6  ;;  %v263_v7 = vstv %s2629_s26  ;;  %s2636_s7 = sld [smem:[#allocation3 + $0xc]] }
  0x1a   :  { %v289_v12 = vstv %s2630_s28  ;;  %s2637_s8 = sld [smem:[#allocation3 + $0xd]] }
  0x1b   :  { %v329_v21 = vstv %s2632_s3  ;;  %s2639_s9 = sld [smem:[#allocation3 + $0xf]] }
  0x1c   :  { %v355_v28 = vstv %s2633_s4  ;;  %s2640_s10 = sld [smem:[#allocation3 + $0x10]] }
  0x1d   :  { %v381_v33 = vstv %s2634_s5  ;;  %s2641_s11 = sld [smem:[#allocation3 + $0x11]] }
  0x1e   :  { %112 = vrot.lane.b32.xlu1 %v87_v34, %s2826_s0  ;;  %129 = vrot.lane.b32.xlu2 %v81_v41, %s2826_s0  ;;  %v407_v42 = vstv %s2635_s6  ;;  %s148_s12 = sld [smem:[#allocation3]] }
  0x1f   :  { %s2642_s13 = sld [smem:[#allocation3 + $0x12]] }
  0x20   :  { %108 = vrot.lane.b32.xlu0 %v85_v35, %s2826_s0  ;;  %s2631_s14 = sld [smem:[#allocation3 + $0x7]] }
  0x21   :  { %s2643_s15 = sld [smem:[#allocation3 + $0x13]] }
  0x22   :  { %s2644_s16 = sld [smem:[#allocation3 + $0x14]] }
  0x23   :  { %s2646_s17 = sld [smem:[#allocation3 + $0x16]] }
  0x24   :  { %s2648_s1 = sld [smem:[#allocation3 + $0x18]] }
  0x25   :  { %s2649_s20 = sld [smem:[#allocation3 + $0x19]] }
  0x26   :  { %133 = vrot.lane.b32.xlu1 %v83_v40, %s2826_s0  ;;  %s2638_s22 = sld [smem:[#allocation3 + $0xe]] }
  0x27   :  { %s2650_s25 = sld [smem:[#allocation3 + $0x1a]] }
  0x28   :  { %131 = vrot.lane.b32.xlu0 %v82_v44, %s2826_s0  ;;  %s2647_s0 = sld [smem:[#allocation3 + $0x17]] }
  0x29   :  { %s2651_s26 = sld [smem:[#allocation3 + $0x1b]] }
  0x2a   :  { %s2653_s28 = sld [smem:[#allocation3 + $0x1d]] }
  0x2b   :  { %s2654_s3 = sld [smem:[#allocation3 + $0x1e]] }
  0x2c   :  { %s2655_s4 = sld [smem:[#allocation3 + $0x1f]] }
  0x2d   :  { %s2656_s5 = sld [smem:[#allocation3 + $0x20]] }
  0x2e   :  { %s2645_s6 = sld [smem:[#allocation3 + $0x15]] }
  0x70   :  { %v128_v11 = vpop.permute.xlu2 %127 }
  0x71   :  { %140 = vst.msk [vmem:[#allocation2 + $0x33] sm:$0xff] %vm118_vm2, %v128_v11 }
  0x78   :  { %v130_v16 = vpop.permute.xlu2 %129 }
  0x79   :  { %141 = vst.msk [vmem:[#allocation2 + $0x3b] sm:$0xff] %vm118_vm2, %v130_v16 }
  0x88   :  { %v111_v45 = vpop.permute.xlu1 %110 }
  0x89   :  { %121 = vst.msk [vmem:[#allocation2 + $0x1b] sm:$0xff] %vm118_vm2, %v111_v45 }
  0x8a   :  { %v107_v46 = vpop.permute.xlu0 %106 }
  0x8b   :  { %119 = vst.msk [vmem:[#allocation2 + $0x3] sm:$0xff] %vm118_vm2, %v107_v46 }
  0x90   :  { %v113_v48 = vpop.permute.xlu1 %112  ;;  %v2880_v49 = vld [vmem:[#allocation2 + $0x18] sm:$0xff] }
  0x91   :  { %122 = vst.msk [vmem:[#allocation2 + $0x23] sm:$0xff] %vm118_vm2, %v113_v48  ;;  %v162_v51 = vmul.f32 %v159_v47, %v2880_v49  ;;  %v188_v61 = vmul.f32 %v185_v57, %v2880_v49  ;;  %v240_v5 = vmul.f32 %v237_v3, %v2880_v49  ;;  %v214_v6 = vmul.f32 %v211_v60, %v2880_v49  ;;  %v2940_v22 = vld [vmem:[#allocation2 + $0x19] sm:$0xff] }
  0x92   :  { %v109_v50 = vpop.permute.xlu0 %108  ;;  %v2884_v52 = vld [vmem:[#allocation2] sm:$0xff]  ;;  %v266_v13 = vmul.f32 %v263_v7, %v2880_v49  ;;  %v332_v24 = vmul.f32 %v329_v21, %v2940_v22  ;;  %v292_v25 = vmul.f32 %v289_v12, %v2880_v49  ;;  %v358_v34 = vmul.f32 %v355_v28, %v2940_v22 }
  0x93   :  { %120 = vst.msk [vmem:[#allocation2 + $0xb] sm:$0xff] %vm118_vm2, %v109_v50  ;;  %v160_v53 = vmul.f32 %v159_v47, %v2884_v52  ;;  %172 = vrot.lane.b32.xlu1 %v162_v51, %s2827_s21  ;;  %v212_v62 = vmul.f32 %v211_v60, %v2884_v52  ;;  %v186_v63 = vmul.f32 %v185_v57, %v2884_v52  ;;  %v2938_v20 = vld [vmem:[#allocation2 + $0x1] sm:$0xff] }
  0x94   :  { %v238_v4 = vmul.f32 %v237_v3, %v2884_v52  ;;  %v290_v14 = vmul.f32 %v289_v12, %v2884_v52  ;;  %v264_v15 = vmul.f32 %v263_v7, %v2884_v52  ;;  %v330_v23 = vmul.f32 %v329_v21, %v2938_v20 }
  0x95   :  { %168 = vrot.lane.b32.xlu2 %v160_v53, %s2827_s21  ;;  %v382_v35 = vmul.f32 %v381_v33, %v2938_v20  ;;  %v356_v36 = vmul.f32 %v355_v28, %v2938_v20  ;;  %v408_v43 = vmul.f32 %v407_v42, %v2938_v20  ;;  %v410_v44 = vmul.f32 %v407_v42, %v2940_v22 }
  0x96   :  { %v384_v45 = vmul.f32 %v381_v33, %v2940_v22 }
  0x98   :  { %v2890_v54 = vld [vmem:[#allocation2 + $0x20] sm:$0xff]  ;;  %v134_v32 = vpop.permute.xlu1 %133 }
  0x99   :  { %v163_v55 = vmul.f32 %v159_v47, %v2890_v54  ;;  %v215_v1 = vmul.f32 %v211_v60, %v2890_v54  ;;  %v189_v2 = vmul.f32 %v185_v57, %v2890_v54  ;;  %v241_v8 = vmul.f32 %v237_v3, %v2890_v54  ;;  %v2948_v26 = vld [vmem:[#allocation2 + $0x21] sm:$0xff]  ;;  %143 = vst.msk [vmem:[#allocation2 + $0x53] sm:$0xff] %vm118_vm2, %v134_v32 }
  0x9a   :  { %v2893_v56 = vld [vmem:[#allocation2 + $0x8] sm:$0xff]  ;;  %v293_v18 = vmul.f32 %v289_v12, %v2890_v54  ;;  %v267_v19 = vmul.f32 %v263_v7, %v2890_v54  ;;  %v333_v29 = vmul.f32 %v329_v21, %v2948_v26  ;;  %v132_v37 = vpop.permute.xlu0 %131  ;;  %v385_v39 = vmul.f32 %v381_v33, %v2948_v26 }
  0x9b   :  { %v187_v58 = vmul.f32 %v185_v57, %v2893_v56  ;;  %v161_v59 = vmul.f32 %v159_v47, %v2893_v56  ;;  %v213_v0 = vmul.f32 %v211_v60, %v2893_v56  ;;  %v265_v9 = vmul.f32 %v263_v7, %v2893_v56  ;;  %v2950_v27 = vld [vmem:[#allocation2 + $0x9] sm:$0xff]  ;;  %142 = vst.msk [vmem:[#allocation2 + $0x4b] sm:$0xff] %vm118_vm2, %v132_v37 }
  0x9c   :  { %v239_v10 = vmul.f32 %v237_v3, %v2893_v56  ;;  %v291_v17 = vmul.f32 %v289_v12, %v2893_v56  ;;  %v357_v30 = vmul.f32 %v355_v28, %v2950_v27  ;;  %v331_v31 = vmul.f32 %v329_v21, %v2950_v27 }
  0x9d   :  { %174 = vrot.lane.b32.xlu2 %v163_v55, %s2827_s21  ;;  %196 = vrot.lane.b32.xlu1 %v187_v58, %s2828_s23  ;;  %v383_v38 = vmul.f32 %v381_v33, %v2950_v27  ;;  %v359_v40 = vmul.f32 %v355_v28, %v2948_v26  ;;  %v433_v47 = vstv %s2636_s7  ;;  %v411_v48 = vmul.f32 %v407_v42, %v2948_v26  ;;  %s2657_s7 = sld [smem:[#allocation3 + $0x21]] }
  0x9e   :  { %170 = vrot.lane.b32.xlu0 %v161_v59, %s2827_s21  ;;  %v435_v50 = vmul.f32 %v433_v47, %v2950_v27  ;;  %v409_v51 = vmul.f32 %v407_v42, %v2950_v27  ;;  %v459_v55 = vstv %s2637_s8  ;;  %v436_v57 = vmul.f32 %v433_v47, %v2940_v22  ;;  %s2658_s8 = sld [smem:[#allocation3 + $0x22]] }
  0x9f   :  { %v460_v58 = vmul.f32 %v459_v55, %v2938_v20  ;;  %v434_v59 = vmul.f32 %v433_v47, %v2938_v20 }
  0xa5   :  { %198 = vrot.lane.b32.xlu2 %v188_v61, %s2828_s23  ;;  %220 = vrot.lane.b32.xlu1 %v212_v62, %s2829_s24  ;;  %v461_v62 = vmul.f32 %v459_v55, %v2950_v27 }
  0xa6   :  { %194 = vrot.lane.b32.xlu0 %v186_v63, %s2828_s23  ;;  %v463_v63 = vmul.f32 %v459_v55, %v2948_v26 }
  0xad   :  { %222 = vrot.lane.b32.xlu2 %v213_v0, %s2829_s24  ;;  %226 = vrot.lane.b32.xlu1 %v215_v1, %s2829_s24  ;;  %v437_v0 = vmul.f32 %v433_v47, %v2948_v26 }
  0xae   :  { %200 = vrot.lane.b32.xlu0 %v189_v2, %s2828_s23 }
  0xb5   :  { %246 = vrot.lane.b32.xlu2 %v238_v4, %s2830_s27  ;;  %250 = vrot.lane.b32.xlu1 %v240_v5, %s2830_s27  ;;  %v3008_v4 = vld [vmem:[#allocation2 + $0x2] sm:$0xff]  ;;  %v499_v5 = vstv %s2639_s9  ;;  %s2660_s9 = sld [smem:[#allocation3 + $0x24]] }
  0xb6   :  { %224 = vrot.lane.b32.xlu0 %v214_v6, %s2829_s24  ;;  %v3010_v6 = vld [vmem:[#allocation2 + $0x1a] sm:$0xff]  ;;  %v500_v7 = vmul.f32 %v499_v5, %v3008_v4 }
  0xbd   :  { %252 = vrot.lane.b32.xlu2 %v241_v8, %s2830_s27  ;;  %274 = vrot.lane.b32.xlu1 %v265_v9, %s2831_s29  ;;  %v502_v8 = vmul.f32 %v499_v5, %v3010_v6  ;;  %v462_v9 = vmul.f32 %v459_v55, %v2940_v22 }
  0xbe   :  { %248 = vrot.lane.b32.xlu0 %v239_v10, %s2830_s27 }
  0xc5   :  { %276 = vrot.lane.b32.xlu2 %v266_v13, %s2831_s29  ;;  %298 = vrot.lane.b32.xlu1 %v290_v14, %s2832_s30  ;;  %v3020_v13 = vld [vmem:[#allocation2 + $0x22] sm:$0xff]  ;;  %v3022_v14 = vld [vmem:[#allocation2 + $0xa] sm:$0xff] }
  0xc6   :  { %272 = vrot.lane.b32.xlu0 %v264_v15, %s2831_s29  ;;  %v525_v15 = vstv %s2640_s10  ;;  %v503_v16 = vmul.f32 %v499_v5, %v3020_v13  ;;  %s2661_s10 = sld [smem:[#allocation3 + $0x25]] }
  0xcd   :  { %300 = vrot.lane.b32.xlu2 %v291_v17, %s2832_s30  ;;  %304 = vrot.lane.b32.xlu1 %v293_v18, %s2832_s30  ;;  %v527_v17 = vmul.f32 %v525_v15, %v3022_v14  ;;  %v501_v18 = vmul.f32 %v499_v5, %v3022_v14 }
  0xce   :  { %278 = vrot.lane.b32.xlu0 %v267_v19, %s2831_s29 }
  0xd5   :  { %338 = vrot.lane.b32.xlu2 %v330_v23, %s2827_s21  ;;  %342 = vrot.lane.b32.xlu1 %v332_v24, %s2827_s21  ;;  %v551_v24 = vstv %s2641_s11  ;;  %s2662_s11 = sld [smem:[#allocation3 + $0x26]] }
  0xd6   :  { %302 = vrot.lane.b32.xlu0 %v292_v25, %s2832_s30  ;;  %v528_v25 = vmul.f32 %v525_v15, %v3010_v6  ;;  %v552_v28 = vmul.f32 %v551_v24, %v3008_v4 }
  0xdd   :  { %344 = vrot.lane.b32.xlu2 %v333_v29, %s2827_s21  ;;  %366 = vrot.lane.b32.xlu1 %v357_v30, %s2828_s23  ;;  %v149_v29 = vstv %s148_s12  ;;  %v526_v30 = vmul.f32 %v525_v15, %v3008_v4  ;;  %s2663_s12 = sld [smem:[#allocation3 + $0x27]] }
  0xde   :  { %340 = vrot.lane.b32.xlu0 %v331_v31, %s2827_s21  ;;  %v151_v31 = vmul.f32 %v149_v29, %v2893_v56  ;;  %v529_v56 = vmul.f32 %v525_v15, %v3020_v13 }
  0xe5   :  { %368 = vrot.lane.b32.xlu2 %v358_v34, %s2828_s23  ;;  %390 = vrot.lane.b32.xlu1 %v382_v35, %s2829_s24 }
  0xe6   :  { %364 = vrot.lane.b32.xlu0 %v356_v36, %s2828_s23  ;;  %v150_v36 = vmul.f32 %v149_v29, %v2884_v52 }
  0xed   :  { %392 = vrot.lane.b32.xlu2 %v383_v38, %s2829_s24  ;;  %396 = vrot.lane.b32.xlu1 %v385_v39, %s2829_s24  ;;  %v553_v38 = vmul.f32 %v551_v24, %v3022_v14  ;;  %v555_v39 = vmul.f32 %v551_v24, %v3020_v13 }
  0xee   :  { %370 = vrot.lane.b32.xlu0 %v359_v40, %s2828_s23 }
  0xef   :  { %v2972_v41 = vpop.permute.xlu2 %168 }
  0xf0   :  { %v180_v40 = vadd.f32 %v2972_v41, %v150_v36  ;;  %v153_v41 = vmul.f32 %v149_v29, %v2890_v54  ;;  %v152_v54 = vmul.f32 %v149_v29, %v2880_v49 }
  0xf5   :  { %416 = vrot.lane.b32.xlu2 %v408_v43, %s2830_s27  ;;  %420 = vrot.lane.b32.xlu1 %v410_v44, %s2830_s27 }
  0xf6   :  { %394 = vrot.lane.b32.xlu0 %v384_v45, %s2829_s24  ;;  %v577_v45 = vstv %s2642_s13  ;;  %s2652_s13 = sld [smem:[#allocation3 + $0x1c]] }
  0xf7   :  { %v2980_v46 = vpop.permute.xlu2 %174 }
  0xfd   :  { %422 = vrot.lane.b32.xlu2 %v411_v48, %s2830_s27  ;;  %444 = vrot.lane.b32.xlu1 %v435_v50, %s2831_s29  ;;  %v578_v50 = vmul.f32 %v577_v45, %v3008_v4 }
  0xfe   :  { %418 = vrot.lane.b32.xlu0 %v409_v51, %s2830_s27 }
  0xff   :  { %v2988_v53 = vpop.permute.xlu2 %198 }
 0x105   :  { %446 = vrot.lane.b32.xlu2 %v436_v57, %s2831_s29  ;;  %468 = vrot.lane.b32.xlu1 %v460_v58, %s2832_s30  ;;  %v2996_v60 = vpop.permute.xlu1 %172  ;;  %v580_v57 = vmul.f32 %v577_v45, %v3010_v6  ;;  %v554_v58 = vmul.f32 %v551_v24, %v3010_v6 }
 0x106   :  { %442 = vrot.lane.b32.xlu0 %v434_v59, %s2831_s29  ;;  %v319_v59 = vstv %s2631_s14  ;;  %s2664_s14 = sld [smem:[#allocation3 + $0x28]] }
 0x107   :  { %v2998_v61 = vpop.permute.xlu2 %222 }
 0x10d   :  { %470 = vrot.lane.b32.xlu2 %v461_v62, %s2832_s30  ;;  %474 = vrot.lane.b32.xlu1 %v463_v63, %s2832_s30  ;;  %v183_v62 = vadd.f32 %v2980_v46, %v153_v41  ;;  %v321_v63 = vmul.f32 %v319_v59, %v2950_v27  ;;  %v603_v27 = vstv %s2643_s15  ;;  %s2665_s15 = sld [smem:[#allocation3 + $0x29]] }
 0x10e   :  { %448 = vrot.lane.b32.xlu0 %v437_v0, %s2831_s29  ;;  %v605_v49 = vmul.f32 %v603_v27, %v3022_v14  ;;  %v606_v29 = vmul.f32 %v603_v27, %v3010_v6 }
 0x10f   :  { %v3006_v1 = vpop.permute.xlu2 %246  ;;  %v197_v2 = vpop.permute.xlu1 %196 }
 0x110   :  { %v171_v3 = vpop.permute.xlu0 %170 }
 0x111   :  { %v181_v32 = vadd.f32 %v171_v3, %v151_v31 }
 0x113   :  { %v207_v37 = vadd.f32 %v197_v2, %v181_v32  ;;  %v323_v32 = vmul.f32 %v319_v59, %v2948_v26  ;;  %v322_v26 = vmul.f32 %v319_v59, %v2940_v22  ;;  %v3107_v22 = vld [vmem:[#allocation2 + $0x3] sm:$0xff] }
 0x115   :  { %508 = vrot.lane.b32.xlu2 %v500_v7, %s2827_s21  ;;  %512 = vrot.lane.b32.xlu1 %v502_v8, %s2827_s21  ;;  %v233_v44 = vadd.f32 %v2998_v61, %v207_v37  ;;  %v182_v8 = vadd.f32 %v2996_v60, %v152_v54 }
 0x116   :  { %472 = vrot.lane.b32.xlu0 %v462_v9, %s2832_s30 }
 0x117   :  { %v3018_v10 = vpop.permute.xlu2 %252  ;;  %v221_v11 = vpop.permute.xlu1 %220 }
 0x118   :  { %v195_v12 = vpop.permute.xlu0 %194 }
 0x119   :  { %v206_v42 = vadd.f32 %v195_v12, %v180_v40 }
 0x11b   :  { %v232_v51 = vadd.f32 %v221_v11, %v206_v42  ;;  %v581_v11 = vmul.f32 %v577_v45, %v3020_v13  ;;  %v607_v42 = vmul.f32 %v603_v27, %v3020_v13 }
 0x11d   :  { %514 = vrot.lane.b32.xlu2 %v503_v16, %s2827_s21  ;;  %536 = vrot.lane.b32.xlu1 %v527_v17, %s2828_s23  ;;  %v258_v5 = vadd.f32 %v3006_v1, %v232_v51  ;;  %v320_v16 = vmul.f32 %v319_v59, %v2938_v20  ;;  %v579_v17 = vmul.f32 %v577_v45, %v3022_v14  ;;  %v629_v20 = vstv %s2644_s16  ;;  %v3121_v59 = vld [vmem:[#allocation2 + $0xb] sm:$0xff]  ;;  %s2667_s16 = sld [smem:[#allocation3 + $0x2b]] }
 0x11e   :  { %510 = vrot.lane.b32.xlu0 %v501_v18, %s2827_s21  ;;  %v208_v1 = vadd.f32 %v2988_v53, %v182_v8  ;;  %v630_v31 = vmul.f32 %v629_v20, %v3008_v4  ;;  %v633_v40 = vmul.f32 %v629_v20, %v3020_v13  ;;  %v669_v45 = vstv %s2646_s17  ;;  %s2668_s17 = sld [smem:[#allocation3 + $0x2c]] }
 0x11f   :  { %v3030_v19 = vpop.permute.xlu2 %276  ;;  %v227_v21 = vpop.permute.xlu1 %226  ;;  %v632_v41 = vmul.f32 %v629_v20, %v3010_v6  ;;  %v671_v54 = vmul.f32 %v669_v45, %v3121_v59 }
 0x120   :  { %v201_v23 = vpop.permute.xlu0 %200 }
 0x121   :  { %v209_v0 = vadd.f32 %v201_v23, %v183_v62  ;;  %v695_v62 = vstv %s2647_s0  ;;  %s2669_s0 = sld [smem:[#allocation3 + $0x2d]] }
 0x123   :  { %v235_v12 = vadd.f32 %v227_v21, %v209_v0 }
 0x125   :  { %538 = vrot.lane.b32.xlu2 %v528_v25, %s2828_s23  ;;  %560 = vrot.lane.b32.xlu1 %v552_v28, %s2829_s24  ;;  %v261_v24 = vadd.f32 %v3018_v10, %v235_v12 }
 0x126   :  { %534 = vrot.lane.b32.xlu0 %v526_v30, %s2828_s23 }
 0x127   :  { %v301_v33 = vpop.permute.xlu2 %300  ;;  %v3039_v34 = vpop.permute.xlu1 %250 }
 0x128   :  { %v225_v35 = vpop.permute.xlu0 %224 }
 0x129   :  { %v234_v60 = vadd.f32 %v225_v35, %v208_v1 }
 0x12b   :  { %v260_v53 = vadd.f32 %v3039_v34, %v234_v60 }
 0x12d   :  { %562 = vrot.lane.b32.xlu2 %v553_v38, %s2829_s24  ;;  %566 = vrot.lane.b32.xlu1 %v555_v39, %s2829_s24  ;;  %v286_v34 = vadd.f32 %v3030_v19, %v260_v53 }
 0x12e   :  { %540 = vrot.lane.b32.xlu0 %v529_v56, %s2828_s23  ;;  %v631_v56 = vmul.f32 %v629_v20, %v3022_v14 }
 0x12f   :  { %v3049_v43 = vpop.permute.xlu2 %338  ;;  %v275_v52 = vpop.permute.xlu1 %274 }
 0x130   :  { %v249_v47 = vpop.permute.xlu0 %248 }
 0x131   :  { %v259_v48 = vadd.f32 %v249_v47, %v233_v44  ;;  %v3109_v47 = vld [vmem:[#allocation2 + $0x1b] sm:$0xff] }
 0x132   :  { %v698_v8 = vmul.f32 %v695_v62, %v3109_v47 }
 0x133   :  { %v285_v55 = vadd.f32 %v275_v52, %v259_v48  ;;  %v670_v48 = vmul.f32 %v669_v45, %v3107_v22 }
 0x135   :  { %586 = vrot.lane.b32.xlu2 %v578_v50, %s2830_s27  ;;  %590 = vrot.lane.b32.xlu1 %v580_v57, %s2830_s27  ;;  %v311_v61 = vadd.f32 %v301_v33, %v285_v55  ;;  %v604_v33 = vmul.f32 %v603_v27, %v3008_v4  ;;  %v672_v50 = vmul.f32 %v669_v45, %v3109_v47 }
 0x136   :  { %564 = vrot.lane.b32.xlu0 %v554_v58, %s2829_s24  ;;  %v3119_v58 = vld [vmem:[#allocation2 + $0x23] sm:$0xff] }
 0x137   :  { %v3062_v2 = vpop.permute.xlu2 %344  ;;  %v299_v3 = vpop.permute.xlu1 %298  ;;  %v3065_v7 = vadd.f32 %v321_v63, %v311_v61  ;;  %v673_v61 = vmul.f32 %v669_v45, %v3119_v58  ;;  %v697_v63 = vmul.f32 %v695_v62, %v3121_v59  ;;  %v699_v60 = vmul.f32 %v695_v62, %v3119_v58 }
 0x138   :  { %v273_v46 = vpop.permute.xlu0 %272  ;;  %v773_v45 = vstv %s2650_s25  ;;  %s2672_s25 = sld [smem:[#allocation3 + $0x30]] }
 0x139   :  { %v284_v9 = vadd.f32 %v273_v46, %v258_v5  ;;  %v721_v46 = vstv %s2648_s1  ;;  %s2670_s1 = sld [smem:[#allocation3 + $0x2e]] }
 0x13a   :  { %v725_v1 = vmul.f32 %v721_v46, %v3119_v58 }
 0x13b   :  { %v310_v15 = vadd.f32 %v299_v3, %v284_v9  ;;  %v722_v9 = vmul.f32 %v721_v46, %v3107_v22 }
 0x13d   :  { %592 = vrot.lane.b32.xlu2 %v581_v11, %s2830_s27  ;;  %614 = vrot.lane.b32.xlu1 %v605_v49, %s2831_s29  ;;  %v3075_v18 = vadd.f32 %v320_v16, %v310_v15  ;;  %v696_v11 = vmul.f32 %v695_v62, %v3107_v22 }
 0x13e   :  { %588 = vrot.lane.b32.xlu0 %v579_v17, %s2830_s27  ;;  %v723_v17 = vmul.f32 %v721_v46, %v3121_v59 }
 0x13f   :  { %v3078_v23 = vpop.permute.xlu2 %368  ;;  %v305_v21 = vpop.permute.xlu1 %304 }
 0x140   :  { %v279_v25 = vpop.permute.xlu0 %278 }
 0x141   :  { %v287_v28 = vadd.f32 %v279_v25, %v261_v24 }
 0x143   :  { %v313_v30 = vadd.f32 %v305_v21, %v287_v28  ;;  %v350_v21 = vadd.f32 %v3049_v43, %v3075_v18 }
 0x145   :  { %616 = vrot.lane.b32.xlu2 %v606_v29, %s2831_s29  ;;  %638 = vrot.lane.b32.xlu1 %v630_v31, %s2832_s30  ;;  %v3088_v35 = vadd.f32 %v323_v32, %v313_v30  ;;  %v747_v29 = vstv %s2649_s20  ;;  %v724_v32 = vmul.f32 %v721_v46, %v3109_v47  ;;  %s2659_s20 = sld [smem:[#allocation3 + $0x23]] }
 0x146   :  { %612 = vrot.lane.b32.xlu0 %v604_v33, %s2831_s29  ;;  %v748_v43 = vmul.f32 %v747_v29, %v3107_v22  ;;  %v750_v18 = vmul.f32 %v747_v29, %v3109_v47  ;;  %v489_v33 = vstv %s2638_s22  ;;  %s2671_s22 = sld [smem:[#allocation3 + $0x2f]] }
 0x147   :  { %v3091_v10 = vpop.permute.xlu2 %392  ;;  %v3093_v36 = vpop.permute.xlu1 %342 }
 0x148   :  { %v303_v37 = vpop.permute.xlu0 %302 }
 0x149   :  { %v312_v38 = vadd.f32 %v303_v37, %v286_v34  ;;  %v353_v34 = vadd.f32 %v3062_v2, %v3088_v35  ;;  %v491_v37 = vmul.f32 %v489_v33, %v3022_v14 }
 0x14b   :  { %v3097_v39 = vadd.f32 %v322_v26, %v312_v38 }
 0x14d   :  { %640 = vrot.lane.b32.xlu2 %v631_v56, %s2832_s30  ;;  %644 = vrot.lane.b32.xlu1 %v633_v40, %s2832_s30  ;;  %v352_v2 = vadd.f32 %v3093_v36, %v3097_v39 }
 0x14e   :  { %618 = vrot.lane.b32.xlu0 %v607_v42, %s2831_s29 }
 0x14f   :  { %v3105_v19 = vpop.permute.xlu2 %416  ;;  %v367_v52 = vpop.permute.xlu1 %366 }
 0x150   :  { %v341_v44 = vpop.permute.xlu0 %340 }
 0x151   :  { %v351_v27 = vadd.f32 %v341_v44, %v3065_v7  ;;  %v751_v44 = vmul.f32 %v747_v29, %v3119_v58 }
 0x153   :  { %v377_v16 = vadd.f32 %v367_v52, %v351_v27 }
 0x155   :  { %678 = vrot.lane.b32.xlu2 %v670_v48, %s2827_s21  ;;  %682 = vrot.lane.b32.xlu1 %v672_v50, %s2827_s21  ;;  %v403_v20 = vadd.f32 %v3091_v10, %v377_v16  ;;  %v775_v50 = vmul.f32 %v773_v45, %v3121_v59 }
 0x156   :  { %642 = vrot.lane.b32.xlu0 %v632_v41, %s2832_s30  ;;  %v490_v41 = vmul.f32 %v489_v33, %v3008_v4  ;;  %v799_v4 = vstv %s2651_s26  ;;  %s2674_s26 = sld [smem:[#allocation3 + $0x32]] }
 0x157   :  { %v3117_v51 = vpop.permute.xlu2 %422  ;;  %v391_v55 = vpop.permute.xlu1 %390  ;;  %v800_v46 = vmul.f32 %v799_v4, %v3107_v22 }
 0x158   :  { %v365_v57 = vpop.permute.xlu0 %364 }
 0x159   :  { %v376_v7 = vadd.f32 %v365_v57, %v350_v21 }
 0x15b   :  { %v402_v30 = vadd.f32 %v391_v55, %v376_v7  ;;  %v749_v55 = vmul.f32 %v747_v29, %v3121_v59 }
 0x15d   :  { %684 = vrot.lane.b32.xlu2 %v673_v61, %s2827_s21  ;;  %706 = vrot.lane.b32.xlu1 %v697_v63, %s2828_s23  ;;  %v428_v40 = vadd.f32 %v3105_v19, %v402_v30  ;;  %v378_v19 = vadd.f32 %v3078_v23, %v352_v2 }
 0x15e   :  { %680 = vrot.lane.b32.xlu0 %v671_v54, %s2827_s21 }
 0x15f   :  { %v3129_v0 = vpop.permute.xlu2 %446  ;;  %v397_v3 = vpop.permute.xlu1 %396 }
 0x160   :  { %v371_v5 = vpop.permute.xlu0 %370 }
 0x161   :  { %v379_v26 = vadd.f32 %v371_v5, %v353_v34 }
 0x163   :  { %v405_v14 = vadd.f32 %v397_v3, %v379_v26  ;;  %v776_v3 = vmul.f32 %v773_v45, %v3109_v47 }
 0x165   :  { %708 = vrot.lane.b32.xlu2 %v698_v8, %s2828_s23  ;;  %730 = vrot.lane.b32.xlu1 %v722_v9, %s2829_s24  ;;  %v431_v61 = vadd.f32 %v3117_v51, %v405_v14  ;;  %v493_v8 = vmul.f32 %v489_v33, %v3020_v13  ;;  %v774_v9 = vmul.f32 %v773_v45, %v3107_v22 }
 0x166   :  { %704 = vrot.lane.b32.xlu0 %v696_v11, %s2828_s23  ;;  %v492_v13 = vmul.f32 %v489_v33, %v3010_v6  ;;  %v3203_v6 = vld [vmem:[#allocation2 + $0x4] sm:$0xff]  ;;  %v865_v33 = vstv %s2654_s3  ;;  %s2676_s3 = sld [smem:[#allocation3 + $0x34]] }
 0x167   :  { %v471_v12 = vpop.permute.xlu2 %470  ;;  %v421_v15 = vpop.permute.xlu1 %420 }
 0x168   :  { %v395_v49 = vpop.permute.xlu0 %394 }
 0x169   :  { %v404_v36 = vadd.f32 %v395_v49, %v378_v19 }
 0x16b   :  { %v430_v23 = vadd.f32 %v421_v15, %v404_v36 }
 0x16d   :  { %732 = vrot.lane.b32.xlu2 %v723_v17, %s2829_s24  ;;  %736 = vrot.lane.b32.xlu1 %v725_v1, %s2829_s24  ;;  %v801_v17 = vmul.f32 %v799_v4, %v3121_v59  ;;  %v803_v1 = vmul.f32 %v799_v4, %v3119_v58 }
 0x16e   :  { %710 = vrot.lane.b32.xlu0 %v699_v60, %s2828_s23  ;;  %v777_v60 = vmul.f32 %v773_v45, %v3119_v58 }
 0x16f   :  { %v3146_v24 = vpop.permute.xlu2 %508  ;;  %v445_v25 = vpop.permute.xlu1 %444 }
 0x170   :  { %v419_v28 = vpop.permute.xlu0 %418 }
 0x171   :  { %v429_v53 = vadd.f32 %v419_v28, %v403_v20  ;;  %v3205_v20 = vld [vmem:[#allocation2 + $0x1c] sm:$0xff] }
 0x172   :  { %v868_v2 = vmul.f32 %v865_v33, %v3205_v20 }
 0x173   :  { %v455_v31 = vadd.f32 %v445_v25, %v429_v53  ;;  %v839_v25 = vstv %s2653_s28  ;;  %v802_v53 = vmul.f32 %v799_v4, %v3109_v47  ;;  %s2675_s28 = sld [smem:[#allocation3 + $0x33]] }
 0x174   :  { %v840_v28 = vmul.f32 %v839_v25, %v3203_v6  ;;  %v842_v29 = vmul.f32 %v839_v25, %v3205_v20 }
 0x175   :  { %756 = vrot.lane.b32.xlu2 %v748_v43, %s2830_s27  ;;  %760 = vrot.lane.b32.xlu1 %v750_v18, %s2830_s27  ;;  %v481_v10 = vadd.f32 %v471_v12, %v455_v31  ;;  %v456_v12 = vadd.f32 %v3129_v0, %v430_v23  ;;  %v3215_v18 = vld [vmem:[#allocation2 + $0x24] sm:$0xff] }
 0x176   :  { %734 = vrot.lane.b32.xlu0 %v724_v32, %s2829_s24  ;;  %v3217_v32 = vld [vmem:[#allocation2 + $0xc] sm:$0xff]  ;;  %v843_v34 = vmul.f32 %v839_v25, %v3215_v18  ;;  %v869_v36 = vmul.f32 %v865_v33, %v3215_v18 }
 0x177   :  { %v3158_v38 = vpop.permute.xlu2 %514  ;;  %v469_v56 = vpop.permute.xlu1 %468  ;;  %v3161_v42 = vadd.f32 %v491_v37, %v481_v10  ;;  %v867_v10 = vmul.f32 %v865_v33, %v3217_v32  ;;  %v841_v37 = vmul.f32 %v839_v25, %v3217_v32 }
 0x178   :  { %v443_v52 = vpop.permute.xlu0 %442 }
 0x179   :  { %v454_v35 = vadd.f32 %v443_v52, %v428_v40  ;;  %v891_v52 = vstv %s2655_s4  ;;  %s2677_s4 = sld [smem:[#allocation3 + $0x35]] }
 0x17a   :  { %v895_v19 = vmul.f32 %v891_v52, %v3215_v18 }
 0x17b   :  { %v480_v48 = vadd.f32 %v469_v56, %v454_v35  ;;  %v892_v35 = vmul.f32 %v891_v52, %v3203_v6 }
 0x17d   :  { %762 = vrot.lane.b32.xlu2 %v751_v44, %s2830_s27  ;;  %784 = vrot.lane.b32.xlu1 %v775_v50, %s2831_s29  ;;  %v3172_v57 = vadd.f32 %v490_v41, %v480_v48  ;;  %v866_v44 = vmul.f32 %v865_v33, %v3203_v6 }
 0x17e   :  { %758 = vrot.lane.b32.xlu0 %v749_v55, %s2830_s27  ;;  %v893_v55 = vmul.f32 %v891_v52, %v3217_v32 }
 0x17f   :  { %v3175_v39 = vpop.permute.xlu2 %538  ;;  %v475_v62 = vpop.permute.xlu1 %474 }
 0x180   :  { %v449_v63 = vpop.permute.xlu0 %448 }
 0x181   :  { %v457_v54 = vadd.f32 %v449_v63, %v431_v61 }
 0x183   :  { %v483_v5 = vadd.f32 %v475_v62, %v457_v54  ;;  %v520_v62 = vadd.f32 %v3146_v24, %v3172_v57 }
 0x185   :  { %786 = vrot.lane.b32.xlu2 %v776_v3, %s2831_s29  ;;  %808 = vrot.lane.b32.xlu1 %v800_v46, %s2832_s30  ;;  %v3184_v11 = vadd.f32 %v493_v8, %v483_v5  ;;  %v917_v3 = vstv %s2656_s5  ;;  %v894_v8 = vmul.f32 %v891_v52, %v3205_v20  ;;  %s2666_s5 = sld [smem:[#allocation3 + $0x2a]] }
 0x186   :  { %782 = vrot.lane.b32.xlu0 %v774_v9, %s2831_s29  ;;  %v918_v24 = vmul.f32 %v917_v3, %v3203_v6  ;;  %v920_v57 = vmul.f32 %v917_v3, %v3205_v20  ;;  %v659_v9 = vstv %s2645_s6  ;;  %v921_v25 = vmul.f32 %v917_v3, %v3215_v18  ;;  %s2678_s6 = sld [smem:[#allocation3 + $0x36]] }
 0x187   :  { %v3187_v51 = vpop.permute.xlu2 %562  ;;  %v3189_v27 = vpop.permute.xlu1 %512 }
 0x188   :  { %v473_v15 = vpop.permute.xlu0 %472 }
 0x189   :  { %v482_v49 = vadd.f32 %v473_v15, %v456_v12  ;;  %v523_v12 = vadd.f32 %v3158_v38, %v3184_v11  ;;  %v661_v15 = vmul.f32 %v659_v9, %v3121_v59 }
 0x18b   :  { %v3193_v16 = vadd.f32 %v492_v13, %v482_v49 }
 0x18d   :  { %810 = vrot.lane.b32.xlu2 %v801_v17, %s2832_s30  ;;  %814 = vrot.lane.b32.xlu1 %v803_v1, %s2832_s30  ;;  %v522_v38 = vadd.f32 %v3189_v27, %v3193_v16 }
 0x18e   :  { %788 = vrot.lane.b32.xlu0 %v777_v60, %s2831_s29 }
 0x18f   :  { %v3201_v0 = vpop.permute.xlu2 %586  ;;  %v537_v21 = vpop.permute.xlu1 %536 }
 0x190   :  { %v511_v7 = vpop.permute.xlu0 %510 }
 0x191   :  { %v521_v45 = vadd.f32 %v511_v7, %v3161_v42  ;;  %v943_v7 = vstv %s2657_s7  ;;  %s2679_s7 = sld [smem:[#allocation3 + $0x37]] }
 0x193   :  { %v547_v41 = vadd.f32 %v537_v21, %v521_v45 }
 0x195   :  { %848 = vrot.lane.b32.xlu2 %v840_v28, %s2827_s21  ;;  %852 = vrot.lane.b32.xlu1 %v842_v29, %s2827_s21  ;;  %v573_v4 = vadd.f32 %v3187_v51, %v547_v41  ;;  %v945_v29 = vmul.f32 %v943_v7, %v3217_v32 }
 0x196   :  { %812 = vrot.lane.b32.xlu0 %v802_v53, %s2832_s30  ;;  %v660_v53 = vmul.f32 %v659_v9, %v3107_v22  ;;  %v969_v22 = vstv %s2658_s8  ;;  %s2681_s8 = sld [smem:[#allocation3 + $0x39]] }
 0x197   :  { %v3213_v30 = vpop.permute.xlu2 %592  ;;  %v561_v31 = vpop.permute.xlu1 %560  ;;  %v970_v52 = vmul.f32 %v969_v22, %v3203_v6 }
 0x198   :  { %v535_v43 = vpop.permute.xlu0 %534 }
 0x199   :  { %v546_v42 = vadd.f32 %v535_v43, %v520_v62 }
 0x19b   :  { %v572_v5 = vadd.f32 %v561_v31, %v546_v42  ;;  %v919_v31 = vmul.f32 %v917_v3, %v3217_v32 }
 0x19d   :  { %854 = vrot.lane.b32.xlu2 %v843_v34, %s2827_s21  ;;  %876 = vrot.lane.b32.xlu1 %v867_v10, %s2828_s23  ;;  %v598_v1 = vadd.f32 %v3201_v0, %v572_v5  ;;  %v548_v0 = vadd.f32 %v3175_v39, %v522_v38 }
 0x19e   :  { %850 = vrot.lane.b32.xlu0 %v841_v37, %s2827_s21 }
 0x19f   :  { %v3225_v26 = vpop.permute.xlu2 %616  ;;  %v567_v56 = vpop.permute.xlu1 %566 }
 0x1a0   :  { %v541_v40 = vpop.permute.xlu0 %540 }
 0x1a1   :  { %v549_v13 = vadd.f32 %v541_v40, %v523_v12 }
 0x1a3   :  { %v575_v59 = vadd.f32 %v567_v56, %v549_v13  ;;  %v946_v56 = vmul.f32 %v943_v7, %v3205_v20 }
 0x1a5   :  { %878 = vrot.lane.b32.xlu2 %v868_v2, %s2828_s23  ;;  %900 = vrot.lane.b32.xlu1 %v892_v35, %s2829_s24  ;;  %v601_v34 = vadd.f32 %v3213_v30, %v575_v59  ;;  %v663_v2 = vmul.f32 %v659_v9, %v3119_v58  ;;  %v944_v35 = vmul.f32 %v943_v7, %v3203_v6 }
 0x1a6   :  { %874 = vrot.lane.b32.xlu0 %v866_v44, %s2828_s23  ;;  %v662_v58 = vmul.f32 %v659_v9, %v3109_v47  ;;  %v3299_v47 = vld [vmem:[#allocation2 + $0x5] sm:$0xff]  ;;  %v1035_v9 = vstv %s2661_s10  ;;  %s2683_s10 = sld [smem:[#allocation3 + $0x3b]] }
 0x1a7   :  { %v641_v14 = vpop.permute.xlu2 %640  ;;  %v591_v48 = vpop.permute.xlu1 %590 }
 0x1a8   :  { %v565_v50 = vpop.permute.xlu0 %564 }
 0x1a9   :  { %v574_v27 = vadd.f32 %v565_v50, %v548_v0 }
 0x1ab   :  { %v600_v39 = vadd.f32 %v591_v48, %v574_v27 }
 0x1ad   :  { %902 = vrot.lane.b32.xlu2 %v893_v55, %s2829_s24  ;;  %906 = vrot.lane.b32.xlu1 %v895_v19, %s2829_s24  ;;  %v971_v55 = vmul.f32 %v969_v22, %v3217_v32  ;;  %v973_v19 = vmul.f32 %v969_v22, %v3215_v18 }
 0x1ae   :  { %880 = vrot.lane.b32.xlu0 %v869_v36, %s2828_s23  ;;  %v947_v36 = vmul.f32 %v943_v7, %v3215_v18 }
 0x1af   :  { %v3242_v61 = vpop.permute.xlu2 %678  ;;  %v615_v63 = vpop.permute.xlu1 %614 }
 0x1b0   :  { %v589_v54 = vpop.permute.xlu0 %588 }
 0x1b1   :  { %v599_v23 = vadd.f32 %v589_v54, %v573_v4  ;;  %v3301_v4 = vld [vmem:[#allocation2 + $0x1d] sm:$0xff] }
 0x1b2   :  { %v1038_v7 = vmul.f32 %v1035_v9, %v3301_v4 }
 0x1b3   :  { %v625_v46 = vadd.f32 %v615_v63, %v599_v23  ;;  %v1009_v63 = vstv %s2660_s9  ;;  %v972_v23 = vmul.f32 %v969_v22, %v3205_v20  ;;  %s2682_s9 = sld [smem:[#allocation3 + $0x3a]] }
 0x1b4   :  { %v1010_v54 = vmul.f32 %v1009_v63, %v3299_v47  ;;  %v1012_v3 = vmul.f32 %v1009_v63, %v3301_v4 }
 0x1b5   :  { %926 = vrot.lane.b32.xlu2 %v918_v24, %s2830_s27  ;;  %930 = vrot.lane.b32.xlu1 %v920_v57, %s2830_s27  ;;  %v651_v51 = vadd.f32 %v641_v14, %v625_v46  ;;  %v626_v14 = vadd.f32 %v3225_v26, %v600_v39  ;;  %v3311_v57 = vld [vmem:[#allocation2 + $0x25] sm:$0xff] }
 0x1b6   :  { %904 = vrot.lane.b32.xlu0 %v894_v8, %s2829_s24  ;;  %v3313_v8 = vld [vmem:[#allocation2 + $0xd] sm:$0xff]  ;;  %v1013_v12 = vmul.f32 %v1009_v63, %v3311_v57  ;;  %v1039_v27 = vmul.f32 %v1035_v9, %v3311_v57 }
 0x1b7   :  { %v3254_v49 = vpop.permute.xlu2 %684  ;;  %v639_v17 = vpop.permute.xlu1 %638  ;;  %v3257_v60 = vadd.f32 %v661_v15, %v651_v51  ;;  %v1037_v51 = vmul.f32 %v1035_v9, %v3313_v8  ;;  %v1011_v15 = vmul.f32 %v1009_v63, %v3313_v8 }
 0x1b8   :  { %v613_v21 = vpop.permute.xlu0 %612 }
 0x1b9   :  { %v624_v11 = vadd.f32 %v613_v21, %v598_v1  ;;  %v1061_v21 = vstv %s2662_s11  ;;  %s2684_s11 = sld [smem:[#allocation3 + $0x3c]] }
 0x1ba   :  { %v1062_v38 = vmul.f32 %v1061_v21, %v3299_v47  ;;  %v1065_v0 = vmul.f32 %v1061_v21, %v3311_v57 }
 0x1bb   :  { %v650_v28 = vadd.f32 %v639_v17, %v624_v11  ;;  %v1036_v11 = vmul.f32 %v1035_v9, %v3299_v47 }
 0x1bd   :  { %932 = vrot.lane.b32.xlu2 %v921_v25, %s2830_s27  ;;  %954 = vrot.lane.b32.xlu1 %v945_v29, %s2831_s29  ;;  %v3268_v43 = vadd.f32 %v660_v53, %v650_v28 }
 0x1be   :  { %928 = vrot.lane.b32.xlu0 %v919_v31, %s2830_s27  ;;  %v1063_v31 = vmul.f32 %v1061_v21, %v3313_v8 }
 0x1bf   :  { %v3271_v16 = vpop.permute.xlu2 %708  ;;  %v645_v33 = vpop.permute.xlu1 %644 }
 0x1c0   :  { %v619_v10 = vpop.permute.xlu0 %618 }
 0x1c1   :  { %v627_v37 = vadd.f32 %v619_v10, %v601_v34 }
 0x1c3   :  { %v653_v40 = vadd.f32 %v645_v33, %v627_v37  ;;  %v690_v33 = vadd.f32 %v3242_v61, %v3268_v43 }
 0x1c5   :  { %956 = vrot.lane.b32.xlu2 %v946_v56, %s2831_s29  ;;  %978 = vrot.lane.b32.xlu1 %v970_v52, %s2832_s30  ;;  %v3280_v44 = vadd.f32 %v663_v2, %v653_v40  ;;  %v1087_v56 = vstv %s2663_s12  ;;  %v829_v40 = vstv %s2652_s13  ;;  %s2673_s12 = sld [smem:[#allocation3 + $0x31]] }
 0x1c6   :  { %952 = vrot.lane.b32.xlu0 %v944_v35, %s2831_s29  ;;  %v1088_v61 = vmul.f32 %v1087_v56, %v3299_v47  ;;  %v1090_v43 = vmul.f32 %v1087_v56, %v3301_v4  ;;  %v1064_v35 = vmul.f32 %v1061_v21, %v3301_v4  ;;  %v1091_v63 = vmul.f32 %v1087_v56, %v3311_v57  ;;  %s2685_s13 = sld [smem:[#allocation3 + $0x3d]] }
 0x1c7   :  { %v3283_v30 = vpop.permute.xlu2 %732  ;;  %v3285_v45 = vpop.permute.xlu1 %682 }
 0x1c8   :  { %v643_v48 = vpop.permute.xlu0 %642 }
 0x1c9   :  { %v652_v50 = vadd.f32 %v643_v48, %v626_v14  ;;  %v693_v14 = vadd.f32 %v3254_v49, %v3280_v44  ;;  %v831_v48 = vmul.f32 %v829_v40, %v3217_v32 }
 0x1cb   :  { %v3289_v41 = vadd.f32 %v662_v58, %v652_v50 }
 0x1cd   :  { %980 = vrot.lane.b32.xlu2 %v971_v55, %s2832_s30  ;;  %984 = vrot.lane.b32.xlu1 %v973_v19, %s2832_s30  ;;  %v692_v49 = vadd.f32 %v3285_v45, %v3289_v41 }
 0x1ce   :  { %958 = vrot.lane.b32.xlu0 %v947_v36, %s2831_s29 }
 0x1cf   :  { %v3297_v26 = vpop.permute.xlu2 %756  ;;  %v707_v62 = vpop.permute.xlu1 %706 }
 0x1d0   :  { %v681_v42 = vpop.permute.xlu0 %680 }
 0x1d1   :  { %v691_v25 = vadd.f32 %v681_v42, %v3257_v60  ;;  %v1113_v42 = vstv %s2664_s14  ;;  %s2686_s14 = sld [smem:[#allocation3 + $0x3e]] }
 0x1d3   :  { %v717_v53 = vadd.f32 %v707_v62, %v691_v25 }
 0x1d5   :  { %1018 = vrot.lane.b32.xlu2 %v1010_v54, %s2827_s21  ;;  %1022 = vrot.lane.b32.xlu1 %v1012_v3, %s2827_s21  ;;  %v743_v22 = vadd.f32 %v3283_v30, %v717_v53  ;;  %v1115_v3 = vmul.f32 %v1113_v42, %v3313_v8 }
 0x1d6   :  { %982 = vrot.lane.b32.xlu0 %v972_v23, %s2832_s30  ;;  %v830_v23 = vmul.f32 %v829_v40, %v3203_v6  ;;  %v1139_v6 = vstv %s2665_s15  ;;  %s2688_s15 = sld [smem:[#allocation3 + $0x40]] }
 0x1d7   :  { %v3309_v5 = vpop.permute.xlu2 %762  ;;  %v731_v46 = vpop.permute.xlu1 %730  ;;  %v1140_v21 = vmul.f32 %v1139_v6, %v3299_v47 }
 0x1d8   :  { %v705_v24 = vpop.permute.xlu0 %704 }
 0x1d9   :  { %v716_v60 = vadd.f32 %v705_v24, %v690_v33 }
 0x1db   :  { %v742_v52 = vadd.f32 %v731_v46, %v716_v60  ;;  %v1089_v46 = vmul.f32 %v1087_v56, %v3313_v8 }
 0x1dd   :  { %1024 = vrot.lane.b32.xlu2 %v1013_v12, %s2827_s21  ;;  %1046 = vrot.lane.b32.xlu1 %v1037_v51, %s2828_s23  ;;  %v768_v19 = vadd.f32 %v3297_v26, %v742_v52  ;;  %v718_v26 = vadd.f32 %v3271_v16, %v692_v49 }
 0x1de   :  { %1020 = vrot.lane.b32.xlu0 %v1011_v15, %s2827_s21 }
 0x1df   :  { %v3321_v13 = vpop.permute.xlu2 %786  ;;  %v737_v17 = vpop.permute.xlu1 %736 }
 0x1e0   :  { %v711_v1 = vpop.permute.xlu0 %710 }
 0x1e1   :  { %v719_v58 = vadd.f32 %v711_v1, %v693_v14 }
 0x1e3   :  { %v745_v32 = vadd.f32 %v737_v17, %v719_v58  ;;  %v1116_v17 = vmul.f32 %v1113_v42, %v3301_v4 }
 0x1e5   :  { %1048 = vrot.lane.b32.xlu2 %v1038_v7, %s2828_s23  ;;  %1070 = vrot.lane.b32.xlu1 %v1062_v38, %s2829_s24  ;;  %v771_v12 = vadd.f32 %v3309_v5, %v745_v32  ;;  %v833_v7 = vmul.f32 %v829_v40, %v3215_v18  ;;  %v1114_v38 = vmul.f32 %v1113_v42, %v3299_v47 }
 0x1e6   :  { %1044 = vrot.lane.b32.xlu0 %v1036_v11, %s2828_s23  ;;  %v832_v18 = vmul.f32 %v829_v40, %v3205_v20  ;;  %v3395_v20 = vld [vmem:[#allocation2 + $0x6] sm:$0xff] }
 0x1e7   :  { %v811_v59 = vpop.permute.xlu2 %810  ;;  %v761_v28 = vpop.permute.xlu1 %760 }
 0x1e8   :  { %v735_v29 = vpop.permute.xlu0 %734 }
 0x1e9   :  { %v744_v45 = vadd.f32 %v735_v29, %v718_v26 }
 0x1eb   :  { %v770_v16 = vadd.f32 %v761_v28, %v744_v45 }
 0x1ed   :  { %1072 = vrot.lane.b32.xlu2 %v1063_v31, %s2829_s24  ;;  %1076 = vrot.lane.b32.xlu1 %v1065_v0, %s2829_s24  ;;  %v1141_v31 = vmul.f32 %v1139_v6, %v3313_v8  ;;  %v1143_v0 = vmul.f32 %v1139_v6, %v3311_v57 }
 0x1ee   :  { %1050 = vrot.lane.b32.xlu0 %v1039_v27, %s2828_s23  ;;  %v1117_v27 = vmul.f32 %v1113_v42, %v3311_v57 }
 0x1ef   :  { %v3338_v34 = vpop.permute.xlu2 %848  ;;  %v785_v10 = vpop.permute.xlu1 %784 }
 0x1f0   :  { %v759_v37 = vpop.permute.xlu0 %758 }
 0x1f1   :  { %v769_v39 = vadd.f32 %v759_v37, %v743_v22  ;;  %v3397_v22 = vld [vmem:[#allocation2 + $0x1e] sm:$0xff] }
 0x1f3   :  { %v795_v2 = vadd.f32 %v785_v10, %v769_v39  ;;  %v1179_v10 = vstv %s2667_s16  ;;  %v1142_v39 = vmul.f32 %v1139_v6, %v3301_v4  ;;  %s2689_s16 = sld [smem:[#allocation3 + $0x41]] }
 0x1f4   :  { %v1180_v37 = vmul.f32 %v1179_v10, %v3395_v20  ;;  %v1182_v56 = vmul.f32 %v1179_v10, %v3397_v22 }
 0x1f5   :  { %1096 = vrot.lane.b32.xlu2 %v1088_v61, %s2830_s27  ;;  %1100 = vrot.lane.b32.xlu1 %v1090_v43, %s2830_s27  ;;  %v821_v30 = vadd.f32 %v811_v59, %v795_v2  ;;  %v796_v59 = vadd.f32 %v3321_v13, %v770_v16  ;;  %v3407_v61 = vld [vmem:[#allocation2 + $0x26] sm:$0xff]  ;;  %v3409_v43 = vld [vmem:[#allocation2 + $0xe] sm:$0xff] }
 0x1f6   :  { %1074 = vrot.lane.b32.xlu0 %v1064_v35, %s2829_s24  ;;  %v1205_v35 = vstv %s2668_s17  ;;  %v1183_v14 = vmul.f32 %v1179_v10, %v3407_v61  ;;  %s2690_s17 = sld [smem:[#allocation3 + $0x42]] }
 0x1f7   :  { %v3350_v50 = vpop.permute.xlu2 %854  ;;  %v809_v55 = vpop.permute.xlu1 %808  ;;  %v3353_v36 = vadd.f32 %v831_v48, %v821_v30  ;;  %v1207_v30 = vmul.f32 %v1205_v35, %v3409_v43  ;;  %v1181_v48 = vmul.f32 %v1179_v10, %v3409_v43  ;;  %v1208_v42 = vmul.f32 %v1205_v35, %v3397_v22 }
 0x1f8   :  { %v783_v62 = vpop.permute.xlu0 %782  ;;  %v1209_v45 = vmul.f32 %v1205_v35, %v3407_v61 }
 0x1f9   :  { %v794_v44 = vadd.f32 %v783_v62, %v768_v19  ;;  %v1231_v62 = vstv %s2669_s0  ;;  %s2691_s0 = sld [smem:[#allocation3 + $0x43]] }
 0x1fa   :  { %v1232_v49 = vmul.f32 %v1231_v62, %v3395_v20  ;;  %v1235_v26 = vmul.f32 %v1231_v62, %v3407_v61 }
 0x1fb   :  { %v820_v54 = vadd.f32 %v809_v55, %v794_v44  ;;  %v1206_v44 = vmul.f32 %v1205_v35, %v3395_v20 }
 0x1fd   :  { %1102 = vrot.lane.b32.xlu2 %v1091_v63, %s2830_s27  ;;  %1124 = vrot.lane.b32.xlu1 %v1115_v3, %s2831_s29  ;;  %v3364_v24 = vadd.f32 %v830_v23, %v820_v54 }
 0x1fe   :  { %1098 = vrot.lane.b32.xlu0 %v1089_v46, %s2830_s27  ;;  %v1233_v46 = vmul.f32 %v1231_v62, %v3409_v43 }
 0x1ff   :  { %v3367_v41 = vpop.permute.xlu2 %878  ;;  %v815_v9 = vpop.permute.xlu1 %814 }
 0x200   :  { %v789_v51 = vpop.permute.xlu0 %788 }
 0x201   :  { %v797_v15 = vadd.f32 %v789_v51, %v771_v12 }
 0x203   :  { %v823_v1 = vadd.f32 %v815_v9, %v797_v15  ;;  %v860_v9 = vadd.f32 %v3338_v34, %v3364_v24 }
 0x205   :  { %1126 = vrot.lane.b32.xlu2 %v1116_v17, %s2831_s29  ;;  %1148 = vrot.lane.b32.xlu1 %v1140_v21, %s2832_s30  ;;  %v3376_v11 = vadd.f32 %v833_v7, %v823_v1  ;;  %v1257_v17 = vstv %s2670_s1  ;;  %v999_v1 = vstv %s2659_s20  ;;  %s2680_s1 = sld [smem:[#allocation3 + $0x38]] }
 0x206   :  { %1122 = vrot.lane.b32.xlu0 %v1114_v38, %s2831_s29  ;;  %v1258_v34 = vmul.f32 %v1257_v17, %v3395_v20  ;;  %v1260_v24 = vmul.f32 %v1257_v17, %v3397_v22  ;;  %v1234_v38 = vmul.f32 %v1231_v62, %v3397_v22  ;;  %v1261_v10 = vmul.f32 %v1257_v17, %v3407_v61  ;;  %s2692_s20 = sld [smem:[#allocation3 + $0x44]] }
 0x207   :  { %v3379_v5 = vpop.permute.xlu2 %902  ;;  %v3381_v25 = vpop.permute.xlu1 %852 }
 0x208   :  { %v813_v28 = vpop.permute.xlu0 %812 }
 0x209   :  { %v822_v29 = vadd.f32 %v813_v28, %v796_v59  ;;  %v863_v59 = vadd.f32 %v3350_v50, %v3376_v11  ;;  %v1001_v28 = vmul.f32 %v999_v1, %v3313_v8 }
 0x20b   :  { %v3385_v53 = vadd.f32 %v832_v18, %v822_v29 }
 0x20d   :  { %1150 = vrot.lane.b32.xlu2 %v1141_v31, %s2832_s30  ;;  %1154 = vrot.lane.b32.xlu1 %v1143_v0, %s2832_s30  ;;  %v862_v50 = vadd.f32 %v3381_v25, %v3385_v53 }
 0x20e   :  { %1128 = vrot.lane.b32.xlu0 %v1117_v27, %s2831_s29 }
 0x20f   :  { %v3393_v13 = vpop.permute.xlu2 %926  ;;  %v877_v33 = vpop.permute.xlu1 %876 }
 0x210   :  { %v851_v60 = vpop.permute.xlu0 %850 }
 0x211   :  { %v861_v63 = vadd.f32 %v851_v60, %v3353_v36  ;;  %v1283_v60 = vstv %s2671_s22  ;;  %s2693_s22 = sld [smem:[#allocation3 + $0x45]] }
 0x213   :  { %v887_v23 = vadd.f32 %v877_v33, %v861_v63 }
 0x215   :  { %1188 = vrot.lane.b32.xlu2 %v1180_v37, %s2827_s21  ;;  %1192 = vrot.lane.b32.xlu1 %v1182_v56, %s2827_s21  ;;  %v913_v6 = vadd.f32 %v3379_v5, %v887_v23  ;;  %v1285_v56 = vmul.f32 %v1283_v60, %v3409_v43 }
 0x216   :  { %1152 = vrot.lane.b32.xlu0 %v1142_v39, %s2832_s30  ;;  %v1000_v39 = vmul.f32 %v999_v1, %v3299_v47  ;;  %v1309_v47 = vstv %s2672_s25  ;;  %s2695_s25 = sld [smem:[#allocation3 + $0x47]] }
 0x217   :  { %v3405_v40 = vpop.permute.xlu2 %932  ;;  %v901_v52 = vpop.permute.xlu1 %900  ;;  %v1310_v62 = vmul.f32 %v1309_v47, %v3395_v20 }
 0x218   :  { %v875_v2 = vpop.permute.xlu0 %874 }
 0x219   :  { %v886_v36 = vadd.f32 %v875_v2, %v860_v9 }
 0x21b   :  { %v912_v21 = vadd.f32 %v901_v52, %v886_v36  ;;  %v1259_v52 = vmul.f32 %v1257_v17, %v3409_v43 }
 0x21d   :  { %1194 = vrot.lane.b32.xlu2 %v1183_v14, %s2827_s21  ;;  %1216 = vrot.lane.b32.xlu1 %v1207_v30, %s2828_s23  ;;  %v938_v0 = vadd.f32 %v3393_v13, %v912_v21  ;;  %v888_v13 = vadd.f32 %v3367_v41, %v862_v50 }
 0x21e   :  { %1190 = vrot.lane.b32.xlu0 %v1181_v48, %s2827_s21 }
 0x21f   :  { %v3417_v58 = vpop.permute.xlu2 %956  ;;  %v907_v55 = vpop.permute.xlu1 %906 }
 0x220   :  { %v881_v19 = vpop.permute.xlu0 %880 }
 0x221   :  { %v889_v18 = vadd.f32 %v881_v19, %v863_v59 }
 0x223   :  { %v915_v8 = vadd.f32 %v907_v55, %v889_v18  ;;  %v1286_v55 = vmul.f32 %v1283_v60, %v3397_v22 }
 0x225   :  { %1218 = vrot.lane.b32.xlu2 %v1208_v42, %s2828_s23  ;;  %1240 = vrot.lane.b32.xlu1 %v1232_v49, %s2829_s24  ;;  %v941_v14 = vadd.f32 %v3405_v40, %v915_v8  ;;  %v1003_v42 = vmul.f32 %v999_v1, %v3311_v57  ;;  %v1284_v49 = vmul.f32 %v1283_v60, %v3395_v20 }
 0x226   :  { %1214 = vrot.lane.b32.xlu0 %v1206_v44, %s2828_s23  ;;  %v1002_v57 = vmul.f32 %v999_v1, %v3301_v4  ;;  %v3491_v4 = vld [vmem:[#allocation2 + $0x30] sm:$0xff] }
 0x227   :  { %v981_v32 = vpop.permute.xlu2 %980  ;;  %v931_v54 = vpop.permute.xlu1 %930 }
 0x228   :  { %v905_v3 = vpop.permute.xlu0 %904 }
 0x229   :  { %v914_v25 = vadd.f32 %v905_v3, %v888_v13 }
 0x22b   :  { %v940_v41 = vadd.f32 %v931_v54, %v914_v25 }
 0x22d   :  { %1242 = vrot.lane.b32.xlu2 %v1233_v46, %s2829_s24  ;;  %1246 = vrot.lane.b32.xlu1 %v1235_v26, %s2829_s24  ;;  %v1311_v46 = vmul.f32 %v1309_v47, %v3409_v43  ;;  %v1313_v26 = vmul.f32 %v1309_v47, %v3407_v61 }
 0x22e   :  { %1220 = vrot.lane.b32.xlu0 %v1209_v45, %s2828_s23  ;;  %v1287_v45 = vmul.f32 %v1283_v60, %v3407_v61 }
 0x22f   :  { %v3434_v12 = vpop.permute.xlu2 %1018  ;;  %v955_v51 = vpop.permute.xlu1 %954 }
 0x230   :  { %v929_v15 = vpop.permute.xlu0 %928 }
 0x231   :  { %v939_v16 = vadd.f32 %v929_v15, %v913_v6  ;;  %v3493_v6 = vld [vmem:[#allocation2 + $0x48] sm:$0xff] }
 0x233   :  { %v965_v7 = vadd.f32 %v955_v51, %v939_v16  ;;  %v1349_v51 = vstv %s2674_s26  ;;  %v1312_v16 = vmul.f32 %v1309_v47, %v3397_v22  ;;  %s2696_s26 = sld [smem:[#allocation3 + $0x48]] }
 0x234   :  { %v1350_v15 = vmul.f32 %v1349_v51, %v3491_v4  ;;  %v1352_v17 = vmul.f32 %v1349_v51, %v3493_v6 }
 0x235   :  { %1266 = vrot.lane.b32.xlu2 %v1258_v34, %s2830_s27  ;;  %1270 = vrot.lane.b32.xlu1 %v1260_v24, %s2830_s27  ;;  %v991_v5 = vadd.f32 %v981_v32, %v965_v7  ;;  %v966_v32 = vadd.f32 %v3417_v58, %v940_v41  ;;  %v3503_v34 = vld [vmem:[#allocation2 + $0x50] sm:$0xff]  ;;  %v3505_v24 = vld [vmem:[#allocation2 + $0x38] sm:$0xff] }
 0x236   :  { %1244 = vrot.lane.b32.xlu0 %v1234_v38, %s2829_s24  ;;  %v1375_v38 = vstv %s2675_s28  ;;  %v1353_v59 = vmul.f32 %v1349_v51, %v3503_v34  ;;  %s2697_s28 = sld [smem:[#allocation3 + $0x49]] }
 0x237   :  { %v3446_v29 = vpop.permute.xlu2 %1024  ;;  %v979_v31 = vpop.permute.xlu1 %978  ;;  %v3449_v27 = vadd.f32 %v1001_v28, %v991_v5  ;;  %v1377_v5 = vmul.f32 %v1375_v38, %v3505_v24  ;;  %v1351_v28 = vmul.f32 %v1349_v51, %v3505_v24  ;;  %v1378_v60 = vmul.f32 %v1375_v38, %v3493_v6 }
 0x238   :  { %v953_v33 = vpop.permute.xlu0 %952  ;;  %v1379_v25 = vmul.f32 %v1375_v38, %v3503_v34 }
 0x239   :  { %v964_v11 = vadd.f32 %v953_v33, %v938_v0  ;;  %v1401_v33 = vstv %s2676_s3  ;;  %s2698_s3 = sld [smem:[#allocation3 + $0x4a]] }
 0x23a   :  { %v1402_v50 = vmul.f32 %v1401_v33, %v3491_v4  ;;  %v1405_v13 = vmul.f32 %v1401_v33, %v3503_v34 }
 0x23b   :  { %v990_v37 = vadd.f32 %v979_v31, %v964_v11  ;;  %v1376_v11 = vmul.f32 %v1375_v38, %v3491_v4 }
 0x23d   :  { %1272 = vrot.lane.b32.xlu2 %v1261_v10, %s2830_s27  ;;  %1294 = vrot.lane.b32.xlu1 %v1285_v56, %s2831_s29  ;;  %v3460_v2 = vadd.f32 %v1000_v39, %v990_v37 }
 0x23e   :  { %1268 = vrot.lane.b32.xlu0 %v1259_v52, %s2830_s27  ;;  %v1403_v52 = vmul.f32 %v1401_v33, %v3505_v24 }
 0x23f   :  { %v3463_v53 = vpop.permute.xlu2 %1048  ;;  %v985_v35 = vpop.permute.xlu1 %984 }
 0x240   :  { %v959_v30 = vpop.permute.xlu0 %958 }
 0x241   :  { %v967_v48 = vadd.f32 %v959_v30, %v941_v14 }
 0x243   :  { %v993_v19 = vadd.f32 %v985_v35, %v967_v48  ;;  %v1030_v35 = vadd.f32 %v3434_v12, %v3460_v2 }
 0x245   :  { %1296 = vrot.lane.b32.xlu2 %v1286_v55, %s2831_s29  ;;  %1318 = vrot.lane.b32.xlu1 %v1310_v62, %s2832_s30  ;;  %v3472_v44 = vadd.f32 %v1003_v42, %v993_v19  ;;  %v1427_v55 = vstv %s2677_s4  ;;  %v1169_v19 = vstv %s2666_s5  ;;  %s2687_s4 = sld [smem:[#allocation3 + $0x3f]] }
 0x246   :  { %1292 = vrot.lane.b32.xlu0 %v1284_v49, %s2831_s29  ;;  %v1428_v12 = vmul.f32 %v1427_v55, %v3491_v4  ;;  %v1430_v2 = vmul.f32 %v1427_v55, %v3493_v6  ;;  %v1404_v49 = vmul.f32 %v1401_v33, %v3493_v6  ;;  %v1170_v51 = vmul.f32 %v1169_v19, %v3395_v20  ;;  %s2699_s5 = sld [smem:[#allocation3 + $0x4b]] }
 0x247   :  { %v3475_v40 = vpop.permute.xlu2 %1072  ;;  %v3477_v63 = vpop.permute.xlu1 %1022 }
 0x248   :  { %v983_v54 = vpop.permute.xlu0 %982 }
 0x249   :  { %v992_v3 = vadd.f32 %v983_v54, %v966_v32  ;;  %v1033_v32 = vadd.f32 %v3446_v29, %v3472_v44  ;;  %v1171_v54 = vmul.f32 %v1169_v19, %v3409_v43 }
 0x24b   :  { %v3481_v23 = vadd.f32 %v1002_v57, %v992_v3 }
 0x24d   :  { %1320 = vrot.lane.b32.xlu2 %v1311_v46, %s2832_s30  ;;  %1324 = vrot.lane.b32.xlu1 %v1313_v26, %s2832_s30  ;;  %v1032_v29 = vadd.f32 %v3477_v63, %v3481_v23 }
 0x24e   :  { %1298 = vrot.lane.b32.xlu0 %v1287_v45, %s2831_s29 }
 0x24f   :  { %v3489_v58 = vpop.permute.xlu2 %1096  ;;  %v1047_v9 = vpop.permute.xlu1 %1046 }
 0x250   :  { %v1021_v36 = vpop.permute.xlu0 %1020 }
 0x251   :  { %v1031_v10 = vadd.f32 %v1021_v36, %v3449_v27  ;;  %v1453_v36 = vstv %s2678_s6  ;;  %s2700_s6 = sld [smem:[#allocation3 + $0x4c]] }
 0x252   :  { %v1456_v33 = vmul.f32 %v1453_v36, %v3493_v6 }
 0x253   :  { %v1057_v39 = vadd.f32 %v1047_v9, %v1031_v10 }
 0x255   :  { %1358 = vrot.lane.b32.xlu2 %v1350_v15, %s2827_s21  ;;  %1362 = vrot.lane.b32.xlu1 %v1352_v17, %s2827_s21  ;;  %v1083_v47 = vadd.f32 %v3475_v40, %v1057_v39  ;;  %v1431_v17 = vmul.f32 %v1427_v55, %v3503_v34 }
 0x256   :  { %1322 = vrot.lane.b32.xlu0 %v1312_v16, %s2832_s30  ;;  %v1455_v16 = vmul.f32 %v1453_v36, %v3505_v24 }
 0x257   :  { %v3501_v1 = vpop.permute.xlu2 %1102  ;;  %v1071_v21 = vpop.permute.xlu1 %1070 }
 0x258   :  { %v1045_v7 = vpop.permute.xlu0 %1044 }
 0x259   :  { %v1056_v27 = vadd.f32 %v1045_v7, %v1030_v35 }
 0x25b   :  { %v1082_v62 = vadd.f32 %v1071_v21, %v1056_v27  ;;  %v1429_v21 = vmul.f32 %v1427_v55, %v3505_v24 }
 0x25d   :  { %1364 = vrot.lane.b32.xlu2 %v1353_v59, %s2827_s21  ;;  %1386 = vrot.lane.b32.xlu1 %v1377_v5, %s2828_s23  ;;  %v1108_v26 = vadd.f32 %v3489_v58, %v1082_v62  ;;  %v1058_v58 = vadd.f32 %v3463_v53, %v1032_v29  ;;  %v1479_v5 = vstv %s2679_s7  ;;  %s2702_s7 = sld [smem:[#allocation3 + $0x4e]] }
 0x25e   :  { %1360 = vrot.lane.b32.xlu0 %v1351_v28, %s2827_s21 }
 0x25f   :  { %v3513_v18 = vpop.permute.xlu2 %1126  ;;  %v1077_v31 = vpop.permute.xlu1 %1076 }
 0x260   :  { %v1051_v0 = vpop.permute.xlu0 %1050 }
 0x261   :  { %v1059_v57 = vadd.f32 %v1051_v0, %v1033_v32 }
 0x263   :  { %v1085_v43 = vadd.f32 %v1077_v31, %v1059_v57  ;;  %v1173_v31 = vmul.f32 %v1169_v19, %v3407_v61 }
 0x265   :  { %1388 = vrot.lane.b32.xlu2 %v1378_v60, %s2828_s23  ;;  %1410 = vrot.lane.b32.xlu1 %v1402_v50, %s2829_s24  ;;  %v1111_v38 = vadd.f32 %v3501_v1, %v1085_v43  ;;  %v1480_v60 = vmul.f32 %v1479_v5, %v3491_v4  ;;  %v1454_v50 = vmul.f32 %v1453_v36, %v3491_v4 }
 0x266   :  { %1384 = vrot.lane.b32.xlu0 %v1376_v11, %s2828_s23 }
 0x267   :  { %v1151_v8 = vpop.permute.xlu2 %1150  ;;  %v1101_v37 = vpop.permute.xlu1 %1100 }
 0x268   :  { %v1075_v56 = vpop.permute.xlu0 %1074 }
 0x269   :  { %v1084_v63 = vadd.f32 %v1075_v56, %v1058_v58 }
 0x26b   :  { %v1110_v53 = vadd.f32 %v1101_v37, %v1084_v63  ;;  %v1172_v37 = vmul.f32 %v1169_v19, %v3397_v22  ;;  %v3587_v22 = vld [vmem:[#allocation2 + $0x31] sm:$0xff] }
 0x26d   :  { %1412 = vrot.lane.b32.xlu2 %v1403_v52, %s2829_s24  ;;  %1416 = vrot.lane.b32.xlu1 %v1405_v13, %s2829_s24  ;;  %v1136_v61 = vadd.f32 %v3513_v18, %v1110_v53  ;;  %v1481_v52 = vmul.f32 %v1479_v5, %v3505_v24  ;;  %v1483_v13 = vmul.f32 %v1479_v5, %v3503_v34 }
 0x26e   :  { %1390 = vrot.lane.b32.xlu0 %v1379_v25, %s2828_s23  ;;  %v1457_v25 = vmul.f32 %v1453_v36, %v3503_v34 }
 0x26f   :  { %v3530_v14 = vpop.permute.xlu2 %1188  ;;  %v1125_v30 = vpop.permute.xlu1 %1124 }
 0x270   :  { %v1099_v48 = vpop.permute.xlu0 %1098 }
 0x271   :  { %v1109_v41 = vadd.f32 %v1099_v48, %v1083_v47  ;;  %v3589_v47 = vld [vmem:[#allocation2 + $0x49] sm:$0xff] }
 0x273   :  { %v1135_v42 = vadd.f32 %v1125_v30, %v1109_v41  ;;  %v1519_v30 = vstv %s2681_s8  ;;  %v1482_v41 = vmul.f32 %v1479_v5, %v3493_v6  ;;  %s2703_s8 = sld [smem:[#allocation3 + $0x4f]] }
 0x274   :  { %v1520_v48 = vmul.f32 %v1519_v30, %v3587_v22  ;;  %v1522_v55 = vmul.f32 %v1519_v30, %v3589_v47 }
 0x275   :  { %1436 = vrot.lane.b32.xlu2 %v1428_v12, %s2830_s27  ;;  %1440 = vrot.lane.b32.xlu1 %v1430_v2, %s2830_s27  ;;  %v1161_v40 = vadd.f32 %v1151_v8, %v1135_v42  ;;  %v3599_v12 = vld [vmem:[#allocation2 + $0x51] sm:$0xff]  ;;  %v3601_v2 = vld [vmem:[#allocation2 + $0x39] sm:$0xff] }
 0x276   :  { %1414 = vrot.lane.b32.xlu0 %v1404_v49, %s2829_s24  ;;  %v1545_v49 = vstv %s2682_s9  ;;  %v1523_v32 = vmul.f32 %v1519_v30, %v3599_v12  ;;  %s2704_s9 = sld [smem:[#allocation3 + $0x50]] }
 0x277   :  { %v3542_v3 = vpop.permute.xlu2 %1194  ;;  %v1149_v46 = vpop.permute.xlu1 %1148  ;;  %v3545_v45 = vadd.f32 %v1171_v54, %v1161_v40  ;;  %v1547_v40 = vmul.f32 %v1545_v49, %v3601_v2  ;;  %v1521_v54 = vmul.f32 %v1519_v30, %v3601_v2  ;;  %v1548_v36 = vmul.f32 %v1545_v49, %v3589_v47 }
 0x278   :  { %v1123_v9 = vpop.permute.xlu0 %1122  ;;  %v1549_v63 = vmul.f32 %v1545_v49, %v3599_v12 }
 0x279   :  { %v1134_v44 = vadd.f32 %v1123_v9, %v1108_v26  ;;  %v1571_v9 = vstv %s2683_s10  ;;  %s2705_s10 = sld [smem:[#allocation3 + $0x51]] }
 0x27a   :  { %v1572_v29 = vmul.f32 %v1571_v9, %v3587_v22  ;;  %v1575_v58 = vmul.f32 %v1571_v9, %v3599_v12 }
 0x27b   :  { %v1160_v15 = vadd.f32 %v1149_v46, %v1134_v44  ;;  %v1546_v44 = vmul.f32 %v1545_v49, %v3587_v22 }
 0x27d   :  { %1442 = vrot.lane.b32.xlu2 %v1431_v17, %s2830_s27  ;;  %1464 = vrot.lane.b32.xlu1 %v1455_v16, %s2831_s29  ;;  %v3556_v7 = vadd.f32 %v1170_v51, %v1160_v15 }
 0x27e   :  { %1438 = vrot.lane.b32.xlu0 %v1429_v21, %s2830_s27  ;;  %v1573_v21 = vmul.f32 %v1571_v9, %v3601_v2 }
 0x27f   :  { %v3559_v20 = vpop.permute.xlu2 %1218  ;;  %v1155_v23 = vpop.permute.xlu1 %1154 }
 0x280   :  { %v1129_v59 = vpop.permute.xlu0 %1128 }
 0x281   :  { %v1137_v28 = vadd.f32 %v1129_v59, %v1111_v38 }
 0x283   :  { %v1163_v0 = vadd.f32 %v1155_v23, %v1137_v28  ;;  %v1200_v23 = vadd.f32 %v3530_v14, %v3556_v7 }
 0x285   :  { %1466 = vrot.lane.b32.xlu2 %v1456_v33, %s2831_s29  ;;  %1488 = vrot.lane.b32.xlu1 %v1480_v60, %s2832_s30  ;;  %v3568_v11 = vadd.f32 %v1173_v31, %v1163_v0  ;;  %v1597_v31 = vstv %s2684_s11  ;;  %v1339_v0 = vstv %s2673_s12  ;;  %s2694_s11 = sld [smem:[#allocation3 + $0x46]] }
 0x286   :  { %1462 = vrot.lane.b32.xlu0 %v1454_v50, %s2831_s29  ;;  %v1598_v14 = vmul.f32 %v1597_v31, %v3587_v22  ;;  %v1600_v7 = vmul.f32 %v1597_v31, %v3589_v47  ;;  %v1574_v50 = vmul.f32 %v1571_v9, %v3589_v47  ;;  %v1601_v30 = vmul.f32 %v1597_v31, %v3599_v12  ;;  %s2706_s12 = sld [smem:[#allocation3 + $0x52]] }
 0x287   :  { %v3571_v1 = vpop.permute.xlu2 %1242  ;;  %v3573_v10 = vpop.permute.xlu1 %1192 }
 0x288   :  { %v1153_v8 = vpop.permute.xlu0 %1152 }
 0x289   :  { %v1162_v56 = vadd.f32 %v1153_v8, %v1136_v61  ;;  %v1203_v61 = vadd.f32 %v3542_v3, %v3568_v11  ;;  %v1341_v8 = vmul.f32 %v1339_v0, %v3505_v24 }
 0x28b   :  { %v3577_v39 = vadd.f32 %v1172_v37, %v1162_v56 }
 0x28d   :  { %1490 = vrot.lane.b32.xlu2 %v1481_v52, %s2832_s30  ;;  %1494 = vrot.lane.b32.xlu1 %v1483_v13, %s2832_s30  ;;  %v1202_v3 = vadd.f32 %v3573_v10, %v3577_v39 }
 0x28e   :  { %1468 = vrot.lane.b32.xlu0 %v1457_v25, %s2831_s29 }
 0x28f   :  { %v3585_v18 = vpop.permute.xlu2 %1266  ;;  %v1217_v35 = vpop.permute.xlu1 %1216 }
 0x290   :  { %v1191_v27 = vpop.permute.xlu0 %1190 }
 0x291   :  { %v1201_v51 = vadd.f32 %v1191_v27, %v3545_v45  ;;  %v1623_v27 = vstv %s2685_s13  ;;  %s2707_s13 = sld [smem:[#allocation3 + $0x53]] }
 0x293   :  { %v1227_v16 = vadd.f32 %v1217_v35, %v1201_v51 }
 0x295   :  { %1528 = vrot.lane.b32.xlu2 %v1520_v48, %s2827_s21  ;;  %1532 = vrot.lane.b32.xlu1 %v1522_v55, %s2827_s21  ;;  %v1253_v5 = vadd.f32 %v3571_v1, %v1227_v16  ;;  %v1625_v55 = vmul.f32 %v1623_v27, %v3601_v2 }
 0x296   :  { %1492 = vrot.lane.b32.xlu0 %v1482_v41, %s2832_s30  ;;  %v1340_v41 = vmul.f32 %v1339_v0, %v3491_v4  ;;  %v1649_v4 = vstv %s2686_s14  ;;  %s2709_s14 = sld [smem:[#allocation3 + $0x55]] }
 0x297   :  { %v3597_v19 = vpop.permute.xlu2 %1272  ;;  %v1241_v62 = vpop.permute.xlu1 %1240  ;;  %v1650_v9 = vmul.f32 %v1649_v4, %v3587_v22 }
 0x298   :  { %v1215_v42 = vpop.permute.xlu0 %1214 }
 0x299   :  { %v1226_v45 = vadd.f32 %v1215_v42, %v1200_v23 }
 0x29b   :  { %v1252_v33 = vadd.f32 %v1241_v62, %v1226_v45  ;;  %v1599_v62 = vmul.f32 %v1597_v31, %v3601_v2 }
 0x29d   :  { %1534 = vrot.lane.b32.xlu2 %v1523_v32, %s2827_s21  ;;  %1556 = vrot.lane.b32.xlu1 %v1547_v40, %s2828_s23  ;;  %v1278_v13 = vadd.f32 %v3585_v18, %v1252_v33  ;;  %v1228_v18 = vadd.f32 %v3559_v20, %v1202_v3 }
 0x29e   :  { %1530 = vrot.lane.b32.xlu0 %v1521_v54, %s2827_s21 }
 0x29f   :  { %v3609_v57 = vpop.permute.xlu2 %1296  ;;  %v1247_v46 = vpop.permute.xlu1 %1246 }
 0x2a0   :  { %v1221_v26 = vpop.permute.xlu0 %1220 }
 0x2a1   :  { %v1229_v37 = vadd.f32 %v1221_v26, %v1203_v61 }
 0x2a3   :  { %v1255_v24 = vadd.f32 %v1247_v46, %v1229_v37  ;;  %v1626_v46 = vmul.f32 %v1623_v27, %v3589_v47 }
 0x2a5   :  { %1558 = vrot.lane.b32.xlu2 %v1548_v36, %s2828_s23  ;;  %1580 = vrot.lane.b32.xlu1 %v1572_v29, %s2829_s24  ;;  %v1281_v32 = vadd.f32 %v3597_v19, %v1255_v24  ;;  %v1343_v36 = vmul.f32 %v1339_v0, %v3503_v34  ;;  %v1624_v29 = vmul.f32 %v1623_v27, %v3587_v22 }
 0x2a6   :  { %1554 = vrot.lane.b32.xlu0 %v1546_v44, %s2828_s23  ;;  %v1342_v34 = vmul.f32 %v1339_v0, %v3493_v6  ;;  %v3683_v6 = vld [vmem:[#allocation2 + $0x32] sm:$0xff] }
 0x2a7   :  { %v1321_v43 = vpop.permute.xlu2 %1320  ;;  %v1271_v15 = vpop.permute.xlu1 %1270 }
 0x2a8   :  { %v1245_v17 = vpop.permute.xlu0 %1244 }
 0x2a9   :  { %v1254_v10 = vadd.f32 %v1245_v17, %v1228_v18 }
 0x2ab   :  { %v1280_v20 = vadd.f32 %v1271_v15, %v1254_v10 }
 0x2ad   :  { %1582 = vrot.lane.b32.xlu2 %v1573_v21, %s2829_s24  ;;  %1586 = vrot.lane.b32.xlu1 %v1575_v58, %s2829_s24  ;;  %v1651_v21 = vmul.f32 %v1649_v4, %v3601_v2  ;;  %v1653_v58 = vmul.f32 %v1649_v4, %v3599_v12 }
 0x2ae   :  { %1560 = vrot.lane.b32.xlu0 %v1549_v63, %s2828_s23  ;;  %v1627_v63 = vmul.f32 %v1623_v27, %v3599_v12 }
 0x2af   :  { %v3626_v38 = vpop.permute.xlu2 %1358  ;;  %v1295_v59 = vpop.permute.xlu1 %1294 }
 0x2b0   :  { %v1269_v28 = vpop.permute.xlu0 %1268 }
 0x2b1   :  { %v1279_v53 = vadd.f32 %v1269_v28, %v1253_v5  ;;  %v3685_v5 = vld [vmem:[#allocation2 + $0x4a] sm:$0xff] }
 0x2b3   :  { %v1305_v60 = vadd.f32 %v1295_v59, %v1279_v53  ;;  %v1689_v59 = vstv %s2688_s15  ;;  %v1652_v53 = vmul.f32 %v1649_v4, %v3589_v47  ;;  %s2710_s15 = sld [smem:[#allocation3 + $0x56]] }
 0x2b4   :  { %v1690_v28 = vmul.f32 %v1689_v59, %v3683_v6  ;;  %v1692_v31 = vmul.f32 %v1689_v59, %v3685_v5 }
 0x2b5   :  { %1606 = vrot.lane.b32.xlu2 %v1598_v14, %s2830_s27  ;;  %1610 = vrot.lane.b32.xlu1 %v1600_v7, %s2830_s27  ;;  %v1331_v1 = vadd.f32 %v1321_v43, %v1305_v60  ;;  %v1306_v43 = vadd.f32 %v3609_v57, %v1280_v20  ;;  %v3695_v14 = vld [vmem:[#allocation2 + $0x52] sm:$0xff]  ;;  %v3697_v7 = vld [vmem:[#allocation2 + $0x3a] sm:$0xff] }
 0x2b6   :  { %1584 = vrot.lane.b32.xlu0 %v1574_v50, %s2829_s24  ;;  %v1715_v50 = vstv %s2689_s16  ;;  %v1693_v61 = vmul.f32 %v1689_v59, %v3695_v14  ;;  %s2711_s16 = sld [smem:[#allocation3 + $0x57]] }
 0x2b7   :  { %v1319_v56 = vpop.permute.xlu1 %1318  ;;  %v3638_v52 = vpop.permute.xlu2 %1364  ;;  %v3641_v25 = vadd.f32 %v1341_v8, %v1331_v1  ;;  %v1717_v1 = vmul.f32 %v1715_v50, %v3697_v7  ;;  %v1691_v8 = vmul.f32 %v1689_v59, %v3697_v7  ;;  %v1718_v27 = vmul.f32 %v1715_v50, %v3685_v5 }
 0x2b8   :  { %v1293_v35 = vpop.permute.xlu0 %1292  ;;  %v1719_v10 = vmul.f32 %v1715_v50, %v3695_v14 }
 0x2b9   :  { %v1304_v11 = vadd.f32 %v1293_v35, %v1278_v13  ;;  %v1741_v35 = vstv %s2690_s17  ;;  %s2712_s17 = sld [smem:[#allocation3 + $0x58]] }
 0x2ba   :  { %v1742_v3 = vmul.f32 %v1741_v35, %v3683_v6  ;;  %v1745_v18 = vmul.f32 %v1741_v35, %v3695_v14 }
 0x2bb   :  { %v1330_v48 = vadd.f32 %v1319_v56, %v1304_v11  ;;  %v1716_v11 = vmul.f32 %v1715_v50, %v3683_v6 }
 0x2bd   :  { %1612 = vrot.lane.b32.xlu2 %v1601_v30, %s2830_s27  ;;  %1634 = vrot.lane.b32.xlu1 %v1625_v55, %s2831_s29  ;;  %v3652_v42 = vadd.f32 %v1340_v41, %v1330_v48 }
 0x2be   :  { %1608 = vrot.lane.b32.xlu0 %v1599_v62, %s2830_s27  ;;  %v1743_v62 = vmul.f32 %v1741_v35, %v3697_v7 }
 0x2bf   :  { %v1325_v39 = vpop.permute.xlu1 %1324  ;;  %v3655_v49 = vpop.permute.xlu2 %1388 }
 0x2c0   :  { %v1299_v40 = vpop.permute.xlu0 %1298 }
 0x2c1   :  { %v1307_v54 = vadd.f32 %v1299_v40, %v1281_v32 }
 0x2c3   :  { %v1333_v26 = vadd.f32 %v1325_v39, %v1307_v54  ;;  %v1370_v39 = vadd.f32 %v3626_v38, %v3652_v42 }
 0x2c5   :  { %1636 = vrot.lane.b32.xlu2 %v1626_v46, %s2831_s29  ;;  %1658 = vrot.lane.b32.xlu1 %v1650_v9, %s2832_s30  ;;  %v3664_v44 = vadd.f32 %v1343_v36, %v1333_v26  ;;  %v1767_v46 = vstv %s2691_s0  ;;  %v1509_v26 = vstv %s2680_s1  ;;  %s2701_s0 = sld [smem:[#allocation3 + $0x4d]] }
 0x2c6   :  { %1632 = vrot.lane.b32.xlu0 %v1624_v29, %s2831_s29  ;;  %v1768_v38 = vmul.f32 %v1767_v46, %v3683_v6  ;;  %v1770_v42 = vmul.f32 %v1767_v46, %v3685_v5  ;;  %v1744_v29 = vmul.f32 %v1741_v35, %v3685_v5  ;;  %v1771_v59 = vmul.f32 %v1767_v46, %v3695_v14  ;;  %s2713_s1 = sld [smem:[#allocation3 + $0x59]] }
 0x2c7   :  { %v3667_v19 = vpop.permute.xlu2 %1412  ;;  %v3669_v51 = vpop.permute.xlu1 %1362 }
 0x2c8   :  { %v1323_v15 = vpop.permute.xlu0 %1322 }
 0x2c9   :  { %v1332_v17 = vadd.f32 %v1323_v15, %v1306_v43  ;;  %v1373_v43 = vadd.f32 %v3638_v52, %v3664_v44  ;;  %v1511_v15 = vmul.f32 %v1509_v26, %v3601_v2 }
 0x2cb   :  { %v3673_v16 = vadd.f32 %v1342_v34, %v1332_v17 }
 0x2cd   :  { %1660 = vrot.lane.b32.xlu2 %v1651_v21, %s2832_s30  ;;  %1664 = vrot.lane.b32.xlu1 %v1653_v58, %s2832_s30  ;;  %v1372_v52 = vadd.f32 %v3669_v51, %v3673_v16 }
 0x2ce   :  { %1638 = vrot.lane.b32.xlu0 %v1627_v63, %s2831_s29 }
 0x2cf   :  { %v3681_v57 = vpop.permute.xlu2 %1436  ;;  %v1387_v23 = vpop.permute.xlu1 %1386 }
 0x2d0   :  { %v1361_v45 = vpop.permute.xlu0 %1360 }
 0x2d1   :  { %v1371_v30 = vadd.f32 %v1361_v45, %v3641_v25  ;;  %v1793_v45 = vstv %s2692_s20  ;;  %s2714_s20 = sld [smem:[#allocation3 + $0x5a]] }
 0x2d2   :  { %v1795_v2 = vmul.f32 %v1793_v45, %v3697_v7 }
 0x2d3   :  { %v1397_v41 = vadd.f32 %v1387_v23, %v1371_v30 }
 0x2d5   :  { %1698 = vrot.lane.b32.xlu2 %v1690_v28, %s2827_s21  ;;  %1702 = vrot.lane.b32.xlu1 %v1692_v31, %s2827_s21  ;;  %v1423_v4 = vadd.f32 %v3667_v19, %v1397_v41 }
 0x2d6   :  { %1662 = vrot.lane.b32.xlu0 %v1652_v53, %s2832_s30  ;;  %v1510_v53 = vmul.f32 %v1509_v26, %v3587_v22 }
 0x2d7   :  { %v3693_v0 = vpop.permute.xlu2 %1442  ;;  %v1411_v33 = vpop.permute.xlu1 %1410 }
 0x2d8   :  { %v1385_v60 = vpop.permute.xlu0 %1384 }
 0x2d9   :  { %v1396_v25 = vadd.f32 %v1385_v60, %v1370_v39 }
 0x2db   :  { %v1422_v9 = vadd.f32 %v1411_v33, %v1396_v25  ;;  %v1769_v33 = vmul.f32 %v1767_v46, %v3697_v7  ;;  %v1797_v25 = vmul.f32 %v1793_v45, %v3695_v14  ;;  %v1859_v46 = vstv %s2695_s25  ;;  %s2717_s25 = sld [smem:[#allocation3 + $0x5d]] }
 0x2dd   :  { %1704 = vrot.lane.b32.xlu2 %v1693_v61, %s2827_s21  ;;  %1726 = vrot.lane.b32.xlu1 %v1717_v1, %s2828_s23  ;;  %v1448_v58 = vadd.f32 %v3681_v57, %v1422_v9  ;;  %v1398_v57 = vadd.f32 %v3655_v49, %v1372_v52 }
 0x2de   :  { %1700 = vrot.lane.b32.xlu0 %v1691_v8, %s2827_s21 }
 0x2df   :  { %v3705_v37 = vpop.permute.xlu2 %1466  ;;  %v1417_v56 = vpop.permute.xlu1 %1416 }
 0x2e0   :  { %v1391_v13 = vpop.permute.xlu0 %1390 }
 0x2e1   :  { %v1399_v34 = vadd.f32 %v1391_v13, %v1373_v43  ;;  %v1796_v13 = vmul.f32 %v1793_v45, %v3685_v5 }
 0x2e3   :  { %v1425_v28 = vadd.f32 %v1417_v56, %v1399_v34  ;;  %v1819_v56 = vstv %s2693_s22  ;;  %v3769_v34 = vld [vmem:[#allocation2 + $0x53] sm:$0xff]  ;;  %s2716_s22 = sld [smem:[#allocation3 + $0x5c]] }
 0x2e4   :  { %v1823_v39 = vmul.f32 %v1819_v56, %v3695_v14 }
 0x2e5   :  { %1728 = vrot.lane.b32.xlu2 %v1718_v27, %s2828_s23  ;;  %1750 = vrot.lane.b32.xlu1 %v1742_v3, %s2829_s24  ;;  %v1451_v61 = vadd.f32 %v3693_v0, %v1425_v28  ;;  %v1820_v27 = vmul.f32 %v1819_v56, %v3683_v6  ;;  %v1513_v3 = vmul.f32 %v1509_v26, %v3599_v12 }
 0x2e6   :  { %1724 = vrot.lane.b32.xlu0 %v1716_v11, %s2828_s23  ;;  %v1794_v11 = vmul.f32 %v1793_v45, %v3683_v6 }
 0x2e7   :  { %v1491_v24 = vpop.permute.xlu2 %1490  ;;  %v1441_v48 = vpop.permute.xlu1 %1440 }
 0x2e8   :  { %v1415_v55 = vpop.permute.xlu0 %1414 }
 0x2e9   :  { %v1424_v51 = vadd.f32 %v1415_v55, %v1398_v57 }
 0x2eb   :  { %v1450_v35 = vadd.f32 %v1441_v48, %v1424_v51 }
 0x2ed   :  { %1752 = vrot.lane.b32.xlu2 %v1743_v62, %s2829_s24  ;;  %1756 = vrot.lane.b32.xlu1 %v1745_v18, %s2829_s24  ;;  %v1476_v55 = vadd.f32 %v3705_v37, %v1450_v35  ;;  %v1512_v62 = vmul.f32 %v1509_v26, %v3589_v47  ;;  %v3759_v47 = vld [vmem:[#allocation2 + $0x33] sm:$0xff] }
 0x2ee   :  { %1730 = vrot.lane.b32.xlu0 %v1719_v10, %s2828_s23  ;;  %v1821_v10 = vmul.f32 %v1819_v56, %v3697_v7 }
 0x2ef   :  { %v1529_v32 = vpop.permute.xlu2 %1528  ;;  %v1465_v40 = vpop.permute.xlu1 %1464 }
 0x2f0   :  { %v1439_v54 = vpop.permute.xlu0 %1438 }
 0x2f1   :  { %v1449_v20 = vadd.f32 %v1439_v54, %v1423_v4 }
 0x2f3   :  { %v1475_v36 = vadd.f32 %v1465_v40, %v1449_v20  ;;  %v3761_v20 = vld [vmem:[#allocation2 + $0x4b] sm:$0xff] }
 0x2f5   :  { %1776 = vrot.lane.b32.xlu2 %v1768_v38, %s2830_s27  ;;  %1780 = vrot.lane.b32.xlu1 %v1770_v42, %s2830_s27  ;;  %v1501_v19 = vadd.f32 %v1491_v24, %v1475_v36  ;;  %v1860_v36 = vmul.f32 %v1859_v46, %v3759_v47  ;;  %v1862_v38 = vmul.f32 %v1859_v46, %v3761_v20 }
 0x2f6   :  { %1754 = vrot.lane.b32.xlu0 %v1744_v29, %s2829_s24  ;;  %v1822_v42 = vmul.f32 %v1819_v56, %v3685_v5 }
 0x2f7   :  { %v1535_v17 = vpop.permute.xlu2 %1534  ;;  %v1489_v21 = vpop.permute.xlu1 %1488  ;;  %v1515_v63 = vadd.f32 %v1511_v15, %v1501_v19 }
 0x2f8   :  { %v1463_v23 = vpop.permute.xlu0 %1462 }
 0x2f9   :  { %v1474_v44 = vadd.f32 %v1463_v23, %v1448_v58  ;;  %v1885_v58 = vstv %s2696_s26  ;;  %v1863_v23 = vmul.f32 %v1859_v46, %v3769_v34  ;;  %s2718_s26 = sld [smem:[#allocation3 + $0x5e]] }
 0x2fa   :  { %v1888_v57 = vmul.f32 %v1885_v58, %v3761_v20  ;;  %v1886_v51 = vmul.f32 %v1885_v58, %v3759_v47  ;;  %v1889_v35 = vmul.f32 %v1885_v58, %v3769_v34 }
 0x2fb   :  { %v1500_v31 = vadd.f32 %v1489_v21, %v1474_v44 }
 0x2fd   :  { %1782 = vrot.lane.b32.xlu2 %v1771_v59, %s2830_s27  ;;  %1804 = vrot.lane.b32.xlu1 %v1795_v2, %s2831_s29  ;;  %v1514_v60 = vadd.f32 %v1510_v53, %v1500_v31  ;;  %v1911_v2 = vstv %s2697_s28  ;;  %s2708_s28 = sld [smem:[#allocation3 + $0x54]] }
 0x2fe   :  { %1778 = vrot.lane.b32.xlu0 %v1769_v33, %s2830_s27 }
 0x2ff   :  { %v1559_v16 = vpop.permute.xlu2 %1558  ;;  %v1495_v50 = vpop.permute.xlu1 %1494  ;;  %v1540_v1 = vadd.f32 %v1529_v32, %v1514_v60  ;;  %v1912_v60 = vmul.f32 %v1911_v2, %v3759_v47 }
 0x300   :  { %v1469_v8 = vpop.permute.xlu0 %1468 }
 0x301   :  { %v1477_v22 = vadd.f32 %v1469_v8, %v1451_v61 }
 0x303   :  { %v1503_v49 = vadd.f32 %v1495_v50, %v1477_v22 }
 0x305   :  { %1806 = vrot.lane.b32.xlu2 %v1796_v13, %s2831_s29  ;;  %1828 = vrot.lane.b32.xlu1 %v1820_v27, %s2832_s30  ;;  %v1517_v30 = vadd.f32 %v1513_v3, %v1503_v49  ;;  %v1915_v13 = vmul.f32 %v1911_v2, %v3769_v34 }
 0x306   :  { %1802 = vrot.lane.b32.xlu0 %v1794_v11, %s2831_s29 }
 0x307   :  { %v1583_v0 = vpop.permute.xlu2 %1582  ;;  %v1533_v24 = vpop.permute.xlu1 %1532  ;;  %v1543_v41 = vadd.f32 %v1535_v17, %v1517_v30  ;;  %v3771_v17 = vld [vmem:[#allocation2 + $0x3b] sm:$0xff]  ;;  %v1937_v30 = vstv %s2698_s3  ;;  %s2720_s3 = sld [smem:[#allocation3 + $0x60]] }
 0x308   :  { %v1493_v48 = vpop.permute.xlu0 %1492  ;;  %v1887_v45 = vmul.f32 %v1885_v58, %v3771_v17  ;;  %v1861_v52 = vmul.f32 %v1859_v46, %v3771_v17  ;;  %v1913_v22 = vmul.f32 %v1911_v2, %v3771_v17 }
 0x309   :  { %v1502_v18 = vadd.f32 %v1493_v48, %v1476_v55  ;;  %v1940_v48 = vmul.f32 %v1937_v30, %v3761_v20 }
 0x30b   :  { %v1516_v12 = vadd.f32 %v1512_v62, %v1502_v18  ;;  %v1914_v62 = vmul.f32 %v1911_v2, %v3761_v20 }
 0x30d   :  { %1830 = vrot.lane.b32.xlu2 %v1821_v10, %s2832_s30  ;;  %1834 = vrot.lane.b32.xlu1 %v1823_v39, %s2832_s30  ;;  %v1542_v32 = vadd.f32 %v1533_v24, %v1516_v12  ;;  %v1679_v24 = vstv %s2687_s4 }
 0x30e   :  { %1808 = vrot.lane.b32.xlu0 %v1797_v25, %s2831_s29  ;;  %v1681_v12 = vmul.f32 %v1679_v24, %v3697_v7  ;;  %v1683_v58 = vmul.f32 %v1679_v24, %v3695_v14 }
 0x30f   :  { %v1607_v37 = vpop.permute.xlu2 %1606  ;;  %v1557_v40 = vpop.permute.xlu1 %1556  ;;  %v1568_v4 = vadd.f32 %v1559_v16, %v1542_v32 }
 0x310   :  { %v1531_v54 = vpop.permute.xlu0 %1530 }
 0x311   :  { %v1541_v26 = vadd.f32 %v1531_v54, %v1515_v63  ;;  %v1941_v54 = vmul.f32 %v1937_v30, %v3769_v34 }
 0x313   :  { %v1567_v9 = vadd.f32 %v1557_v40, %v1541_v26  ;;  %v1963_v40 = vstv %s2699_s5  ;;  %v1680_v26 = vmul.f32 %v1679_v24, %v3683_v6  ;;  %s2611_s5 = sshll.u32 %s4017_s2, 4  ;;  %s2612_s5 = int_to_ptr.hbm [resolvable:$true] %s2611_s5 }
 0x314   :  { %v1965_v46 = vmul.f32 %v1963_v40, %v3771_v17 }
 0x315   :  { %1868 = vrot.lane.b32.xlu2 %v1860_v36, %s2827_s21  ;;  %1872 = vrot.lane.b32.xlu1 %v1862_v38, %s2827_s21  ;;  %v1593_v29 = vadd.f32 %v1583_v0, %v1567_v9  ;;  %v1939_v9 = vmul.f32 %v1937_v30, %v3771_v17 }
 0x316   :  { %1832 = vrot.lane.b32.xlu0 %v1822_v42, %s2832_s30 }
 0x317   :  { %v1613_v43 = vpop.permute.xlu2 %1612  ;;  %v1581_v19 = vpop.permute.xlu1 %1580 }
 0x318   :  { %v1555_v15 = vpop.permute.xlu0 %1554 }
 0x319   :  { %v1566_v21 = vadd.f32 %v1555_v15, %v1540_v1 }
 0x31b   :  { %v1592_v63 = vadd.f32 %v1581_v19, %v1566_v21  ;;  %v1966_v21 = vmul.f32 %v1963_v40, %v3761_v20 }
 0x31d   :  { %1874 = vrot.lane.b32.xlu2 %v1863_v23, %s2827_s21  ;;  %1896 = vrot.lane.b32.xlu1 %v1887_v45, %s2828_s23  ;;  %v1618_v44 = vadd.f32 %v1607_v37, %v1592_v63  ;;  %v1964_v63 = vmul.f32 %v1963_v40, %v3759_v47 }
 0x31e   :  { %1870 = vrot.lane.b32.xlu0 %v1861_v52, %s2827_s21 }
 0x31f   :  { %v1637_v59 = vpop.permute.xlu2 %1636  ;;  %v1587_v28 = vpop.permute.xlu1 %1586 }
 0x320   :  { %v1561_v31 = vpop.permute.xlu0 %1560 }
 0x321   :  { %v1569_v53 = vadd.f32 %v1561_v31, %v1543_v41  ;;  %v1938_v41 = vmul.f32 %v1937_v30, %v3759_v47  ;;  %v3829_v30 = vld [vmem:[#allocation2 + $0x54] sm:$0xff] }
 0x323   :  { %v1595_v33 = vadd.f32 %v1587_v28, %v1569_v53  ;;  %v1682_v28 = vmul.f32 %v1679_v24, %v3685_v5  ;;  %v3819_v5 = vld [vmem:[#allocation2 + $0x34] sm:$0xff] }
 0x325   :  { %1898 = vrot.lane.b32.xlu2 %v1888_v57, %s2828_s23  ;;  %1920 = vrot.lane.b32.xlu1 %v1912_v60, %s2829_s24  ;;  %v1621_v16 = vadd.f32 %v1613_v43, %v1595_v33  ;;  %v1989_v43 = vstv %s2700_s6  ;;  %v1967_v33 = vmul.f32 %v1963_v40, %v3769_v34 }
 0x326   :  { %1894 = vrot.lane.b32.xlu0 %v1886_v51, %s2828_s23  ;;  %v1990_v6 = vmul.f32 %v1989_v43, %v3759_v47  ;;  %v1991_v14 = vmul.f32 %v1989_v43, %v3771_v17  ;;  %v1993_v53 = vmul.f32 %v1989_v43, %v3769_v34 }
 0x327   :  { %v1661_v50 = vpop.permute.xlu2 %1660  ;;  %v1611_v61 = vpop.permute.xlu1 %1610 }
 0x328   :  { %v1585_v1 = vpop.permute.xlu0 %1584 }
 0x329   :  { %v1594_v8 = vadd.f32 %v1585_v1, %v1568_v4  ;;  %v3821_v1 = vld [vmem:[#allocation2 + $0x4c] sm:$0xff] }
 0x32b   :  { %v1620_v56 = vadd.f32 %v1611_v61, %v1594_v8  ;;  %v2029_v61 = vstv %s2702_s7 }
 0x32d   :  { %1922 = vrot.lane.b32.xlu2 %v1913_v22, %s2829_s24  ;;  %1926 = vrot.lane.b32.xlu1 %v1915_v13, %s2829_s24  ;;  %v1646_v49 = vadd.f32 %v1637_v59, %v1620_v56  ;;  %v2030_v22 = vmul.f32 %v2029_v61, %v3819_v5  ;;  %v2032_v13 = vmul.f32 %v2029_v61, %v3821_v1 }
 0x32e   :  { %1900 = vrot.lane.b32.xlu0 %v1889_v35, %s2828_s23  ;;  %v1992_v35 = vmul.f32 %v1989_v43, %v3761_v20 }
 0x32f   :  { %v1699_v27 = vpop.permute.xlu2 %1698  ;;  %v1635_v3 = vpop.permute.xlu1 %1634 }
 0x330   :  { %v1609_v11 = vpop.permute.xlu0 %1608 }
 0x331   :  { %v1619_v0 = vadd.f32 %v1609_v11, %v1593_v29 }
 0x333   :  { %v1645_v55 = vadd.f32 %v1635_v3, %v1619_v0  ;;  %v3831_v0 = vld [vmem:[#allocation2 + $0x3c] sm:$0xff] }
 0x335   :  { %1946 = vrot.lane.b32.xlu2 %v1938_v41, %s2830_s27  ;;  %1950 = vrot.lane.b32.xlu1 %v1940_v48, %s2830_s27  ;;  %v1671_v18 = vadd.f32 %v1661_v50, %v1645_v55  ;;  %v2055_v55 = vstv %s2703_s8  ;;  %v2033_v48 = vmul.f32 %v2029_v61, %v3829_v30 }
 0x336   :  { %1924 = vrot.lane.b32.xlu0 %v1914_v62, %s2829_s24  ;;  %v2057_v62 = vmul.f32 %v2055_v55, %v3831_v0 }
 0x337   :  { %v1705_v10 = vpop.permute.xlu2 %1704  ;;  %v1659_v39 = vpop.permute.xlu1 %1658  ;;  %v1685_v25 = vadd.f32 %v1681_v12, %v1671_v18  ;;  %v2031_v18 = vmul.f32 %v2029_v61, %v3831_v0 }
 0x338   :  { %v1633_v32 = vpop.permute.xlu0 %1632 }
 0x339   :  { %v1644_v37 = vadd.f32 %v1633_v32, %v1618_v44  ;;  %v2081_v32 = vstv %s2704_s9 }
 0x33a   :  { %v2085_v43 = vmul.f32 %v2081_v32, %v3829_v30 }
 0x33b   :  { %v1670_v4 = vadd.f32 %v1659_v39, %v1644_v37 }
 0x33d   :  { %1952 = vrot.lane.b32.xlu2 %v1941_v54, %s2830_s27  ;;  %1974 = vrot.lane.b32.xlu1 %v1965_v46, %s2831_s29  ;;  %v1684_v7 = vadd.f32 %v1680_v26, %v1670_v4  ;;  %v2058_v4 = vmul.f32 %v2055_v55, %v3821_v1  ;;  %v2082_v54 = vmul.f32 %v2081_v32, %v3819_v5 }
 0x33e   :  { %1948 = vrot.lane.b32.xlu0 %v1939_v9, %s2830_s27  ;;  %v2056_v46 = vmul.f32 %v2055_v55, %v3819_v5 }
 0x33f   :  { %v1729_v36 = vpop.permute.xlu2 %1728  ;;  %v1665_v38 = vpop.permute.xlu1 %1664  ;;  %v1710_v42 = vadd.f32 %v1699_v27, %v1684_v7 }
 0x340   :  { %v1639_v29 = vpop.permute.xlu0 %1638 }
 0x341   :  { %v1647_v19 = vadd.f32 %v1639_v29, %v1621_v16  ;;  %v2083_v29 = vmul.f32 %v2081_v32, %v3831_v0 }
 0x343   :  { %v1673_v15 = vadd.f32 %v1665_v38, %v1647_v19  ;;  %v2059_v19 = vmul.f32 %v2055_v55, %v3829_v30 }
 0x345   :  { %1976 = vrot.lane.b32.xlu2 %v1966_v21, %s2831_s29  ;;  %1998 = vrot.lane.b32.xlu1 %v1990_v6, %s2832_s30  ;;  %v1687_v23 = vadd.f32 %v1683_v58, %v1673_v15 }
 0x346   :  { %1972 = vrot.lane.b32.xlu0 %v1964_v63, %s2831_s29  ;;  %v2107_v63 = vstv %s2705_s10 }
 0x347   :  { %v1753_v45 = vpop.permute.xlu2 %1752  ;;  %v1703_v52 = vpop.permute.xlu1 %1702  ;;  %v1713_v44 = vadd.f32 %v1705_v10, %v1687_v23 }
 0x348   :  { %v1663_v59 = vpop.permute.xlu0 %1662 }
 0x349   :  { %v1672_v31 = vadd.f32 %v1663_v59, %v1646_v49  ;;  %v2084_v59 = vmul.f32 %v2081_v32, %v3821_v1 }
 0x34b   :  { %v1686_v2 = vadd.f32 %v1682_v28, %v1672_v31  ;;  %v1849_v28 = vstv %s2694_s11 }
 0x34c   :  { %v1853_v55 = vmul.f32 %v1849_v28, %v3769_v34 }
 0x34d   :  { %2000 = vrot.lane.b32.xlu2 %v1991_v14, %s2832_s30  ;;  %2004 = vrot.lane.b32.xlu1 %v1993_v53, %s2832_s30  ;;  %v1712_v57 = vadd.f32 %v1703_v52, %v1686_v2  ;;  %v2108_v52 = vmul.f32 %v2107_v63, %v3819_v5  ;;  %v1851_v2 = vmul.f32 %v1849_v28, %v3771_v17 }
 0x34e   :  { %1978 = vrot.lane.b32.xlu0 %v1967_v33, %s2831_s29 }
 0x34f   :  { %v1777_v60 = vpop.permute.xlu2 %1776  ;;  %v1727_v51 = vpop.permute.xlu1 %1726  ;;  %v1738_v16 = vadd.f32 %v1729_v36, %v1712_v57 }
 0x350   :  { %v1701_v50 = vpop.permute.xlu0 %1700 }
 0x351   :  { %v1711_v8 = vadd.f32 %v1701_v50, %v1685_v25  ;;  %v2111_v50 = vmul.f32 %v2107_v63, %v3829_v30 }
 0x353   :  { %v1737_v56 = vadd.f32 %v1727_v51, %v1711_v8  ;;  %v2133_v51 = vstv %s2706_s12  ;;  %v1850_v8 = vmul.f32 %v1849_v28, %v3759_v47 }
 0x354   :  { %v2135_v61 = vmul.f32 %v2133_v51, %v3831_v0 }
 0x355   :  { %2038 = vrot.lane.b32.xlu2 %v2030_v22, %s2827_s21  ;;  %2042 = vrot.lane.b32.xlu1 %v2032_v13, %s2827_s21  ;;  %v1763_v49 = vadd.f32 %v1753_v45, %v1737_v56  ;;  %v2109_v56 = vmul.f32 %v2107_v63, %v3831_v0 }
 0x356   :  { %2002 = vrot.lane.b32.xlu0 %v1992_v35, %s2832_s30 }
 0x357   :  { %v1783_v27 = vpop.permute.xlu2 %1782  ;;  %v1751_v3 = vpop.permute.xlu1 %1750 }
 0x358   :  { %v1725_v11 = vpop.permute.xlu0 %1724 }
 0x359   :  { %v1736_v24 = vadd.f32 %v1725_v11, %v1710_v42 }
 0x35b   :  { %v1762_v41 = vadd.f32 %v1751_v3, %v1736_v24  ;;  %v2136_v24 = vmul.f32 %v2133_v51, %v3821_v1 }
 0x35d   :  { %2044 = vrot.lane.b32.xlu2 %v2033_v48, %s2827_s21  ;;  %2066 = vrot.lane.b32.xlu1 %v2057_v62, %s2828_s23  ;;  %v1788_v12 = vadd.f32 %v1777_v60, %v1762_v41  ;;  %v2134_v41 = vmul.f32 %v2133_v51, %v3819_v5 }
 0x35e   :  { %2040 = vrot.lane.b32.xlu0 %v2031_v18, %s2827_s21 }
 0x35f   :  { %v1807_v10 = vpop.permute.xlu2 %1806  ;;  %v1757_v39 = vpop.permute.xlu1 %1756 }
 0x360   :  { %v1731_v25 = vpop.permute.xlu0 %1730 }
 0x361   :  { %v1739_v37 = vadd.f32 %v1731_v25, %v1713_v44  ;;  %v2110_v44 = vmul.f32 %v2107_v63, %v3821_v1  ;;  %v3889_v63 = vld [vmem:[#allocation2 + $0x55] sm:$0xff] }
 0x363   :  { %v1765_v40 = vadd.f32 %v1757_v39, %v1739_v37  ;;  %v1852_v39 = vmul.f32 %v1849_v28, %v3761_v20  ;;  %v3879_v20 = vld [vmem:[#allocation2 + $0x35] sm:$0xff] }
 0x365   :  { %2068 = vrot.lane.b32.xlu2 %v2058_v4, %s2828_s23  ;;  %2090 = vrot.lane.b32.xlu1 %v2082_v54, %s2829_s24  ;;  %v1791_v26 = vadd.f32 %v1783_v27, %v1765_v40  ;;  %v2159_v27 = vstv %s2707_s13  ;;  %v2137_v40 = vmul.f32 %v2133_v51, %v3829_v30 }
 0x366   :  { %2064 = vrot.lane.b32.xlu0 %v2056_v46, %s2828_s23  ;;  %v2160_v47 = vmul.f32 %v2159_v27, %v3819_v5  ;;  %v2161_v34 = vmul.f32 %v2159_v27, %v3831_v0  ;;  %v2163_v37 = vmul.f32 %v2159_v27, %v3829_v30 }
 0x367   :  { %v1831_v9 = vpop.permute.xlu2 %1830  ;;  %v1781_v7 = vpop.permute.xlu1 %1780 }
 0x368   :  { %v1755_v36 = vpop.permute.xlu0 %1754 }
 0x369   :  { %v1764_v38 = vadd.f32 %v1755_v36, %v1738_v16  ;;  %v3881_v36 = vld [vmem:[#allocation2 + $0x4d] sm:$0xff] }
 0x36b   :  { %v1790_v42 = vadd.f32 %v1781_v7, %v1764_v38  ;;  %v2199_v7 = vstv %s2709_s14 }
 0x36d   :  { %2092 = vrot.lane.b32.xlu2 %v2083_v29, %s2829_s24  ;;  %2096 = vrot.lane.b32.xlu1 %v2085_v43, %s2829_s24  ;;  %v1816_v15 = vadd.f32 %v1807_v10, %v1790_v42  ;;  %v2200_v29 = vmul.f32 %v2199_v7, %v3879_v20  ;;  %v2202_v43 = vmul.f32 %v2199_v7, %v3881_v36 }
 0x36e   :  { %2070 = vrot.lane.b32.xlu0 %v2059_v19, %s2828_s23  ;;  %v2162_v19 = vmul.f32 %v2159_v27, %v3821_v1 }
 0x36f   :  { %v1869_v21 = vpop.permute.xlu2 %1868  ;;  %v1805_v6 = vpop.permute.xlu1 %1804 }
 0x370   :  { %v1779_v58 = vpop.permute.xlu0 %1778 }
 0x371   :  { %v1789_v23 = vadd.f32 %v1779_v58, %v1763_v49 }
 0x373   :  { %v1815_v45 = vadd.f32 %v1805_v6, %v1789_v23  ;;  %v3891_v23 = vld [vmem:[#allocation2 + $0x3d] sm:$0xff] }
 0x375   :  { %2116 = vrot.lane.b32.xlu2 %v2108_v52, %s2830_s27  ;;  %2120 = vrot.lane.b32.xlu1 %v2110_v44, %s2830_s27  ;;  %v1841_v31 = vadd.f32 %v1831_v9, %v1815_v45  ;;  %v2225_v52 = vstv %s2710_s15 }
 0x376   :  { %2094 = vrot.lane.b32.xlu0 %v2084_v59, %s2829_s24  ;;  %v2203_v59 = vmul.f32 %v2199_v7, %v3889_v63  ;;  %v2227_v28 = vmul.f32 %v2225_v52, %v3891_v23 }
 0x377   :  { %v1875_v14 = vpop.permute.xlu2 %1874  ;;  %v1829_v53 = vpop.permute.xlu1 %1828  ;;  %v1855_v33 = vadd.f32 %v1851_v2, %v1841_v31  ;;  %v2201_v31 = vmul.f32 %v2199_v7, %v3891_v23 }
 0x378   :  { %v1803_v57 = vpop.permute.xlu0 %1802 }
 0x379   :  { %v1814_v60 = vadd.f32 %v1803_v57, %v1788_v12  ;;  %v2251_v57 = vstv %s2711_s16 }
 0x37a   :  { %v2255_v27 = vmul.f32 %v2251_v57, %v3889_v63 }
 0x37b   :  { %v1840_v16 = vadd.f32 %v1829_v53, %v1814_v60 }
 0x37d   :  { %2122 = vrot.lane.b32.xlu2 %v2111_v50, %s2830_s27  ;;  %2144 = vrot.lane.b32.xlu1 %v2135_v61, %s2831_s29  ;;  %v1854_v17 = vadd.f32 %v1850_v8, %v1840_v16  ;;  %v2228_v16 = vmul.f32 %v2225_v52, %v3881_v36  ;;  %v2252_v50 = vmul.f32 %v2251_v57, %v3879_v20 }
 0x37e   :  { %2118 = vrot.lane.b32.xlu0 %v2109_v56, %s2830_s27  ;;  %v2226_v61 = vmul.f32 %v2225_v52, %v3879_v20 }
 0x37f   :  { %v1899_v22 = vpop.permute.xlu2 %1898  ;;  %v1835_v13 = vpop.permute.xlu1 %1834  ;;  %v1880_v35 = vadd.f32 %v1869_v21, %v1854_v17 }
 0x380   :  { %v1809_v49 = vpop.permute.xlu0 %1808 }
 0x381   :  { %v1817_v3 = vadd.f32 %v1809_v49, %v1791_v26  ;;  %v2253_v49 = vmul.f32 %v2251_v57, %v3891_v23 }
 0x383   :  { %v1843_v11 = vadd.f32 %v1835_v13, %v1817_v3  ;;  %v2229_v3 = vmul.f32 %v2225_v52, %v3889_v63 }
 0x385   :  { %2146 = vrot.lane.b32.xlu2 %v2136_v24, %s2831_s29  ;;  %2168 = vrot.lane.b32.xlu1 %v2160_v47, %s2832_s30  ;;  %v1857_v48 = vadd.f32 %v1853_v55, %v1843_v11 }
 0x386   :  { %2142 = vrot.lane.b32.xlu0 %v2134_v41, %s2831_s29  ;;  %v2277_v41 = vstv %s2712_s17 }
 0x387   :  { %v1923_v62 = vpop.permute.xlu2 %1922  ;;  %v1873_v18 = vpop.permute.xlu1 %1872  ;;  %v1883_v12 = vadd.f32 %v1875_v14, %v1857_v48 }
 0x388   :  { %v1833_v10 = vpop.permute.xlu0 %1832 }
 0x389   :  { %v1842_v25 = vadd.f32 %v1833_v10, %v1816_v15  ;;  %v2254_v10 = vmul.f32 %v2251_v57, %v3881_v36 }
 0x38b   :  { %v1856_v32 = vadd.f32 %v1852_v39, %v1842_v25  ;;  %v2019_v39 = vstv %s2701_s0 }
 0x38c   :  { %v2023_v52 = vmul.f32 %v2019_v39, %v3829_v30 }
 0x38d   :  { %2170 = vrot.lane.b32.xlu2 %v2161_v34, %s2832_s30  ;;  %2174 = vrot.lane.b32.xlu1 %v2163_v37, %s2832_s30  ;;  %v1882_v4 = vadd.f32 %v1873_v18, %v1856_v32  ;;  %v2278_v18 = vmul.f32 %v2277_v41, %v3879_v20  ;;  %v2021_v32 = vmul.f32 %v2019_v39, %v3831_v0 }
 0x38e   :  { %2148 = vrot.lane.b32.xlu0 %v2137_v40, %s2831_s29 }
 0x38f   :  { %v1947_v54 = vpop.permute.xlu2 %1946  ;;  %v1897_v46 = vpop.permute.xlu1 %1896  ;;  %v1908_v26 = vadd.f32 %v1899_v22, %v1882_v4 }
 0x390   :  { %v1871_v9 = vpop.permute.xlu0 %1870 }
 0x391   :  { %v1881_v38 = vadd.f32 %v1871_v9, %v1855_v33  ;;  %v2281_v9 = vmul.f32 %v2277_v41, %v3889_v63 }
 0x393   :  { %v1907_v42 = vadd.f32 %v1897_v46, %v1881_v38  ;;  %v2303_v46 = vstv %s2713_s1  ;;  %v2020_v38 = vmul.f32 %v2019_v39, %v3819_v5 }
 0x394   :  { %v2305_v7 = vmul.f32 %v2303_v46, %v3891_v23 }
 0x395   :  { %2208 = vrot.lane.b32.xlu2 %v2200_v29, %s2827_s21  ;;  %2212 = vrot.lane.b32.xlu1 %v2202_v43, %s2827_s21  ;;  %v1933_v15 = vadd.f32 %v1923_v62, %v1907_v42  ;;  %v2279_v42 = vmul.f32 %v2277_v41, %v3891_v23 }
 0x396   :  { %2172 = vrot.lane.b32.xlu0 %v2162_v19, %s2832_s30 }
 0x397   :  { %v1953_v21 = vpop.permute.xlu2 %1952  ;;  %v1921_v6 = vpop.permute.xlu1 %1920 }
 0x398   :  { %v1895_v58 = vpop.permute.xlu0 %1894 }
 0x399   :  { %v1906_v45 = vadd.f32 %v1895_v58, %v1880_v35 }
 0x39b   :  { %v1932_v44 = vadd.f32 %v1921_v6, %v1906_v45  ;;  %v2306_v45 = vmul.f32 %v2303_v46, %v3881_v36 }
 0x39d   :  { %2214 = vrot.lane.b32.xlu2 %v2203_v59, %s2827_s21  ;;  %2236 = vrot.lane.b32.xlu1 %v2227_v28, %s2828_s23  ;;  %v1958_v2 = vadd.f32 %v1947_v54, %v1932_v44  ;;  %v2304_v44 = vmul.f32 %v2303_v46, %v3879_v20 }
 0x39e   :  { %2210 = vrot.lane.b32.xlu0 %v2201_v31, %s2827_s21 }
 0x39f   :  { %v1977_v14 = vpop.permute.xlu2 %1976  ;;  %v1927_v53 = vpop.permute.xlu1 %1926 }
 0x3a0   :  { %v1901_v33 = vpop.permute.xlu0 %1900 }
 0x3a1   :  { %v1909_v60 = vadd.f32 %v1901_v33, %v1883_v12  ;;  %v2280_v12 = vmul.f32 %v2277_v41, %v3881_v36  ;;  %v3949_v41 = vld [vmem:[#allocation2 + $0x56] sm:$0xff] }
 0x3a3   :  { %v1935_v51 = vadd.f32 %v1927_v53, %v1909_v60  ;;  %v2022_v53 = vmul.f32 %v2019_v39, %v3821_v1  ;;  %v3939_v1 = vld [vmem:[#allocation2 + $0x36] sm:$0xff] }
 0x3a5   :  { %2238 = vrot.lane.b32.xlu2 %v2228_v16, %s2828_s23  ;;  %2260 = vrot.lane.b32.xlu1 %v2252_v50, %s2829_s24  ;;  %v1961_v8 = vadd.f32 %v1953_v21, %v1935_v51  ;;  %v2329_v21 = vstv %s2714_s20  ;;  %v2307_v51 = vmul.f32 %v2303_v46, %v3889_v63 }
 0x3a6   :  { %2234 = vrot.lane.b32.xlu0 %v2226_v61, %s2828_s23  ;;  %v2330_v5 = vmul.f32 %v2329_v21, %v3879_v20  ;;  %v2331_v30 = vmul.f32 %v2329_v21, %v3891_v23  ;;  %v2333_v60 = vmul.f32 %v2329_v21, %v3889_v63 }
 0x3a7   :  { %v2001_v56 = vpop.permute.xlu2 %2000  ;;  %v1951_v17 = vpop.permute.xlu1 %1950 }
 0x3a8   :  { %v1925_v22 = vpop.permute.xlu0 %1924 }
 0x3a9   :  { %v1934_v13 = vadd.f32 %v1925_v22, %v1908_v26  ;;  %v3941_v22 = vld [vmem:[#allocation2 + $0x4e] sm:$0xff] }
 0x3ab   :  { %v1960_v35 = vadd.f32 %v1951_v17, %v1934_v13  ;;  %v2369_v17 = vstv %s2716_s22 }
 0x3ad   :  { %2262 = vrot.lane.b32.xlu2 %v2253_v49, %s2829_s24  ;;  %2266 = vrot.lane.b32.xlu1 %v2255_v27, %s2829_s24  ;;  %v1986_v11 = vadd.f32 %v1977_v14, %v1960_v35  ;;  %v2370_v49 = vmul.f32 %v2369_v17, %v3939_v1  ;;  %v2372_v27 = vmul.f32 %v2369_v17, %v3941_v22 }
 0x3ae   :  { %2240 = vrot.lane.b32.xlu0 %v2229_v3, %s2828_s23  ;;  %v2332_v3 = vmul.f32 %v2329_v21, %v3881_v36 }
 0x3af   :  { %v2039_v24 = vpop.permute.xlu2 %2038  ;;  %v1975_v47 = vpop.permute.xlu1 %1974 }
 0x3b0   :  { %v1949_v55 = vpop.permute.xlu0 %1948 }
 0x3b1   :  { %v1959_v48 = vadd.f32 %v1949_v55, %v1933_v15 }
 0x3b3   :  { %v1985_v62 = vadd.f32 %v1975_v47, %v1959_v48  ;;  %v3951_v48 = vld [vmem:[#allocation2 + $0x3e] sm:$0xff] }
 0x3b5   :  { %2286 = vrot.lane.b32.xlu2 %v2278_v18, %s2830_s27  ;;  %2290 = vrot.lane.b32.xlu1 %v2280_v12, %s2830_s27  ;;  %v2011_v25 = vadd.f32 %v2001_v56, %v1985_v62  ;;  %v2395_v18 = vstv %s2717_s25 }
 0x3b6   :  { %2264 = vrot.lane.b32.xlu0 %v2254_v10, %s2829_s24  ;;  %v2373_v10 = vmul.f32 %v2369_v17, %v3949_v41  ;;  %v2397_v39 = vmul.f32 %v2395_v18, %v3951_v48 }
 0x3b7   :  { %v2045_v34 = vpop.permute.xlu2 %2044  ;;  %v1999_v37 = vpop.permute.xlu1 %1998  ;;  %v2025_v40 = vadd.f32 %v2021_v32, %v2011_v25  ;;  %v2371_v25 = vmul.f32 %v2369_v17, %v3951_v48 }
 0x3b8   :  { %v1973_v4 = vpop.permute.xlu0 %1972 }
 0x3b9   :  { %v1984_v54 = vadd.f32 %v1973_v4, %v1958_v2  ;;  %v2421_v4 = vstv %s2718_s26 }
 0x3ba   :  { %v2425_v21 = vmul.f32 %v2421_v4, %v3949_v41 }
 0x3bb   :  { %v2010_v26 = vadd.f32 %v1999_v37, %v1984_v54 }
 0x3bd   :  { %2292 = vrot.lane.b32.xlu2 %v2281_v9, %s2830_s27  ;;  %2314 = vrot.lane.b32.xlu1 %v2305_v7, %s2831_s29  ;;  %v2024_v0 = vadd.f32 %v2020_v38, %v2010_v26  ;;  %v2398_v26 = vmul.f32 %v2395_v18, %v3941_v22  ;;  %v2422_v9 = vmul.f32 %v2421_v4, %v3939_v1 }
 0x3be   :  { %2288 = vrot.lane.b32.xlu0 %v2279_v42, %s2830_s27  ;;  %v2396_v7 = vmul.f32 %v2395_v18, %v3939_v1 }
 0x3bf   :  { %v2069_v29 = vpop.permute.xlu2 %2068  ;;  %v2005_v43 = vpop.permute.xlu1 %2004  ;;  %v2050_v19 = vadd.f32 %v2039_v24, %v2024_v0 }
 0x3c0   :  { %v1979_v15 = vpop.permute.xlu0 %1978 }
 0x3c1   :  { %v1987_v6 = vadd.f32 %v1979_v15, %v1961_v8  ;;  %v2423_v15 = vmul.f32 %v2421_v4, %v3951_v48 }
 0x3c3   :  { %v2013_v58 = vadd.f32 %v2005_v43, %v1987_v6  ;;  %v2399_v6 = vmul.f32 %v2395_v18, %v3949_v41 }
 0x3c5   :  { %2316 = vrot.lane.b32.xlu2 %v2306_v45, %s2831_s29  ;;  %2338 = vrot.lane.b32.xlu1 %v2330_v5, %s2832_s30  ;;  %v2027_v59 = vadd.f32 %v2023_v52, %v2013_v58 }
 0x3c6   :  { %2312 = vrot.lane.b32.xlu0 %v2304_v44, %s2831_s29 }
 0x3c7   :  { %v2093_v28 = vpop.permute.xlu2 %2092  ;;  %v2043_v31 = vpop.permute.xlu1 %2042  ;;  %v2053_v2 = vadd.f32 %v2045_v34, %v2027_v59 }
 0x3c8   :  { %v2003_v14 = vpop.permute.xlu0 %2002 }
 0x3c9   :  { %v2012_v33 = vadd.f32 %v2003_v14, %v1986_v11  ;;  %v2424_v14 = vmul.f32 %v2421_v4, %v3941_v22 }
 0x3cb   :  { %v2026_v57 = vadd.f32 %v2022_v53, %v2012_v33  ;;  %v2189_v53 = vstv %s2708_s28 }
 0x3cc   :  { %v2193_v18 = vmul.f32 %v2189_v53, %v3889_v63 }
 0x3cd   :  { %2340 = vrot.lane.b32.xlu2 %v2331_v30, %s2832_s30  ;;  %2344 = vrot.lane.b32.xlu1 %v2333_v60, %s2832_s30  ;;  %v2052_v16 = vadd.f32 %v2043_v31, %v2026_v57  ;;  %v2191_v57 = vmul.f32 %v2189_v53, %v3891_v23 }
 0x3ce   :  { %2318 = vrot.lane.b32.xlu0 %v2307_v51, %s2831_s29 }
 0x3cf   :  { %v2117_v50 = vpop.permute.xlu2 %2116  ;;  %v2067_v61 = vpop.permute.xlu1 %2066  ;;  %v2078_v8 = vadd.f32 %v2069_v29, %v2052_v16 }
 0x3d0   :  { %v2041_v56 = vpop.permute.xlu0 %2040 }
 0x3d1   :  { %v2051_v13 = vadd.f32 %v2041_v56, %v2025_v40 }
 0x3d3   :  { %v2077_v35 = vadd.f32 %v2067_v61, %v2051_v13  ;;  %v2473_v61 = vstv %s2720_s3  ;;  %v2190_v13 = vmul.f32 %v2189_v53, %v3879_v20 }
 0x3d4   :  { %v2475_v17 = vmul.f32 %v2473_v61, %v3951_v48 }
 0x3d5   :  { %2378 = vrot.lane.b32.xlu2 %v2370_v49, %s2827_s21  ;;  %2382 = vrot.lane.b32.xlu1 %v2372_v27, %s2827_s21  ;;  %v2103_v11 = vadd.f32 %v2093_v28, %v2077_v35 }
 0x3d6   :  { %2342 = vrot.lane.b32.xlu0 %v2332_v3, %s2832_s30 }
 0x3d7   :  { %v2123_v24 = vpop.permute.xlu2 %2122  ;;  %v2091_v47 = vpop.permute.xlu1 %2090 }
 0x3d8   :  { %v2065_v55 = vpop.permute.xlu0 %2064 }
 0x3d9   :  { %v2076_v62 = vadd.f32 %v2065_v55, %v2050_v19 }
 0x3db   :  { %v2102_v12 = vadd.f32 %v2091_v47, %v2076_v62  ;;  %v2476_v62 = vmul.f32 %v2473_v61, %v3941_v22 }
 0x3dd   :  { %2384 = vrot.lane.b32.xlu2 %v2373_v10, %s2827_s21  ;;  %2406 = vrot.lane.b32.xlu1 %v2397_v39, %s2828_s23  ;;  %v2128_v32 = vadd.f32 %v2117_v50, %v2102_v12  ;;  %v2474_v12 = vmul.f32 %v2473_v61, %v3939_v1 }
 0x3de   :  { %2380 = vrot.lane.b32.xlu0 %v2371_v25, %s2827_s21  ;;  %s2719_s21 = sld [smem:[#allocation3 + $0x5f]] }
 0x3df   :  { %v2147_v34 = vpop.permute.xlu2 %2146  ;;  %v2097_v37 = vpop.permute.xlu1 %2096 }
 0x3e0   :  { %v2071_v40 = vpop.permute.xlu0 %2070 }
 0x3e1   :  { %v2079_v54 = vadd.f32 %v2071_v40, %v2053_v2 }
 0x3e3   :  { %v2105_v46 = vadd.f32 %v2097_v37, %v2079_v54  ;;  %v2192_v37 = vmul.f32 %v2189_v53, %v3881_v36 }
 0x3e4   :  { %v2447_v44 = vstv %s2719_s21 }
 0x3e5   :  { %2408 = vrot.lane.b32.xlu2 %v2398_v26, %s2828_s23  ;;  %2430 = vrot.lane.b32.xlu1 %v2422_v9, %s2829_s24  ;;  %v2131_v38 = vadd.f32 %v2123_v24, %v2105_v46  ;;  %v2448_v31 = vmul.f32 %v2447_v44, %v3939_v1  ;;  %v2450_v2 = vmul.f32 %v2447_v44, %v3941_v22 }
 0x3e6   :  { %2404 = vrot.lane.b32.xlu0 %v2396_v7, %s2828_s23  ;;  %v2451_v56 = vmul.f32 %v2447_v44, %v3949_v41  ;;  %v2449_v35 = vmul.f32 %v2447_v44, %v3951_v48  ;;  %v2477_v46 = vmul.f32 %v2473_v61, %v3949_v41 }
 0x3e7   :  { %v2171_v42 = vpop.permute.xlu2 %2170  ;;  %v2121_v0 = vpop.permute.xlu1 %2120 }
 0x3e8   :  { %v2095_v29 = vpop.permute.xlu0 %2094 }
 0x3e9   :  { %v2104_v43 = vadd.f32 %v2095_v29, %v2078_v8 }
 0x3eb   :  { %v2130_v19 = vadd.f32 %v2121_v0, %v2104_v43 }
 0x3ed   :  { %2432 = vrot.lane.b32.xlu2 %v2423_v15, %s2829_s24  ;;  %2436 = vrot.lane.b32.xlu1 %v2425_v21, %s2829_s24  ;;  %v2156_v58 = vadd.f32 %v2147_v34, %v2130_v19 }
 0x3ee   :  { %2410 = vrot.lane.b32.xlu0 %v2399_v6, %s2828_s23  ;;  %s2721_s23 = sld [smem:[#allocation3 + $0x61]] }
 0x3ef   :  { %v2209_v45 = vpop.permute.xlu2 %2208  ;;  %v2145_v5 = vpop.permute.xlu1 %2144 }
 0x3f0   :  { %v2119_v52 = vpop.permute.xlu0 %2118 }
 0x3f1   :  { %v2129_v59 = vadd.f32 %v2119_v52, %v2103_v11 }
 0x3f3   :  { %v2155_v28 = vadd.f32 %v2145_v5, %v2129_v59 }
 0x3f4   :  { %v2499_v24 = vstv %s2721_s23 }
 0x3f5   :  { %2456 = vrot.lane.b32.xlu2 %v2448_v31, %s2830_s27  ;;  %2460 = vrot.lane.b32.xlu1 %v2450_v2, %s2830_s27  ;;  %v2181_v33 = vadd.f32 %v2171_v42, %v2155_v28  ;;  %v2500_v20 = vmul.f32 %v2499_v24, %v3939_v1  ;;  %v2501_v54 = vmul.f32 %v2499_v24, %v3951_v48 }
 0x3f6   :  { %2434 = vrot.lane.b32.xlu0 %v2424_v14, %s2829_s24  ;;  %v2503_v63 = vmul.f32 %v2499_v24, %v3949_v41  ;;  %v2502_v29 = vmul.f32 %v2499_v24, %v3941_v22  ;;  %s2715_s24 = sld [smem:[#allocation3 + $0x5b]] }
 0x3f7   :  { %v2215_v30 = vpop.permute.xlu2 %2214  ;;  %v2169_v60 = vpop.permute.xlu1 %2168  ;;  %v2195_v51 = vadd.f32 %v2191_v57, %v2181_v33 }
 0x3f8   :  { %v2143_v16 = vpop.permute.xlu0 %2142 }
 0x3f9   :  { %v2154_v50 = vadd.f32 %v2143_v16, %v2128_v32 }
 0x3fb   :  { %v2180_v8 = vadd.f32 %v2169_v60, %v2154_v50 }
 0x3fd   :  { %2462 = vrot.lane.b32.xlu2 %v2451_v56, %s2830_s27  ;;  %2484 = vrot.lane.b32.xlu1 %v2475_v17, %s2831_s29  ;;  %v2194_v23 = vadd.f32 %v2190_v13, %v2180_v8  ;;  %v2359_v8 = vstv %s2715_s24 }
 0x3fe   :  { %2458 = vrot.lane.b32.xlu0 %v2449_v35, %s2830_s27  ;;  %v2361_v17 = vmul.f32 %v2359_v8, %v3951_v48  ;;  %v2362_v48 = vmul.f32 %v2359_v8, %v3941_v22  ;;  %s2833_s27 = smov [#allocation8]  }
 0x3ff   :  { %v2239_v49 = vpop.permute.xlu2 %2238  ;;  %v2175_v27 = vpop.permute.xlu1 %2174  ;;  %v2220_v3 = vadd.f32 %v2209_v45, %v2194_v23 }
 0x400   :  { %v2149_v11 = vpop.permute.xlu0 %2148 }
 0x401   :  { %v2157_v47 = vadd.f32 %v2149_v11, %v2131_v38  ;;  %v2360_v11 = vmul.f32 %v2359_v8, %v3939_v1 }
 0x403   :  { %v2183_v55 = vadd.f32 %v2175_v27, %v2157_v47 }
 0x405   :  { %2486 = vrot.lane.b32.xlu2 %v2476_v62, %s2831_s29  ;;  %2508 = vrot.lane.b32.xlu1 %v2500_v20, %s2832_s30  ;;  %v2197_v10 = vadd.f32 %v2193_v18, %v2183_v55 }
 0x406   :  { %2482 = vrot.lane.b32.xlu0 %v2474_v12, %s2831_s29  ;;  %v2363_v12 = vmul.f32 %v2359_v8, %v3949_v41 }
 0x407   :  { %v2263_v39 = vpop.permute.xlu2 %2262  ;;  %v2213_v25 = vpop.permute.xlu1 %2212  ;;  %v2223_v32 = vadd.f32 %v2215_v30, %v2197_v10 }
 0x408   :  { %v2173_v34 = vpop.permute.xlu0 %2172 }
 0x409   :  { %v2182_v40 = vadd.f32 %v2173_v34, %v2156_v58 }
 0x40b   :  { %v2196_v4 = vadd.f32 %v2192_v37, %v2182_v40 }
 0x40d   :  { %2510 = vrot.lane.b32.xlu2 %v2501_v54, %s2832_s30  ;;  %2514 = vrot.lane.b32.xlu1 %v2503_v63, %s2832_s30  ;;  %v2222_v26 = vadd.f32 %v2213_v25, %v2196_v4 }
 0x40e   :  { %2488 = vrot.lane.b32.xlu0 %v2477_v46, %s2831_s29  ;;  %s2609_s29 = sshll.u32 %s2833_s27, 4  ;;  %s2610_s29 = int_to_ptr.vmem [resolvable:$true] %s2609_s29 }
 0x40f   :  { %v2287_v9 = vpop.permute.xlu2 %2286  ;;  %v2237_v7 = vpop.permute.xlu1 %2236  ;;  %v2248_v38 = vadd.f32 %v2239_v49, %v2222_v26 }
 0x410   :  { %v2211_v42 = vpop.permute.xlu0 %2210 }
 0x411   :  { %v2221_v36 = vadd.f32 %v2211_v42, %v2195_v51 }
 0x413   :  { %v2247_v0 = vadd.f32 %v2237_v7, %v2221_v36 }
 0x415   :  { %v2273_v43 = vadd.f32 %v2263_v39, %v2247_v0 }
 0x416   :  { %2512 = vrot.lane.b32.xlu0 %v2502_v29, %s2832_s30 }
 0x417   :  { %v2293_v19 = vpop.permute.xlu2 %2292  ;;  %v2261_v15 = vpop.permute.xlu1 %2260 }
 0x418   :  { %v2235_v21 = vpop.permute.xlu0 %2234 }
 0x419   :  { %v2246_v6 = vadd.f32 %v2235_v21, %v2220_v3 }
 0x41b   :  { %v2272_v58 = vadd.f32 %v2261_v15, %v2246_v6 }
 0x41d   :  { %v2298_v45 = vadd.f32 %v2287_v9, %v2272_v58 }
 0x41f   :  { %v2317_v5 = vpop.permute.xlu2 %2316  ;;  %v2267_v52 = vpop.permute.xlu1 %2266 }
 0x420   :  { %v2241_v44 = vpop.permute.xlu0 %2240 }
 0x421   :  { %v2249_v59 = vadd.f32 %v2241_v44, %v2223_v32 }
 0x423   :  { %v2275_v28 = vadd.f32 %v2267_v52, %v2249_v59 }
 0x425   :  { %v2301_v31 = vadd.f32 %v2293_v19, %v2275_v28 }
 0x427   :  { %v2341_v2 = vpop.permute.xlu2 %2340  ;;  %v2291_v14 = vpop.permute.xlu1 %2290 }
 0x428   :  { %v2265_v53 = vpop.permute.xlu0 %2264 }
 0x429   :  { %v2274_v33 = vadd.f32 %v2265_v53, %v2248_v38 }
 0x42b   :  { %v2300_v57 = vadd.f32 %v2291_v14, %v2274_v33 }
 0x42d   :  { %v2326_v30 = vadd.f32 %v2317_v5, %v2300_v57 }
 0x42f   :  { %v2379_v60 = vpop.permute.xlu2 %2378  ;;  %v2315_v51 = vpop.permute.xlu1 %2314 }
 0x430   :  { %v2289_v16 = vpop.permute.xlu0 %2288 }
 0x431   :  { %v2299_v50 = vadd.f32 %v2289_v16, %v2273_v43 }
 0x433   :  { %v2325_v61 = vadd.f32 %v2315_v51, %v2299_v50 }
 0x435   :  { %v2351_v56 = vadd.f32 %v2341_v2, %v2325_v61 }
 0x437   :  { %v2339_v13 = vpop.permute.xlu1 %2338  ;;  %v2365_v35 = vadd.f32 %v2361_v17, %v2351_v56  ;;  %v2385_v23 = vpop.permute.xlu2 %2384 }
 0x438   :  { %v2313_v49 = vpop.permute.xlu0 %2312 }
 0x439   :  { %v2324_v27 = vadd.f32 %v2313_v49, %v2298_v45 }
 0x43b   :  { %v2350_v3 = vadd.f32 %v2339_v13, %v2324_v27 }
 0x43d   :  { %v2364_v24 = vadd.f32 %v2360_v11, %v2350_v3 }
 0x43f   :  { %v2345_v47 = vpop.permute.xlu1 %2344  ;;  %v2409_v20 = vpop.permute.xlu2 %2408  ;;  %v2390_v0 = vadd.f32 %v2379_v60, %v2364_v24 }
 0x440   :  { %v2319_v55 = vpop.permute.xlu0 %2318 }
 0x441   :  { %v2327_v62 = vadd.f32 %v2319_v55, %v2301_v31 }
 0x443   :  { %v2353_v18 = vadd.f32 %v2345_v47, %v2327_v62 }
 0x445   :  { %v2367_v10 = vadd.f32 %v2363_v12, %v2353_v18 }
 0x447   :  { %v2383_v39 = vpop.permute.xlu1 %2382  ;;  %v2433_v37 = vpop.permute.xlu2 %2432  ;;  %v2393_v45 = vadd.f32 %v2385_v23, %v2367_v10 }
 0x448   :  { %v2343_v25 = vpop.permute.xlu0 %2342 }
 0x449   :  { %v2352_v32 = vadd.f32 %v2343_v25, %v2326_v30 }
 0x44b   :  { %v2366_v34 = vadd.f32 %v2362_v48, %v2352_v32 }
 0x44d   :  { %v2392_v2 = vadd.f32 %v2383_v39, %v2366_v34 }
 0x44f   :  { %v2407_v40 = vpop.permute.xlu1 %2406  ;;  %v2457_v54 = vpop.permute.xlu2 %2456  ;;  %v2418_v57 = vadd.f32 %v2409_v20, %v2392_v2 }
 0x450   :  { %v2381_v4 = vpop.permute.xlu0 %2380 }
 0x451   :  { %v2391_v7 = vadd.f32 %v2381_v4, %v2365_v35 }
 0x453   :  { %v2417_v36 = vadd.f32 %v2407_v40, %v2391_v7 }
 0x455   :  { %v2443_v22 = vadd.f32 %v2433_v37, %v2417_v36 }
 0x457   :  { %v2431_v1 = vpop.permute.xlu1 %2430  ;;  %v2463_v26 = vpop.permute.xlu2 %2462 }
 0x458   :  { %v2405_v63 = vpop.permute.xlu0 %2404 }
 0x459   :  { %v2416_v29 = vadd.f32 %v2405_v63, %v2390_v0 }
 0x45b   :  { %v2442_v21 = vadd.f32 %v2431_v1, %v2416_v29 }
 0x45d   :  { %v2468_v59 = vadd.f32 %v2457_v54, %v2442_v21 }
 0x45f   :  { %v2437_v46 = vpop.permute.xlu1 %2436  ;;  %v2487_v41 = vpop.permute.xlu2 %2486 }
 0x460   :  { %v2411_v9 = vpop.permute.xlu0 %2410 }
 0x461   :  { %v2419_v52 = vadd.f32 %v2411_v9, %v2393_v45 }
 0x463   :  { %v2445_v53 = vadd.f32 %v2437_v46, %v2419_v52 }
 0x465   :  { %v2471_v16 = vadd.f32 %v2463_v26, %v2445_v53 }
 0x467   :  { %v2461_v38 = vpop.permute.xlu1 %2460  ;;  %v2511_v58 = vpop.permute.xlu2 %2510 }
 0x468   :  { %v2435_v42 = vpop.permute.xlu0 %2434 }
 0x469   :  { %v2444_v51 = vadd.f32 %v2435_v42, %v2418_v57 }
 0x46b   :  { %v2470_v17 = vadd.f32 %v2461_v38, %v2444_v51 }
 0x46d   :  { %v2496_v27 = vadd.f32 %v2487_v41, %v2470_v17 }
 0x46f   :  { %v2485_v43 = vpop.permute.xlu1 %2484 }
 0x470   :  { %v2459_v19 = vpop.permute.xlu0 %2458 }
 0x471   :  { %v2469_v15 = vadd.f32 %v2459_v19, %v2443_v22 }
 0x473   :  { %v2495_v6 = vadd.f32 %v2485_v43, %v2469_v15 }
 0x475   :  { %v2521_v5 = vadd.f32 %v2511_v58, %v2495_v6 }
 0x477   :  { %v2723_v44 = vmul.f32 -1.442695, %v2521_v5  ;;  %v2509_v28 = vpop.permute.xlu1 %2508 }
 0x478   :  { %v2483_v31 = vpop.permute.xlu0 %2482 }
 0x479   :  { %2739 = vpow2.f32 %v2723_v44  ;;  %v2494_v14 = vadd.f32 %v2483_v31, %v2468_v59 }
 0x47b   :  { %v2520_v33 = vadd.f32 %v2509_v28, %v2494_v14 }
 0x47d   :  { %v2722_v30 = vmul.f32 -1.442695, %v2520_v33 }
 0x47f   :  { %v2740_v60 = vpop.eup %2739  ;;  %2741 = vpow2.f32 %v2722_v30  ;;  %v2515_v56 = vpop.permute.xlu1 %2514 }
 0x480   :  { %v2537_v50 = vadd.f32 1.0, %v2740_v60  ;;  %v2489_v61 = vpop.permute.xlu0 %2488 }
 0x481   :  { %v2497_v8 = vadd.f32 %v2489_v61, %v2471_v16 }
 0x482   :  { %2743 = vrcp.f32 %v2537_v50  ;;  %v2566_v20 = vand.u32 2147483648, %v2537_v50  ;;  %v2564_v10 = vand.u32 2147483647, %v2537_v50  ;;  %vm2560_vm4 = vweird.f32 %v2537_v50 }
 0x483   :  { %v2523_v13 = vadd.f32 %v2515_v56, %v2497_v8 }
 0x484   :  { %v2567_v34 = vor.u32 1.1754944e-38, %v2566_v20  ;;  %vm2565_vm7 = vcmp.eq.f32.partialorder %v2564_v10, 8.507059e+37 }
 0x485   :  { %v2742_v35 = vpop.eup %2741  ;;  %v2725_v23 = vmul.f32 -1.442695, %v2523_v13 }
 0x486   :  { %v2536_v49 = vadd.f32 1.0, %v2742_v35 }
 0x487   :  { %2745 = vpow2.f32 %v2725_v23 }
 0x488   :  { %v2744_v3 = vpop.eup %2743  ;;  %2747 = vrcp.f32 %v2536_v49  ;;  %v2513_v11 = vpop.permute.xlu0 %2512  ;;  %v2551_v4 = vand.u32 2147483648, %v2536_v49  ;;  %v2549_v46 = vand.u32 2147483647, %v2536_v49  ;;  %vm2545_vm9 = vweird.f32 %v2536_v49 }
 0x489   :  { %v2556_v24 = vmul.f32 %v2744_v3, %v2537_v50  ;;  %v2522_v47 = vadd.f32 %v2513_v11, %v2496_v27  ;;  %vm2561_vm3 = vweird.f32 %v2744_v3 }
 0x48a   :  { %vm2562_vm5 = vmor %vm2560_vm4, %vm2561_vm3  ;;  %v2552_v38 = vor.u32 1.1754944e-38, %v2551_v4  ;;  %vm2550_vm11 = vcmp.eq.f32.partialorder %v2549_v46, 8.507059e+37 }
 0x48b   :  { %v2724_v55 = vmul.f32 -1.442695, %v2522_v47  ;;  %v2557_v62 = vsub.f32 1.0, %v2556_v24 }
 0x48d   :  { %v2746_v18 = vpop.eup %2745  ;;  %2749 = vpow2.f32 %v2724_v55  ;;  %v2558_v12 = vmul.f32 %v2744_v3, %v2557_v62 }
 0x48e   :  { %v2748_v39 = vpop.eup %2747  ;;  %v2539_v25 = vadd.f32 1.0, %v2746_v18 }
 0x48f   :  { %v2541_v48 = vmul.f32 %v2748_v39, %v2536_v49  ;;  %v2559_v32 = vadd.f32 %v2744_v3, %v2558_v12  ;;  %vm2546_vm8 = vweird.f32 %v2748_v39 }
 0x490   :  { %2751 = vrcp.f32 %v2539_v25  ;;  %vm2547_vm10 = vmor %vm2545_vm9, %vm2546_vm8  ;;  %v2596_v29 = vand.u32 2147483648, %v2539_v25  ;;  %v2594_v22 = vand.u32 2147483647, %v2539_v25  ;;  %vm2590_vm13 = vweird.f32 %v2539_v25 }
 0x491   :  { %v2542_v37 = vsub.f32 1.0, %v2541_v48  ;;  %v2563_v40 = vsel %vm2562_vm5, %v2744_v3, %v2559_v32 }
 0x492   :  { %v2568_v54 = vsel %vm2565_vm7, %v2567_v34, %v2563_v40  ;;  %v2597_v6 = vor.u32 1.1754944e-38, %v2596_v29  ;;  %vm2595_vm15 = vcmp.eq.f32.partialorder %v2594_v22, 8.507059e+37 }
 0x493   :  { %v2750_v1 = vpop.eup %2749  ;;  %v2543_v63 = vmul.f32 %v2748_v39, %v2542_v37  ;;  %2602 = vst.msk [vmem:[#allocation8 + $0x8] sm:$0xff] %vm2600_vm6, %v2568_v54 }
 0x494   :  { %v2538_v26 = vadd.f32 1.0, %v2750_v1 }
 0x495   :  { %v2544_v9 = vadd.f32 %v2748_v39, %v2543_v63 }
 0x496   :  { %v2752_v7 = vpop.eup %2751  ;;  %2753 = vrcp.f32 %v2538_v26  ;;  %v2581_v5 = vand.u32 2147483648, %v2538_v26  ;;  %v2579_v59 = vand.u32 2147483647, %v2538_v26  ;;  %vm2575_vm1 = vweird.f32 %v2538_v26 }
 0x497   :  { %v2586_v42 = vmul.f32 %v2752_v7, %v2539_v25  ;;  %v2548_v41 = vsel %vm2547_vm10, %v2748_v39, %v2544_v9  ;;  %vm2591_vm12 = vweird.f32 %v2752_v7 }
 0x498   :  { %v2553_v36 = vsel %vm2550_vm11, %v2552_v38, %v2548_v41  ;;  %vm2592_vm14 = vmor %vm2590_vm13, %vm2591_vm12  ;;  %v2582_v31 = vor.u32 1.1754944e-38, %v2581_v5  ;;  %vm2580_vm3 = vcmp.eq.f32.partialorder %v2579_v59, 8.507059e+37 }
 0x499   :  { %v2587_v0 = vsub.f32 1.0, %v2586_v42  ;;  %2601 = vst.msk [vmem:[#allocation8] sm:$0xff] %vm2600_vm6, %v2553_v36 }
 0x49b   :  { %v2588_v43 = vmul.f32 %v2752_v7, %v2587_v0 }
 0x49c   :  { %v2754_v19 = vpop.eup %2753 }
 0x49d   :  { %v2571_v15 = vmul.f32 %v2754_v19, %v2538_v26  ;;  %v2589_v21 = vadd.f32 %v2752_v7, %v2588_v43  ;;  %vm2576_vm0 = vweird.f32 %v2754_v19 }
 0x49e   :  { %vm2577_vm2 = vmor %vm2575_vm1, %vm2576_vm0 }
 0x49f   :  { %v2572_v58 = vsub.f32 1.0, %v2571_v15  ;;  %v2593_v45 = vsel %vm2592_vm14, %v2752_v7, %v2589_v21 }
 0x4a0   :  { %v2598_v52 = vsel %vm2595_vm15, %v2597_v6, %v2593_v45 }
 0x4a1   :  { %v2573_v44 = vmul.f32 %v2754_v19, %v2572_v58  ;;  %2604 = vst.msk [vmem:[#allocation8 + $0x18] sm:$0xff] %vm2600_vm6, %v2598_v52 }
 0x4a3   :  { %v2574_v28 = vadd.f32 %v2754_v19, %v2573_v44 }
 0x4a5   :  { %v2578_v2 = vsel %vm2577_vm2, %v2754_v19, %v2574_v28 }
 0x4a6   :  { %v2583_v14 = vsel %vm2580_vm3, %v2582_v31, %v2578_v2 }
 0x4a7   :  { %2603 = vst.msk [vmem:[#allocation8 + $0x10] sm:$0xff] %vm2600_vm6, %v2583_v14 }
 0x4a8   :  { %2617 = dma.vmem_to_hbm [thread:$0]  %s2610_s29, 512, %s2612_s5, [#allocation5], %s2823_s18, %s2823_s18, %s2824_s19  }
 0x4a9   :  { %2819 = dma.done.wait [#allocation5], 512  }
 0x4aa   :  { %2820 = vsyncadd [#allocation5], 4294966784 }
 0x4ab   :  { %2622 = vsyncpa [#allocation4], 1 }
 0x4ac   :  { %2623 = vsyncpa [#allocation5], 1 }
 0x4ad   :  { %2624 = vsyncpa [#allocation6], 1 }

</bundles_post_ra>
